<compile_context>
chip_gen: v7x
topology: tpu7x:2x2x1
jax: 0.10.0
libtpu: 0.0.40
codegen_flags: <defaults>
</compile_context>

<pallas_src>
import functools

import jax
import jax.numpy as jnp
from jax.experimental import pallas as pl
from jax.experimental.pallas import tpu as pltpu

K = 3             # Tnet(k=3)
N_POINTS = 128    # number of points per cloud
BS = 2            # batch size
OUT_PAD = max(128, ((K * K + 127) // 128) * 128)   # lane-dense fc3 output width


def _tnet_kernel(x_ref,
                 w1, s1, t1,
                 w2, s2, t2,
                 w3, s3, t3,
                 w4, s4, t4,
                 w5, s5, t5,
                 w6, b6,
                 o_ref, *, bs, n, k):
    # x_ref: (bs*n, k) bf16, channels-last rows (row index = b*n + point).
    xf = x_ref[...].astype(jnp.float32)                    # (bs*n, k) f32

    # conv1 + bn1 + relu -- contraction dim is only k=3, so use VPU broadcast
    # FMAs instead of a (bs*n,3)@(3,64) MXU matmul (would use 3/256 lanes).
    w1f = w1[...].astype(jnp.float32)                      # (k, 64) f32
    h = xf[:, 0:1] * w1f[0:1, :]
    for j in range(1, k):
        h = h + xf[:, j:j + 1] * w1f[j:j + 1, :]
    h = jnp.maximum(h * s1[...] + t1[...], 0.0)            # (bs*n, 64) f32

    def mm_bn_relu(a_f32, w_r, s_r, t_r):
        # bf16 operands into the MXU, f32 accumulation, f32 elementwise math.
        y = jnp.dot(a_f32.astype(jnp.bfloat16), w_r[...],
                    preferred_element_type=jnp.float32)
        return jnp.maximum(y * s_r[...] + t_r[...], 0.0)

    h = mm_bn_relu(h, w2, s2, t2)                          # (bs*n, 128)  conv2+bn2+relu
    h = mm_bn_relu(h, w3, s3, t3)                          # (bs*n, 1024) conv3+bn3+relu

    # MaxPool1d over all points of each batch element -> (bs, 1024), f32.
    pooled = jnp.concatenate(
        [jnp.max(h[b * n:(b + 1) * n, :], axis=0, keepdims=True)
         for b in range(bs)],
        axis=0)

    f = mm_bn_relu(pooled, w4, s4, t4)                     # (bs, 512) fc1+bn4+relu
    f = mm_bn_relu(f, w5, s5, t5)                          # (bs, 256) fc2+bn5+relu

    # fc3 (no BN / ReLU); weight/bias pre-padded to OUT_PAD lanes so this is a
    # full-lane, unmasked store.
    out = jnp.dot(f.astype(jnp.bfloat16), w6[...],
                  preferred_element_type=jnp.float32) + b6[...]
    o_ref[...] = out                                       # (bs, OUT_PAD) f32


def init_params(key, k=K, out_pad=OUT_PAD):
    """Deterministic synthetic parameters.

    Weights are stored in bf16 (streamed to the MXU).  For conv1-3 / fc1-2 the
    Conv/Linear bias and eval-mode BatchNorm (gamma, beta, running stats,
    eps=1e-5) are folded into a per-output-channel f32 scale/shift pair.
    fc3's weight/bias are zero-padded to `out_pad` output lanes.
    """
    dims = [(k, 64), (64, 128), (128, 1024), (1024, 512), (512, 256), (256, k * k)]
    keys = iter(jax.random.split(key, 40))
    flat = []
    for i, (cin, cout) in enumerate(dims):
        w = jax.random.normal(next(keys), (cin, cout), jnp.float32) / jnp.sqrt(float(cin))
        b = 0.05 * jax.random.normal(next(keys), (1, cout), jnp.float32)
        if i < 5:   # conv1-3 (bn1-3) and fc1-2 (bn4-5) have BatchNorm
            gamma = 1.0 + 0.1 * jax.random.normal(next(keys), (1, cout), jnp.float32)
            beta = 0.05 * jax.random.normal(next(keys), (1, cout), jnp.float32)
            rmean = 0.1 * jax.random.normal(next(keys), (1, cout), jnp.float32)
            rvar = jnp.abs(jax.random.normal(next(keys), (1, cout), jnp.float32)) + 0.5
            scale = gamma / jnp.sqrt(rvar + 1e-5)
            shift = (b - rmean) * scale + beta
            flat += [w.astype(jnp.bfloat16), scale, shift]
        else:       # fc3: plain linear (no BN, no ReLU), padded to lane-dense width
            pad = out_pad - cout
            flat += [jnp.pad(w, ((0, 0), (0, pad))).astype(jnp.bfloat16),
                     jnp.pad(b, ((0, 0), (0, pad)))]
    return flat


def tnet_forward(x_nck, params_flat, k=K):
    """x_nck: (bs, k, N) in PyTorch Conv1d layout. Returns (bs, k, k) float32."""
    bs, k_in, n = x_nck.shape
    assert k_in == k
    # (bs, k, N) -> (bs*N, k): channels-last rows, streamed as bf16.
    x2d = jnp.transpose(x_nck, (0, 2, 1)).reshape(bs * n, k).astype(jnp.bfloat16)

    n_in = 1 + len(params_flat)
    vmem = pltpu.MemorySpace.VMEM
    raw = pl.pallas_call(
        functools.partial(_tnet_kernel, bs=bs, n=n, k=k),
        in_specs=[pl.BlockSpec(memory_space=vmem)] * n_in,
        out_specs=pl.BlockSpec(memory_space=vmem),
        out_shape=jax.ShapeDtypeStruct((bs, OUT_PAD), jnp.float32),
    )(x2d, *params_flat)

    # fc3 output (first k*k lanes) reshaped to (bs, k, k) plus the identity init.
    mat = raw[:, :k * k].reshape(bs, k, k)
    return mat + jnp.eye(k, dtype=jnp.float32)[None, :, :]


if __name__ == "__main__":
    key = jax.random.PRNGKey(0)
    k_params, k_x = jax.random.split(key)

    params = init_params(k_params, K)
    x = jax.random.normal(k_x, (BS, K, N_POINTS), dtype=jnp.float32)   # (bs, k, N)

    out = tnet_forward(x, params)
    out = jax.block_until_ready(out)
    assert out.shape == (BS, K, K), out.shape
    assert bool(jnp.all(jnp.isfinite(out)))
    print("KERNEL_OK")
</pallas_src>

<mosaic_0001>
module attributes {stable_mosaic.version = 11 : i64} {
  func.func @_tnet_kernel(%arg0: memref<256x3xbf16, #tpu.memory_space<vmem>>, %arg1: memref<3x64xbf16, #tpu.memory_space<vmem>>, %arg2: memref<1x64xf32, #tpu.memory_space<vmem>>, %arg3: memref<1x64xf32, #tpu.memory_space<vmem>>, %arg4: memref<64x128xbf16, #tpu.memory_space<vmem>>, %arg5: memref<1x128xf32, #tpu.memory_space<vmem>>, %arg6: memref<1x128xf32, #tpu.memory_space<vmem>>, %arg7: memref<128x1024xbf16, #tpu.memory_space<vmem>>, %arg8: memref<1x1024xf32, #tpu.memory_space<vmem>>, %arg9: memref<1x1024xf32, #tpu.memory_space<vmem>>, %arg10: memref<1024x512xbf16, #tpu.memory_space<vmem>>, %arg11: memref<1x512xf32, #tpu.memory_space<vmem>>, %arg12: memref<1x512xf32, #tpu.memory_space<vmem>>, %arg13: memref<512x256xbf16, #tpu.memory_space<vmem>>, %arg14: memref<1x256xf32, #tpu.memory_space<vmem>>, %arg15: memref<1x256xf32, #tpu.memory_space<vmem>>, %arg16: memref<256x128xbf16, #tpu.memory_space<vmem>>, %arg17: memref<1x128xf32, #tpu.memory_space<vmem>>, %arg18: memref<2x128xf32, #tpu.memory_space<vmem>>) attributes {dimension_semantics = [], scalar_prefetch = 0 : i64, scratch_operands = 0 : i64, tpu.core_type = #tpu.core_type<tc>} {
    %c0 = arith.constant 0 : index
    %c0_0 = arith.constant 0 : index
    %0 = vector.load %arg0[%c0, %c0_0] : memref<256x3xbf16, #tpu.memory_space<vmem>>, vector<256x3xbf16>
    %1 = arith.extf %0 : vector<256x3xbf16> to vector<256x3xf32>
    %c0_1 = arith.constant 0 : index
    %c0_2 = arith.constant 0 : index
    %2 = vector.load %arg1[%c0_1, %c0_2] : memref<3x64xbf16, #tpu.memory_space<vmem>>, vector<3x64xbf16>
    %3 = arith.extf %2 : vector<3x64xbf16> to vector<3x64xf32>
    %4 = vector.extract_strided_slice %1 {offsets = [0, 0], sizes = [256, 1], strides = [1, 1]} : vector<256x3xf32> to vector<256x1xf32>
    %5 = vector.extract_strided_slice %3 {offsets = [0, 0], sizes = [1, 64], strides = [1, 1]} : vector<3x64xf32> to vector<1x64xf32>
    %6 = vector.broadcast %4 : vector<256x1xf32> to vector<256x64xf32>
    %7 = vector.broadcast %5 : vector<1x64xf32> to vector<256x64xf32>
    %8 = arith.mulf %6, %7 : vector<256x64xf32>
    %9 = vector.extract_strided_slice %1 {offsets = [0, 1], sizes = [256, 1], strides = [1, 1]} : vector<256x3xf32> to vector<256x1xf32>
    %10 = vector.extract_strided_slice %3 {offsets = [1, 0], sizes = [1, 64], strides = [1, 1]} : vector<3x64xf32> to vector<1x64xf32>
    %11 = vector.broadcast %9 : vector<256x1xf32> to vector<256x64xf32>
    %12 = vector.broadcast %10 : vector<1x64xf32> to vector<256x64xf32>
    %13 = arith.mulf %11, %12 : vector<256x64xf32>
    %14 = arith.addf %8, %13 : vector<256x64xf32>
    %15 = vector.extract_strided_slice %1 {offsets = [0, 2], sizes = [256, 1], strides = [1, 1]} : vector<256x3xf32> to vector<256x1xf32>
    %16 = vector.extract_strided_slice %3 {offsets = [2, 0], sizes = [1, 64], strides = [1, 1]} : vector<3x64xf32> to vector<1x64xf32>
    %17 = vector.broadcast %15 : vector<256x1xf32> to vector<256x64xf32>
    %18 = vector.broadcast %16 : vector<1x64xf32> to vector<256x64xf32>
    %19 = arith.mulf %17, %18 : vector<256x64xf32>
    %20 = arith.addf %14, %19 : vector<256x64xf32>
    %c0_3 = arith.constant 0 : index
    %c0_4 = arith.constant 0 : index
    %21 = vector.load %arg2[%c0_3, %c0_4] : memref<1x64xf32, #tpu.memory_space<vmem>>, vector<1x64xf32>
    %22 = vector.broadcast %21 : vector<1x64xf32> to vector<256x64xf32>
    %23 = arith.mulf %20, %22 : vector<256x64xf32>
    %c0_5 = arith.constant 0 : index
    %c0_6 = arith.constant 0 : index
    %24 = vector.load %arg3[%c0_5, %c0_6] : memref<1x64xf32, #tpu.memory_space<vmem>>, vector<1x64xf32>
    %25 = vector.broadcast %24 : vector<1x64xf32> to vector<256x64xf32>
    %26 = arith.addf %23, %25 : vector<256x64xf32>
    %cst = arith.constant 0.000000e+00 : f32
    %27 = vector.broadcast %cst : f32 to vector<256x64xf32>
    %28 = arith.maximumf %26, %27 : vector<256x64xf32>
    %29 = arith.truncf %28 : vector<256x64xf32> to vector<256x64xbf16>
    %c0_7 = arith.constant 0 : index
    %c0_8 = arith.constant 0 : index
    %30 = vector.load %arg4[%c0_7, %c0_8] : memref<64x128xbf16, #tpu.memory_space<vmem>>, vector<64x128xbf16>
    %cst_9 = arith.constant dense<0.000000e+00> : vector<256x128xf32>
    %31 = tpu.matmul %29, %30, %cst_9 {dimension_numbers = #tpu.dot_dimension_numbers<[1], [0], [0], [1], [0, 0, 1, 1], [], []>} : vector<256x64xbf16>, vector<64x128xbf16>, vector<256x128xf32> -> vector<256x128xf32>
    %c0_10 = arith.constant 0 : index
    %c0_11 = arith.constant 0 : index
    %32 = vector.load %arg5[%c0_10, %c0_11] : memref<1x128xf32, #tpu.memory_space<vmem>>, vector<1x128xf32>
    %33 = vector.broadcast %32 : vector<1x128xf32> to vector<256x128xf32>
    %34 = arith.mulf %31, %33 : vector<256x128xf32>
    %c0_12 = arith.constant 0 : index
    %c0_13 = arith.constant 0 : index
    %35 = vector.load %arg6[%c0_12, %c0_13] : memref<1x128xf32, #tpu.memory_space<vmem>>, vector<1x128xf32>
    %36 = vector.broadcast %35 : vector<1x128xf32> to vector<256x128xf32>
    %37 = arith.addf %34, %36 : vector<256x128xf32>
    %cst_14 = arith.constant 0.000000e+00 : f32
    %38 = vector.broadcast %cst_14 : f32 to vector<256x128xf32>
    %39 = arith.maximumf %37, %38 : vector<256x128xf32>
    %40 = arith.truncf %39 : vector<256x128xf32> to vector<256x128xbf16>
    %c0_15 = arith.constant 0 : index
    %c0_16 = arith.constant 0 : index
    %41 = vector.load %arg7[%c0_15, %c0_16] : memref<128x1024xbf16, #tpu.memory_space<vmem>>, vector<128x1024xbf16>
    %cst_17 = arith.constant dense<0.000000e+00> : vector<256x1024xf32>
    %42 = tpu.matmul %40, %41, %cst_17 {dimension_numbers = #tpu.dot_dimension_numbers<[1], [0], [0], [1], [0, 0, 1, 1], [], []>} : vector<256x128xbf16>, vector<128x1024xbf16>, vector<256x1024xf32> -> vector<256x1024xf32>
    %c0_18 = arith.constant 0 : index
    %c0_19 = arith.constant 0 : index
    %43 = vector.load %arg8[%c0_18, %c0_19] : memref<1x1024xf32, #tpu.memory_space<vmem>>, vector<1x1024xf32>
    %44 = vector.broadcast %43 : vector<1x1024xf32> to vector<256x1024xf32>
    %45 = arith.mulf %42, %44 : vector<256x1024xf32>
    %c0_20 = arith.constant 0 : index
    %c0_21 = arith.constant 0 : index
    %46 = vector.load %arg9[%c0_20, %c0_21] : memref<1x1024xf32, #tpu.memory_space<vmem>>, vector<1x1024xf32>
    %47 = vector.broadcast %46 : vector<1x1024xf32> to vector<256x1024xf32>
    %48 = arith.addf %45, %47 : vector<256x1024xf32>
    %cst_22 = arith.constant 0.000000e+00 : f32
    %49 = vector.broadcast %cst_22 : f32 to vector<256x1024xf32>
    %50 = arith.maximumf %48, %49 : vector<256x1024xf32>
    %51 = vector.extract_strided_slice %50 {offsets = [0, 0], sizes = [128, 1024], strides = [1, 1]} : vector<256x1024xf32> to vector<128x1024xf32>
    %cst_23 = arith.constant dense<0xFF800000> : vector<1024xf32>
    %52 = vector.multi_reduction <maximumf>, %51, %cst_23 [0] : vector<128x1024xf32> to vector<1024xf32>
    %53 = vector.shape_cast %52 : vector<1024xf32> to vector<1x1024xf32>
    %54 = vector.extract_strided_slice %50 {offsets = [128, 0], sizes = [128, 1024], strides = [1, 1]} : vector<256x1024xf32> to vector<128x1024xf32>
    %cst_24 = arith.constant dense<0xFF800000> : vector<1024xf32>
    %55 = vector.multi_reduction <maximumf>, %54, %cst_24 [0] : vector<128x1024xf32> to vector<1024xf32>
    %56 = vector.shape_cast %55 : vector<1024xf32> to vector<1x1024xf32>
    %57 = tpu.concatenate %53, %56 in 0 : vector<1x1024xf32>, vector<1x1024xf32> -> vector<2x1024xf32>
    %58 = arith.truncf %57 : vector<2x1024xf32> to vector<2x1024xbf16>
    %c0_25 = arith.constant 0 : index
    %c0_26 = arith.constant 0 : index
    %59 = vector.load %arg10[%c0_25, %c0_26] : memref<1024x512xbf16, #tpu.memory_space<vmem>>, vector<1024x512xbf16>
    %cst_27 = arith.constant dense<0.000000e+00> : vector<2x512xf32>
    %60 = tpu.matmul %58, %59, %cst_27 {dimension_numbers = #tpu.dot_dimension_numbers<[1], [0], [0], [1], [0, 0, 1, 1], [], []>} : vector<2x1024xbf16>, vector<1024x512xbf16>, vector<2x512xf32> -> vector<2x512xf32>
    %c0_28 = arith.constant 0 : index
    %c0_29 = arith.constant 0 : index
    %61 = vector.load %arg11[%c0_28, %c0_29] : memref<1x512xf32, #tpu.memory_space<vmem>>, vector<1x512xf32>
    %62 = vector.broadcast %61 : vector<1x512xf32> to vector<2x512xf32>
    %63 = arith.mulf %60, %62 : vector<2x512xf32>
    %c0_30 = arith.constant 0 : index
    %c0_31 = arith.constant 0 : index
    %64 = vector.load %arg12[%c0_30, %c0_31] : memref<1x512xf32, #tpu.memory_space<vmem>>, vector<1x512xf32>
    %65 = vector.broadcast %64 : vector<1x512xf32> to vector<2x512xf32>
    %66 = arith.addf %63, %65 : vector<2x512xf32>
    %cst_32 = arith.constant 0.000000e+00 : f32
    %67 = vector.broadcast %cst_32 : f32 to vector<2x512xf32>
    %68 = arith.maximumf %66, %67 : vector<2x512xf32>
    %69 = arith.truncf %68 : vector<2x512xf32> to vector<2x512xbf16>
    %c0_33 = arith.constant 0 : index
    %c0_34 = arith.constant 0 : index
    %70 = vector.load %arg13[%c0_33, %c0_34] : memref<512x256xbf16, #tpu.memory_space<vmem>>, vector<512x256xbf16>
    %cst_35 = arith.constant dense<0.000000e+00> : vector<2x256xf32>
    %71 = tpu.matmul %69, %70, %cst_35 {dimension_numbers = #tpu.dot_dimension_numbers<[1], [0], [0], [1], [0, 0, 1, 1], [], []>} : vector<2x512xbf16>, vector<512x256xbf16>, vector<2x256xf32> -> vector<2x256xf32>
    %c0_36 = arith.constant 0 : index
    %c0_37 = arith.constant 0 : index
    %72 = vector.load %arg14[%c0_36, %c0_37] : memref<1x256xf32, #tpu.memory_space<vmem>>, vector<1x256xf32>
    %73 = vector.broadcast %72 : vector<1x256xf32> to vector<2x256xf32>
    %74 = arith.mulf %71, %73 : vector<2x256xf32>
    %c0_38 = arith.constant 0 : index
    %c0_39 = arith.constant 0 : index
    %75 = vector.load %arg15[%c0_38, %c0_39] : memref<1x256xf32, #tpu.memory_space<vmem>>, vector<1x256xf32>
    %76 = vector.broadcast %75 : vector<1x256xf32> to vector<2x256xf32>
    %77 = arith.addf %74, %76 : vector<2x256xf32>
    %cst_40 = arith.constant 0.000000e+00 : f32
    %78 = vector.broadcast %cst_40 : f32 to vector<2x256xf32>
    %79 = arith.maximumf %77, %78 : vector<2x256xf32>
    %80 = arith.truncf %79 : vector<2x256xf32> to vector<2x256xbf16>
    %c0_41 = arith.constant 0 : index
    %c0_42 = arith.constant 0 : index
    %81 = vector.load %arg16[%c0_41, %c0_42] : memref<256x128xbf16, #tpu.memory_space<vmem>>, vector<256x128xbf16>
    %cst_43 = arith.constant dense<0.000000e+00> : vector<2x128xf32>
    %82 = tpu.matmul %80, %81, %cst_43 {dimension_numbers = #tpu.dot_dimension_numbers<[1], [0], [0], [1], [0, 0, 1, 1], [], []>} : vector<2x256xbf16>, vector<256x128xbf16>, vector<2x128xf32> -> vector<2x128xf32>
    %c0_44 = arith.constant 0 : index
    %c0_45 = arith.constant 0 : index
    %83 = vector.load %arg17[%c0_44, %c0_45] : memref<1x128xf32, #tpu.memory_space<vmem>>, vector<1x128xf32>
    %84 = vector.broadcast %83 : vector<1x128xf32> to vector<2x128xf32>
    %85 = arith.addf %82, %84 : vector<2x128xf32>
    %c0_46 = arith.constant 0 : index
    %c0_47 = arith.constant 0 : index
    %86 = vector.load %arg18[%c0_46, %c0_47] : memref<2x128xf32, #tpu.memory_space<vmem>>, vector<2x128xf32>
    tpu.vector_store %arg18[%c0_46, %c0_47], %85 {strides = array<i32>} : memref<2x128xf32, #tpu.memory_space<vmem>>, vector<2x128xf32>,
    return
  }
}

</mosaic_0001>

<bundles_post_ra>
// kernel: tpu_custom_call.1
= control target key start
LH: loop header
LB: loop body
LE: loop exit
PB: predicated region body
PF: predicated region fallthrough
CT: control target
= control target key end

     0   :  { %s9556_s0 = inlined_call_operand.vmem [shape: bf16[256,3], index: 0, kind: input, shape index: {}]   ;;  %s9557_s1 = inlined_call_operand.vmem [shape: bf16[3,64], index: 1, kind: input, shape index: {}]   ;;  %s9558_s2 = inlined_call_operand.vmem [shape: f32[1,64], index: 2, kind: input, shape index: {}]   ;;  %s9559_s3 = inlined_call_operand.vmem [shape: f32[1,64], index: 3, kind: input, shape index: {}]   ;;  %s9560_s4 = inlined_call_operand.vmem [shape: bf16[64,128], index: 4, kind: input, shape index: {}]   ;;  %s9561_s5 = inlined_call_operand.hbm [shape: f32[1,128], index: 5, kind: input, shape index: {}]   ;;  %s9562_s6 = inlined_call_operand.hbm [shape: f32[1,128], index: 6, kind: input, shape index: {}]   ;;  %s9563_s7 = inlined_call_operand.hbm [shape: bf16[128,1024], index: 7, kind: input, shape index: {}]   ;;  %s9564_s8 = inlined_call_operand.vmem [shape: f32[1,1024], index: 8, kind: input, shape index: {}]   ;;  %s9565_s9 = inlined_call_operand.vmem [shape: f32[1,1024], index: 9, kind: input, shape index: {}]   ;;  %s9566_s10 = inlined_call_operand.hbm [shape: bf16[1024,512], index: 10, kind: input, shape index: {}]   ;;  %s9567_s11 = inlined_call_operand.vmem [shape: f32[1,512], index: 11, kind: input, shape index: {}]   ;;  %s9568_s12 = inlined_call_operand.vmem [shape: f32[1,512], index: 12, kind: input, shape index: {}]   ;;  %s9569_s13 = inlined_call_operand.hbm [shape: bf16[512,256], index: 13, kind: input, shape index: {}]   ;;  %s9570_s14 = inlined_call_operand.vmem [shape: f32[1,256], index: 14, kind: input, shape index: {}]   ;;  %s9571_s15 = inlined_call_operand.vmem [shape: f32[1,256], index: 15, kind: input, shape index: {}]   ;;  %s9572_s16 = inlined_call_operand.vmem [shape: bf16[256,128], index: 16, kind: input, shape index: {}]   ;;  %s9573_s17 = inlined_call_operand.vmem [shape: f32[1,128], index: 17, kind: input, shape index: {}]   ;;  %s9574_s18 = inlined_call_operand.hbm [shape: f32[2,128], index: 18, kind: output, shape index: {}]  }
   0x1   :  { %9576 = sst [smem:[#allocation16_spill]] %s9556_s0 }
   0x2   :  { %9577 = sst [smem:[#allocation17_spill]] %s9557_s1 }
   0x3   :  { %9578 = sst [smem:[#allocation18_spill]] %s9558_s2 }
   0x4   :  { %23 = vsyncpa [#allocation3], 0 }
   0x5   :  { %24 = vsyncpa [#allocation6], 0 }
   0x6   :  { %25 = vsyncpa [#allocation9], 0 }
   0x7   :  { %26 = vsyncpa [#allocation4], 0  ;;  %s7801_s27 = smov [#allocation5]   ;;  %s7802_s29 = smov [#allocation8]  }
   0x8   :  { %s53_s28 = sshll.u32 %s7801_s27, 4  ;;  %s78_s30 = sshll.u32 %s7802_s29, 4  ;;  %s54_s28 = int_to_ptr.vmem [resolvable:$true] %s53_s28  ;;  %s7911_s30 = int_to_ptr.vmem [resolvable:$true] %s78_s30 }
   0x9   :  { %s7661_s1 = scalar_lea.hbm %s9562_s6, 16 }
   0xa   :  { %p7662_p0 = scmp.ne.s32.totalorder %s9562_s6, %s7661_s1  ;;  %p7665_p1 = scmp.lt.u32.totalorder %s7661_s1, %s9562_s6 }
   0xc   :  { %p7667_p2 = pnand %p7665_p1, %p7662_p0 }
   0xe   :  { %7670 = shalt.err (!%p7667_p2)
}
   0xf   :  { %s7671_s23 = scalar_lea.vmem %s54_s28, 16  ;;  %s7675_s24 = scalar_lea.vmem %s54_s28, 32 }
  0x10   :  { %p7672_p3 = scmp.ne.s32.totalorder %s54_s28, %s7671_s23  ;;  %p7676_p4 = scmp.lt.s32.totalorder %s54_s28, %s54_s28 }
  0x11   :  { %p7677_p5 = scmp.lt.s32.totalorder %s7675_s24, %s7671_s23 }
  0x13   :  { %p7678_p6 = por %p7677_p5, %p7676_p4 }
  0x15   :  { %p7679_p7 = pnand %p7678_p6, %p7672_p3 }
  0x17   :  { %7682 = shalt.err (!%p7679_p7)
}
  0x18   :  { %56 = dma.hbm_to_vmem [thread:$0]  %s9562_s6, 16, %s54_s28, [#allocation6]  }
  0x19   :  { %s7683_s0 = scalar_lea.hbm %s9566_s10, 32768 }
  0x1a   :  { %p7684_p8 = scmp.ne.s32.totalorder %s9566_s10, %s7683_s0  ;;  %p7687_p9 = scmp.lt.u32.totalorder %s7683_s0, %s9566_s10 }
  0x1c   :  { %p7689_p10 = pnand %p7687_p9, %p7684_p8 }
  0x1e   :  { %7692 = shalt.err (!%p7689_p10)
}
  0x1f   :  { %s7693_s22 = scalar_lea.vmem %s7911_s30, 32768  ;;  %p7698_p12 = scmp.lt.s32.totalorder %s7911_s30, %s7911_s30 }
  0x20   :  { %p7694_p11 = scmp.ne.s32.totalorder %s7911_s30, %s7693_s22  ;;  %p7699_p13 = scmp.lt.s32.totalorder %s7693_s22, %s7693_s22 }
  0x22   :  { %p7700_p0 = por %p7699_p13, %p7698_p12 }
  0x24   :  { %p7701_p1 = pnand %p7700_p0, %p7694_p11 }
  0x26   :  { %7704 = shalt.err (!%p7701_p1)
}
  0x27   :  { %s7803_s6 = smov 256   ;;  %s7804_s28 = smov 16  }
  0x28   :  { %84 = dma.hbm_to_vmem [thread:$0]  %s9566_s10, 32768, %s7911_s30, [#allocation9], %s7803_s6, %s7803_s6, %s7804_s28  }
  0x29   :  { %s7805_s24 = smov [#allocation2]   ;;  %s7806_s26 = smov [#allocation7]  }
  0x2a   :  { %s43_s25 = sshll.u32 %s7805_s24, 4  ;;  %s62_s27 = sshll.u32 %s7806_s26, 4  ;;  %s44_s25 = int_to_ptr.vmem [resolvable:$true] %s43_s25  ;;  %s7942_s27 = int_to_ptr.vmem [resolvable:$true] %s62_s27 }
  0x2b   :  { %s7705_s19 = scalar_lea.hbm %s9561_s5, 16 }
  0x2c   :  { %p7706_p2 = scmp.ne.s32.totalorder %s9561_s5, %s7705_s19  ;;  %p7709_p3 = scmp.lt.u32.totalorder %s7705_s19, %s9561_s5 }
  0x2e   :  { %p7711_p4 = pnand %p7709_p3, %p7706_p2 }
  0x30   :  { %7714 = shalt.err (!%p7711_p4)
}
  0x31   :  { %s7715_s10 = scalar_lea.vmem %s44_s25, 16  ;;  %s7719_s30 = scalar_lea.vmem %s44_s25, 32 }
  0x32   :  { %p7716_p5 = scmp.ne.s32.totalorder %s44_s25, %s7715_s10  ;;  %p7720_p6 = scmp.lt.s32.totalorder %s44_s25, %s44_s25 }
  0x33   :  { %p7721_p7 = scmp.lt.s32.totalorder %s7719_s30, %s7715_s10 }
  0x35   :  { %p7722_p8 = por %p7721_p7, %p7720_p6 }
  0x37   :  { %p7723_p9 = pnand %p7722_p8, %p7716_p5 }
  0x39   :  { %7726 = shalt.err (!%p7723_p9)
}
  0x3a   :  { %46 = dma.hbm_to_vmem [thread:$0]  %s9561_s5, 16, %s44_s25, [#allocation3]  }
  0x3b   :  { %s7727_s24 = scalar_lea.hbm %s9563_s7, 8192 }
  0x3c   :  { %p7728_p10 = scmp.ne.s32.totalorder %s9563_s7, %s7727_s24  ;;  %p7731_p11 = scmp.lt.u32.totalorder %s7727_s24, %s9563_s7 }
  0x3e   :  { %p7733_p12 = pnand %p7731_p11, %p7728_p10 }
  0x40   :  { %7736 = shalt.err (!%p7733_p12)
}
  0x41   :  { %s7737_s1 = scalar_lea.vmem %s7942_s27, 8192  ;;  %p7742_p0 = scmp.lt.s32.totalorder %s7942_s27, %s7942_s27 }
  0x42   :  { %p7738_p13 = scmp.ne.s32.totalorder %s7942_s27, %s7737_s1  ;;  %p7743_p1 = scmp.lt.s32.totalorder %s7737_s1, %s7737_s1 }
  0x44   :  { %p7744_p2 = por %p7743_p1, %p7742_p0 }
  0x46   :  { %p7745_p3 = pnand %p7744_p2, %p7738_p13 }
  0x48   :  { %7748 = shalt.err (!%p7745_p3)
}
  0x49   :  { %s7807_s5 = smov 512   ;;  %s7808_s25 = smov 32  }
  0x4a   :  { %68 = dma.hbm_to_vmem [thread:$0]  %s9563_s7, 8192, %s7942_s27, [#allocation6], %s7807_s5, %s7807_s5, %s7808_s25  }
  0x4b   :  { %s7809_s22 = smov [#allocation10]   ;;  %s7749_s28 = scalar_lea.hbm %s9569_s13, 8192 }
  0x4c   :  { %s94_s10 = sshll.u32 %s7809_s22, 4  ;;  %p7750_p4 = scmp.ne.s32.totalorder %s9569_s13, %s7749_s28  ;;  %s95_s10 = int_to_ptr.vmem [resolvable:$true] %s94_s10 }
  0x4d   :  { %p7753_p5 = scmp.lt.u32.totalorder %s7749_s28, %s9569_s13 }
  0x4f   :  { %p7755_p6 = pnand %p7753_p5, %p7750_p4 }
  0x51   :  { %7758 = shalt.err (!%p7755_p6)
}
  0x52   :  { %s7759_s29 = scalar_lea.vmem %s95_s10, 8192  ;;  %p7764_p8 = scmp.lt.s32.totalorder %s95_s10, %s95_s10 }
  0x53   :  { %p7760_p7 = scmp.ne.s32.totalorder %s95_s10, %s7759_s29  ;;  %p7765_p9 = scmp.lt.s32.totalorder %s7759_s29, %s7759_s29 }
  0x55   :  { %p7766_p10 = por %p7765_p9, %p7764_p8 }
  0x57   :  { %p7767_p11 = pnand %p7766_p10, %p7760_p7 }
  0x59   :  { %7770 = shalt.err (!%p7767_p11)
}
  0x5a   :  { %s7810_s7 = smov 128   ;;  %s7811_s27 = smov 8  }
  0x5b   :  { %100 = dma.hbm_to_vmem [thread:$0]  %s9569_s13, 8192, %s95_s10, [#allocation9], %s7810_s7, %s7810_s7, %s7811_s27  }
  0x5c   :  { %7793 = dma.done.wait [#allocation3], 16  }
  0x5d   :  { %7794 = vsyncadd [#allocation3], 4294967280 }
  0x5e   :  { %7795 = dma.done.wait [#allocation6], 8208  }
  0x5f   :  { %7796 = vsyncadd [#allocation6], 4294959088 }
  0x60   :  { %7797 = dma.done.wait [#allocation9], 40960  }
  0x61   :  { %7798 = vsyncadd [#allocation9], 4294926336  ;;  %v7812_v0 = vmov 0   ;;  %s9579_s25 = sld [smem:[#allocation16_spill]]  ;;  %v7813_v11 = vmov 1   ;;  %v7159_v16 = vld [vmem:[%s9560_s4] sm:$0xff]  }
  0x62   :  { %6890 = vset.pattern.permute.xlu1 %v7812_v0  ;;  %6878 = vset.pattern.permute.xlu0 %v7812_v0  ;;  %v7814_v17 = vmov 2   ;;  %v7160_v21 = vld [vmem:[%s9560_s4 + $0x8] sm:$0xff]   ;;  %v7161_v25 = vld [vmem:[%s9560_s4 + $0x10] sm:$0xff]   ;;  %v7162_v29 = vld [vmem:[%s9560_s4 + $0x18] sm:$0xff]   ;;  %s9580_s21 = sld [smem:[#allocation17_spill]]  ;;  %s9581_s4 = sld [smem:[#allocation18_spill]] }
  0x63   :  { %1689 = vmatprep.mubr.bf16.mxu1 %v7812_v0  ;;  %6795 = vmatprep.subr.bf16.mxu0 %v7159_v16  ;;  %vm937_vm0 = vcmask 523264   ;;  %vm3617_vm1 = vcmask 1040384  }
  0x64   :  { %6796 = vmatpush3.bf16.msra.mxu0 %v7159_v16 }
  0x65   :  { %6797 = vmatprep.subr.bf16.mxu0 %v7160_v21 }
  0x67   :  { %v6738_v1 = vld [vmem:[%s9579_s25 + $0x8] sm:$0xff]   ;;  %v6675_v2 = vld [vmem:[%s9579_s25] sm:$0xff]   ;;  %v6739_v9 = vld [vmem:[%s9579_s25 + $0x10] sm:$0xff]  }
  0x68   :  { %v6680_v3 = vunpack.c.l.bf16 %v6738_v1  ;;  %v6681_v4 = vunpack.c.h.bf16 %v6738_v1  ;;  %v6676_v5 = vunpack.c.l.bf16 %v6675_v2  ;;  %v6677_v6 = vunpack.c.h.bf16 %v6675_v2  ;;  %v6740_v10 = vld [vmem:[%s9579_s25 + $0x18] sm:$0xff]   ;;  %v6742_v22 = vld [vmem:[%s9579_s25 + $0x28] sm:$0xff]   ;;  %6798 = vmatpush3.bf16.msra.mxu0 %v7160_v21  ;;  %v6741_v30 = vld [vmem:[%s9579_s25 + $0x20] sm:$0xff]  }
  0x69   :  { %v6684_v12 = vunpack.c.l.bf16 %v6739_v9  ;;  %v6685_v13 = vunpack.c.h.bf16 %v6739_v9  ;;  %v6688_v14 = vunpack.c.l.bf16 %v6740_v10  ;;  %v6689_v15 = vunpack.c.h.bf16 %v6740_v10  ;;  %v6752_v18 = vld [vmem:[%s9579_s25 + $0x78] sm:$0xff]   ;;  %6799 = vmatprep.subr.bf16.mxu0 %v7161_v25  ;;  %v6746_v39 = vld [vmem:[%s9579_s25 + $0x48] sm:$0xff]   ;;  %v6743_v42 = vld [vmem:[%s9579_s25 + $0x30] sm:$0xff]  }
  0x6a   :  { %v6891_v7 = vpack.i.bf16 %v6681_v4, %v6680_v3  ;;  %v6879_v8 = vpack.i.bf16 %v6677_v6, %v6676_v5  ;;  %v6736_v23 = vunpack.c.l.bf16 %v6752_v18  ;;  %v6737_v24 = vunpack.c.h.bf16 %v6752_v18  ;;  %v6744_v32 = vld [vmem:[%s9579_s25 + $0x38] sm:$0xff]   ;;  %v6750_v51 = vld [vmem:[%s9579_s25 + $0x68] sm:$0xff]   ;;  %v6745_v54 = vld [vmem:[%s9579_s25 + $0x40] sm:$0xff]  }
  0x6b   :  { %v6915_v19 = vpack.i.bf16 %v6685_v13, %v6684_v12  ;;  %v6927_v20 = vpack.i.bf16 %v6689_v15, %v6688_v14  ;;  %v6696_v27 = vunpack.c.l.bf16 %v6742_v22  ;;  %v6697_v28 = vunpack.c.h.bf16 %v6742_v22  ;;  %v6748_v44 = vld [vmem:[%s9579_s25 + $0x58] sm:$0xff]   ;;  %v6747_v59 = vld [vmem:[%s9579_s25 + $0x50] sm:$0xff]   ;;  %v6749_v63 = vld [vmem:[%s9579_s25 + $0x60] sm:$0xff]  }
  0x6c   :  { %6892 = vperm.xlu1 %6890, %v6891_v7   ;;  %6880 = vperm.xlu0 %6878, %v6879_v8   ;;  %v8021_v26 = vpack.i.bf16 %v6737_v24, %v6736_v23  ;;  %v6692_v33 = vunpack.c.l.bf16 %v6741_v30  ;;  %v6693_v34 = vunpack.c.h.bf16 %v6741_v30  ;;  %v6704_v35 = vunpack.c.l.bf16 %v6744_v32  ;;  %v6751_v4 = vld [vmem:[%s9579_s25 + $0x70] sm:$0xff]   ;;  %v189_v9 = vld [vmem:[%s9580_s21] sm:$0x3] }
  0x6d   :  { %v6962_v31 = vpack.i.bf16 %v6697_v28, %v6696_v27  ;;  %6800 = vmatpush3.bf16.msra.mxu0 %v7161_v25  ;;  %v6705_v36 = vunpack.c.h.bf16 %v6744_v32  ;;  %v6712_v40 = vunpack.c.l.bf16 %v6746_v39  ;;  %v6713_v41 = vunpack.c.h.bf16 %v6746_v39 }
  0x6e   :  { %6801 = vmatprep.subr.bf16.mxu0 %v7162_v29  ;;  %v6950_v37 = vpack.i.bf16 %v6693_v34, %v6692_v33  ;;  %v6700_v45 = vunpack.c.l.bf16 %v6743_v42  ;;  %v6701_v46 = vunpack.c.h.bf16 %v6743_v42  ;;  %v6720_v47 = vunpack.c.l.bf16 %v6748_v44 }
  0x6f   :  { %v6997_v38 = vpack.i.bf16 %v6705_v36, %v6704_v35  ;;  %v7032_v43 = vpack.i.bf16 %v6713_v41, %v6712_v40  ;;  %v6721_v48 = vunpack.c.h.bf16 %v6748_v44  ;;  %v6728_v52 = vunpack.c.l.bf16 %v6750_v51 }
  0x70   :  { %6896 = vset.pattern.permute.xlu1 %v7813_v11  ;;  %6884 = vset.pattern.permute.xlu0 %v7813_v11  ;;  %v6985_v49 = vpack.i.bf16 %v6701_v46, %v6700_v45  ;;  %v6729_v53 = vunpack.c.h.bf16 %v6750_v51  ;;  %v6708_v56 = vunpack.c.l.bf16 %v6745_v54  ;;  %v6709_v57 = vunpack.c.h.bf16 %v6745_v54  ;;  %v8129_v54 = vld [vmem:[%s9581_s4] ss:$0 sm:$0xff] }
  0x71   :  { %6898 = vperm.xlu1 %6896, %v6891_v7   ;;  %6886 = vperm.xlu0 %6884, %v6879_v8   ;;  %v7067_v50 = vpack.i.bf16 %v6721_v48, %v6720_v47  ;;  %v6716_v60 = vunpack.c.l.bf16 %v6747_v59  ;;  %v6717_v61 = vunpack.c.h.bf16 %v6747_v59  ;;  %v6724_v1 = vunpack.c.l.bf16 %v6749_v63 }
  0x72   :  { %6802 = vmatpush3.bf16.msra.mxu0 %v7162_v29  ;;  %v7102_v55 = vpack.i.bf16 %v6729_v53, %v6728_v52  ;;  %v7020_v58 = vpack.i.bf16 %v6709_v57, %v6708_v56  ;;  %v6725_v2 = vunpack.c.h.bf16 %v6749_v63  ;;  %v351_v5 = vlaneseq }
  0x73   :  { %v7055_v62 = vpack.i.bf16 %v6717_v61, %v6716_v60  ;;  %v6732_v6 = vunpack.c.l.bf16 %v6751_v4  ;;  %v190_v12 = vunpack.c.l.bf16 %v189_v9  ;;  %v8135_v60 = vld [vmem:[%s9559_s3] ss:$0 sm:$0xff] }
  0x74   :  { %v7090_v3 = vpack.i.bf16 %v6725_v2, %v6724_v1 }
  0x75   :  { %6902 = vset.pattern.permute.xlu1 %v7814_v17  ;;  %6908 = vset.pattern.permute.xlu0 %v7814_v17 }
  0x76   :  { %6904 = vperm.xlu1 %6902, %v6879_v8   ;;  %6910 = vperm.xlu0 %6908, %v6891_v7   ;;  %v6733_v7 = vunpack.c.h.bf16 %v6751_v4  ;;  %v8087_v8 = vshrl.u32 %v351_v5, 7 }
  0x78   :  { %v7125_v10 = vpack.i.bf16 %v6733_v7, %v6732_v6  ;;  %v8094_v13 = vsub.s32 0, %v8087_v8  ;;  %v8097_v16 = vsub.s32 1, %v8087_v8  ;;  %v8107_v22 = vsub.s32 2, %v8087_v8 }
  0x7a   :  { %6914 = vset.pattern.permute.xlu1 %v7812_v0  ;;  %6926 = vset.pattern.permute.xlu0 %v7812_v0  ;;  %v8104_v21 = vrot.slane %v190_v12, %v8097_v16 }
  0x7b   :  { %6916 = vperm.xlu1 %6914, %v6915_v19   ;;  %6928 = vperm.xlu0 %6926, %v6927_v20  }
  0x7f   :  { %6920 = vset.pattern.permute.xlu1 %v7813_v11  ;;  %6943 = vset.pattern.permute.xlu0 %v7814_v17 }
  0x80   :  { %6922 = vperm.xlu1 %6920, %v6915_v19   ;;  %6945 = vperm.xlu0 %6943, %v6927_v20  }
  0x84   :  { %6933 = vperm.xlu1 %6920, %v6927_v20   ;;  %6961 = vset.pattern.permute.xlu0 %v7812_v0  ;;  %v8101_v20 = vrot.slane %v190_v12, %v8094_v13 }
  0x85   :  { %6963 = vperm.xlu0 %6961, %v6962_v31  }
  0x88   :  { %6937 = vset.pattern.permute.xlu1 %v7814_v17 }
  0x89   :  { %6939 = vperm.xlu1 %6937, %v6915_v19   ;;  %6978 = vset.pattern.permute.xlu0 %v7814_v17 }
  0x8a   :  { %6980 = vperm.xlu0 %6978, %v6962_v31  }
  0x8d   :  { %6949 = vset.pattern.permute.xlu1 %v7812_v0 }
  0x8e   :  { %6951 = vperm.xlu1 %6949, %v6950_v37   ;;  %6996 = vset.pattern.permute.xlu0 %v7812_v0 }
  0x8f   :  { %6998 = vperm.xlu0 %6996, %v6997_v38  }
  0x92   :  { %6955 = vset.pattern.permute.xlu1 %v7813_v11 }
  0x93   :  { %6957 = vperm.xlu1 %6955, %v6950_v37   ;;  %7013 = vset.pattern.permute.xlu0 %v7814_v17 }
  0x94   :  { %7015 = vperm.xlu0 %7013, %v6997_v38  }
  0x97   :  { %6968 = vperm.xlu1 %6955, %v6962_v31  }
  0x98   :  { %7031 = vset.pattern.permute.xlu0 %v7812_v0 }
  0x99   :  { %7033 = vperm.xlu0 %7031, %v7032_v43  }
  0x9b   :  { %6972 = vset.pattern.permute.xlu1 %v7814_v17 }
  0x9c   :  { %6974 = vperm.xlu1 %6972, %v6950_v37  }
  0x9d   :  { %7048 = vset.pattern.permute.xlu0 %v7814_v17 }
  0x9e   :  { %7050 = vperm.xlu0 %7048, %v7032_v43  }
  0xa0   :  { %6984 = vset.pattern.permute.xlu1 %v7812_v0 }
  0xa1   :  { %6986 = vperm.xlu1 %6984, %v6985_v49  }
  0xa2   :  { %7066 = vset.pattern.permute.xlu0 %v7812_v0 }
  0xa3   :  { %7068 = vperm.xlu0 %7066, %v7067_v50  }
  0xa5   :  { %6990 = vset.pattern.permute.xlu1 %v7813_v11 }
  0xa6   :  { %6992 = vperm.xlu1 %6990, %v6985_v49  }
  0xa7   :  { %7083 = vset.pattern.permute.xlu0 %v7814_v17 }
  0xa8   :  { %7085 = vperm.xlu0 %7083, %v7067_v50  }
  0xaa   :  { %7003 = vperm.xlu1 %6990, %v6997_v38   ;;  %v8117_v38 = vrot.slane %v190_v12, %v8107_v22 }
  0xac   :  { %7101 = vset.pattern.permute.xlu0 %v7812_v0 }
  0xad   :  { %7103 = vperm.xlu0 %7101, %v7102_v55  }
  0xae   :  { %7007 = vset.pattern.permute.xlu1 %v7814_v17 }
  0xaf   :  { %7009 = vperm.xlu1 %7007, %v6985_v49  }
  0xb1   :  { %7118 = vset.pattern.permute.xlu0 %v7814_v17 }
  0xb2   :  { %7120 = vperm.xlu0 %7118, %v7102_v55  }
  0xb3   :  { %7019 = vset.pattern.permute.xlu1 %v7812_v0 }
  0xb4   :  { %7021 = vperm.xlu1 %7019, %v7020_v58  }
  0xb6   :  { %7136 = vset.pattern.permute.xlu0 %v7812_v0 }
  0xb7   :  { %7138 = vperm.xlu0 %7136, %v8021_v26  }
  0xb8   :  { %7025 = vset.pattern.permute.xlu1 %v7813_v11 }
  0xb9   :  { %7027 = vperm.xlu1 %7025, %v7020_v58  }
  0xbb   :  { %7153 = vset.pattern.permute.xlu0 %v7814_v17 }
  0xbc   :  { %7155 = vperm.xlu0 %7153, %v8021_v26  }
  0xbd   :  { %7038 = vperm.xlu1 %7025, %v7032_v43  }
  0xc1   :  { %7042 = vset.pattern.permute.xlu1 %v7814_v17 }
  0xc2   :  { %7044 = vperm.xlu1 %7042, %v7020_v58  }
  0xc6   :  { %7054 = vset.pattern.permute.xlu1 %v7812_v0 }
  0xc7   :  { %7056 = vperm.xlu1 %7054, %v7055_v62  }
  0xcb   :  { %7060 = vset.pattern.permute.xlu1 %v7813_v11 }
  0xcc   :  { %7062 = vperm.xlu1 %7060, %v7055_v62  }
  0xd0   :  { %7073 = vperm.xlu1 %7060, %v7067_v50  }
  0xd4   :  { %7077 = vset.pattern.permute.xlu1 %v7814_v17 }
  0xd5   :  { %7079 = vperm.xlu1 %7077, %v7055_v62  }
  0xd9   :  { %7089 = vset.pattern.permute.xlu1 %v7812_v0 }
  0xda   :  { %7091 = vperm.xlu1 %7089, %v7090_v3  }
  0xde   :  { %7095 = vset.pattern.permute.xlu1 %v7813_v11 }
  0xdf   :  { %7097 = vperm.xlu1 %7095, %v7090_v3  }
  0xe3   :  { %7108 = vperm.xlu1 %7095, %v7102_v55  }
  0xe7   :  { %7112 = vset.pattern.permute.xlu1 %v7814_v17 }
  0xe8   :  { %7114 = vperm.xlu1 %7112, %v7090_v3  }
  0xeb   :  { %v6893_v14 = vpop.permute.xlu1 %6892  ;;  %v6881_v15 = vpop.permute.xlu0 %6880 }
  0xec   :  { %7124 = vset.pattern.permute.xlu1 %v7812_v0  ;;  %v6883_v18 = vunpack.i.h.bf16 %v6881_v15  ;;  %v6882_v19 = vunpack.i.l.bf16 %v6881_v15  ;;  %v6895_v23 = vunpack.i.h.bf16 %v6893_v14  ;;  %v6894_v24 = vunpack.i.l.bf16 %v6893_v14 }
  0xed   :  { %7126 = vperm.xlu1 %7124, %v7125_v10  }
  0xee   :  { %v356_v25 = vmul.f32 %v6883_v18, %v8101_v20  ;;  %v355_v27 = vmul.f32 %v6882_v19, %v8101_v20  ;;  %v358_v39 = vmul.f32 %v6895_v23, %v8101_v20  ;;  %v357_v40 = vmul.f32 %v6894_v24, %v8101_v20 }
  0xf0   :  { %v6899_v28 = vpop.permute.xlu1 %6898  ;;  %v6887_v29 = vpop.permute.xlu0 %6886 }
  0xf1   :  { %v6901_v30 = vunpack.i.h.bf16 %v6899_v28  ;;  %v6900_v31 = vunpack.i.l.bf16 %v6899_v28  ;;  %7130 = vset.pattern.permute.xlu1 %v7813_v11  ;;  %v6889_v32 = vunpack.i.h.bf16 %v6887_v29  ;;  %v6888_v33 = vunpack.i.l.bf16 %v6887_v29 }
  0xf2   :  { %7132 = vperm.xlu1 %7130, %v7125_v10  }
  0xf3   :  { %v522_v34 = vmul.f32 %v6901_v30, %v8104_v21  ;;  %v521_v35 = vmul.f32 %v6900_v31, %v8104_v21  ;;  %v520_v36 = vmul.f32 %v6889_v32, %v8104_v21  ;;  %v519_v37 = vmul.f32 %v6888_v33, %v8104_v21 }
  0xf5   :  { %v551_v41 = vadd.f32 %v519_v37, %v355_v27  ;;  %v552_v11 = vadd.f32 %v520_v36, %v356_v25  ;;  %v6905_v42 = vpop.permute.xlu1 %6904  ;;  %v6911_v43 = vpop.permute.xlu0 %6910  ;;  %v553_v48 = vadd.f32 %v521_v35, %v357_v40  ;;  %v554_v49 = vadd.f32 %v522_v34, %v358_v39 }
  0xf6   :  { %v6907_v44 = vunpack.i.h.bf16 %v6905_v42  ;;  %v6906_v45 = vunpack.i.l.bf16 %v6905_v42  ;;  %v6913_v46 = vunpack.i.h.bf16 %v6911_v43  ;;  %v6912_v47 = vunpack.i.l.bf16 %v6911_v43  ;;  %7143 = vperm.xlu1 %7130, %v8021_v26  }
  0xf8   :  { %v716_v50 = vmul.f32 %v6907_v44, %v8117_v38  ;;  %v715_v51 = vmul.f32 %v6906_v45, %v8117_v38  ;;  %v718_v52 = vmul.f32 %v6913_v46, %v8117_v38  ;;  %v717_v53 = vmul.f32 %v6912_v47, %v8117_v38 }
  0xfa   :  { %v747_v55 = vadd.f32 %v715_v51, %v551_v41  ;;  %v748_v56 = vadd.f32 %v716_v50, %v552_v11  ;;  %v750_v57 = vadd.f32 %v718_v52, %v554_v49  ;;  %v749_v58 = vadd.f32 %v717_v53, %v553_v48  ;;  %7147 = vset.pattern.permute.xlu1 %v7814_v17  ;;  %v6917_v26 = vpop.permute.xlu1 %6916  ;;  %v6929_v59 = vpop.permute.xlu0 %6928  ;;  %v1273_v53 = vld [vmem:[#allocation7] sm:$0xff] }
  0xfb   :  { %7149 = vperm.xlu1 %7147, %v7125_v10   ;;  %v6931_v7 = vunpack.i.h.bf16 %v6929_v59  ;;  %v6930_v9 = vunpack.i.l.bf16 %v6929_v59  ;;  %v6919_v27 = vunpack.i.h.bf16 %v6917_v26  ;;  %v6918_v28 = vunpack.i.l.bf16 %v6917_v26  ;;  %v1278_v59 = vld [vmem:[#allocation7 + $0x28] sm:$0xff] }
  0xfc   :  { %v789_v61 = vmul.f32 %v8129_v54, %v750_v57  ;;  %v788_v62 = vmul.f32 %v8129_v54, %v749_v58  ;;  %v786_v63 = vmul.f32 %v8129_v54, %v747_v55  ;;  %v787_v1 = vmul.f32 %v8129_v54, %v748_v56  ;;  %v1277_v55 = vld [vmem:[#allocation7 + $0x20] sm:$0xff]  ;;  %v1274_v56 = vld [vmem:[#allocation7 + $0x8] sm:$0xff] }
  0xfd   :  { %v362_v31 = vmul.f32 %v6931_v7, %v8101_v20  ;;  %v361_v32 = vmul.f32 %v6930_v9, %v8101_v20  ;;  %v360_v11 = vmul.f32 %v6919_v27, %v8101_v20  ;;  %v359_v42 = vmul.f32 %v6918_v28, %v8101_v20  ;;  %v1281_v9 = vld [vmem:[#allocation7 + $0x40] sm:$0xff] }
  0xfe   :  { %v828_v2 = vadd.f32 %v8135_v60, %v789_v61  ;;  %v827_v17 = vadd.f32 %v8135_v60, %v788_v62  ;;  %v825_v3 = vadd.f32 %v8135_v60, %v786_v63  ;;  %v826_v4 = vadd.f32 %v8135_v60, %v787_v1 }
  0xff   :  { %v6923_v5 = vpop.permute.xlu1 %6922  ;;  %v6946_v6 = vpop.permute.xlu0 %6945  ;;  %v6274_v26 = vcombine.high %v1273_v53, %v1277_v55  ;;  %v6273_v61 = vcombine.low %v1273_v53, %v1277_v55  ;;  %v1302_v53 = vld [vmem:[#allocation7 + $0xe8] sm:$0xff] }
 0x100   :  { %v857_v10 = vmax.f32 %v825_v3, 0.0  ;;  %v858_v12 = vmax.f32 %v826_v4, 0.0  ;;  %v6925_v14 = vunpack.i.h.bf16 %v6923_v5  ;;  %v6924_v15 = vunpack.i.l.bf16 %v6923_v5 }
 0x101   :  { %v859_v18 = vmax.f32 %v827_v17, 0.0  ;;  %v860_v19 = vmax.f32 %v828_v2, 0.0  ;;  %v6948_v24 = vunpack.i.h.bf16 %v6946_v6  ;;  %v6947_v25 = vunpack.i.l.bf16 %v6946_v6  ;;  %1657 = vmatprep.subr.bf16.mxu1 %v6274_v26 }
 0x102   :  { %v889_v23 = vpack.c.bf16 %v858_v12, %v857_v10  ;;  %v524_v35 = vmul.f32 %v6925_v14, %v8104_v21  ;;  %v523_v36 = vmul.f32 %v6924_v15, %v8104_v21  ;;  %v6275_v3 = vcombine.low %v1274_v56, %v1278_v59  ;;  %1658 = vmatpush1.bf16.msra.mxu1 %v6273_v61  ;;  %v1285_v15 = vld [vmem:[#allocation7 + $0x60] sm:$0xff] }
 0x103   :  { %v6934_v29 = vpop.permute.xlu1 %6933  ;;  %v890_v30 = vpack.c.bf16 %v860_v19, %v859_v18  ;;  %v722_v40 = vmul.f32 %v6948_v24, %v8117_v38  ;;  %v721_v41 = vmul.f32 %v6947_v25, %v8117_v38  ;;  %v6276_v4 = vcombine.high %v1274_v56, %v1278_v59  ;;  %v1282_v18 = vld [vmem:[#allocation7 + $0x48] sm:$0xff] }
 0x104   :  { %v6936_v33 = vunpack.i.h.bf16 %v6934_v29  ;;  %v6935_v34 = vunpack.i.l.bf16 %v6934_v29  ;;  %6803 = vmatprep.mubr.msk.bf16.mxu0 %vm937_vm0, %v889_v23  ;;  %v6964_v46 = vpop.permute.xlu0 %6963  ;;  %v555_v49 = vadd.f32 %v523_v36, %v359_v42  ;;  %v556_v50 = vadd.f32 %v524_v35, %v360_v11  ;;  %v1286_v19 = vld [vmem:[#allocation7 + $0x68] sm:$0xff]  ;;  %v1289_v29 = vld [vmem:[#allocation7 + $0x80] sm:$0xff] }
 0x105   :  { %6804 = vmatmul.mubr.msk.bf16.vlgmr.msra.gmra.mrb[0].mxu0 %vm937_vm0, %v890_v30  ;;  %v6966_v14 = vunpack.i.h.bf16 %v6964_v46  ;;  %1850 = vmatprep.subr.bf16.mxu0 %v6276_v4  ;;  %v6965_v23 = vunpack.i.l.bf16 %v6964_v46  ;;  %v1293_v30 = vld [vmem:[#allocation7 + $0xa0] sm:$0xff]  ;;  %v6284_v35 = vcombine.high %v1282_v18, %v1286_v19  ;;  %v1290_v36 = vld [vmem:[#allocation7 + $0x88] sm:$0xff] }
 0x106   :  { %v526_v37 = vmul.f32 %v6936_v33, %v8104_v21  ;;  %v525_v39 = vmul.f32 %v6935_v34, %v8104_v21  ;;  %1851 = vmatpush1.bf16.msra.mxu0 %v6275_v3  ;;  %v6282_v33 = vcombine.high %v1281_v9, %v1285_v15  ;;  %v6283_v34 = vcombine.low %v1282_v18, %v1286_v19  ;;  %v1297_v46 = vld [vmem:[#allocation7 + $0xc0] sm:$0xff] }
 0x107   :  { %1852 = vmatprep.subr.bf16.mxu0 %v6284_v35  ;;  %v6289_v26 = vcombine.low %v1289_v29, %v1293_v30  ;;  %v1305_v4 = vld [vmem:[#allocation7 + $0x100] sm:$0xff] }
 0x108   :  { %v557_v43 = vadd.f32 %v525_v39, %v361_v32  ;;  %v558_v44 = vadd.f32 %v526_v37, %v362_v31  ;;  %v6940_v45 = vpop.permute.xlu1 %6939  ;;  %v1294_v37 = vld [vmem:[#allocation7 + $0xa8] sm:$0xff]  ;;  %v366_v39 = vmul.f32 %v6966_v14, %v8101_v20  ;;  %1659 = vmatprep.subr.bf16.mxu1 %v6282_v33 }
 0x109   :  { %v6942_v47 = vunpack.i.h.bf16 %v6940_v45  ;;  %v6941_v48 = vunpack.i.l.bf16 %v6940_v45  ;;  %v6981_v7 = vpop.permute.xlu0 %6980  ;;  %v6290_v45 = vcombine.high %v1289_v29, %v1293_v30 }
 0x10a   :  { %v753_v51 = vadd.f32 %v721_v41, %v557_v43  ;;  %v754_v52 = vadd.f32 %v722_v40, %v558_v44  ;;  %v6983_v27 = vunpack.i.h.bf16 %v6981_v7  ;;  %v6982_v11 = vunpack.i.l.bf16 %v6981_v7  ;;  %1853 = vmatpush1.bf16.msra.mxu0 %v6283_v34 }
 0x10b   :  { %v720_v57 = vmul.f32 %v6942_v47, %v8117_v38  ;;  %v719_v58 = vmul.f32 %v6941_v48, %v8117_v38  ;;  %v365_v43 = vmul.f32 %v6965_v23, %v8101_v20  ;;  %v6281_v44 = vcombine.low %v1281_v9, %v1285_v15 }
 0x10c   :  { %v792_v62 = vmul.f32 %v8129_v54, %v753_v51  ;;  %v793_v63 = vmul.f32 %v8129_v54, %v754_v52  ;;  %v1301_v51 = vld [vmem:[#allocation7 + $0xe0] sm:$0xff]  ;;  %v1298_v52 = vld [vmem:[#allocation7 + $0xc8] sm:$0xff] }
 0x10d   :  { %v751_v1 = vadd.f32 %v719_v58, %v555_v49  ;;  %v752_v2 = vadd.f32 %v720_v57, %v556_v50  ;;  %v8161_v17 = vpop.permute.xlu1 %6951  ;;  %v726_v49 = vmul.f32 %v6983_v27, %v8117_v38  ;;  %v6291_v50 = vcombine.low %v1290_v36, %v1294_v37  ;;  %1660 = vmatpush1.bf16.msra.mxu1 %v6281_v44 }
 0x10e   :  { %v831_v5 = vadd.f32 %v8135_v60, %v792_v62  ;;  %v832_v6 = vadd.f32 %v8135_v60, %v793_v63  ;;  %v6953_v55 = vunpack.i.l.bf16 %v8161_v17  ;;  %v6292_v58 = vcombine.high %v1290_v36, %v1294_v37  ;;  %1661 = vmatprep.subr.bf16.mxu1 %v6290_v45 }
 0x10f   :  { %v790_v10 = vmul.f32 %v8129_v54, %v751_v1  ;;  %v791_v12 = vmul.f32 %v8129_v54, %v752_v2  ;;  %v6954_v59 = vunpack.i.h.bf16 %v8161_v17  ;;  %v725_v63 = vmul.f32 %v6982_v11, %v8117_v38 }
 0x110   :  { %v863_v28 = vmax.f32 %v831_v5, 0.0  ;;  %v864_v32 = vmax.f32 %v832_v6, 0.0  ;;  %1854 = vmatprep.subr.bf16.mxu0 %v6292_v58  ;;  %v6298_v2 = vcombine.high %v1297_v46, %v1301_v51  ;;  %v6300_v3 = vcombine.high %v1298_v52, %v1302_v53  ;;  %v1309_v5 = vld [vmem:[#allocation7 + $0x120] sm:$0xff] }
 0x111   :  { %v829_v24 = vadd.f32 %v8135_v60, %v790_v10  ;;  %v830_v25 = vadd.f32 %v8135_v60, %v791_v12  ;;  %1855 = vmatpush1.bf16.msra.mxu0 %v6291_v50  ;;  %v6299_v9 = vcombine.low %v1298_v52, %v1302_v53  ;;  %v1306_v10 = vld [vmem:[#allocation7 + $0x108] sm:$0xff]  ;;  %v363_v14 = vmul.f32 %v6953_v55, %v8101_v20 }
 0x112   :  { %v6958_v31 = vpop.permute.xlu1 %6957  ;;  %v892_v57 = vpack.c.bf16 %v864_v32, %v863_v28  ;;  %v1310_v12 = vld [vmem:[#allocation7 + $0x128] sm:$0xff]  ;;  %1662 = vmatpush1.bf16.msra.mxu1 %v6289_v26  ;;  %1856 = vmatprep.subr.bf16.mxu0 %v6300_v3  ;;  %v6297_v15 = vcombine.low %v1297_v46, %v1301_v51  ;;  %v364_v18 = vmul.f32 %v6954_v59, %v8101_v20 }
 0x113   :  { %v861_v40 = vmax.f32 %v829_v24, 0.0  ;;  %v862_v41 = vmax.f32 %v830_v25, 0.0  ;;  %v6959_v42 = vunpack.i.l.bf16 %v6958_v31  ;;  %v6960_v47 = vunpack.i.h.bf16 %v6958_v31  ;;  %1663 = vmatprep.subr.bf16.mxu1 %v6298_v2 }
 0x114   :  { %v6306_v25 = vcombine.high %v1305_v4, %v1309_v5  ;;  %v6308_v30 = vcombine.high %v1306_v10, %v1310_v12  ;;  %v6307_v34 = vcombine.low %v1306_v10, %v1310_v12  ;;  %v6305_v37 = vcombine.low %v1305_v4, %v1309_v5 }
 0x115   :  { %v891_v48 = vpack.c.bf16 %v862_v41, %v861_v40  ;;  %v527_v1 = vmul.f32 %v6959_v42, %v8104_v21  ;;  %v528_v6 = vmul.f32 %v6960_v47, %v8104_v21  ;;  %1857 = vmatpush1.bf16.msra.mxu0 %v6299_v9  ;;  %v6999_v41 = vpop.permute.xlu0 %6998 }
 0x116   :  { %v6969_v56 = vpop.permute.xlu1 %6968  ;;  %1664 = vmatpush1.bf16.msra.mxu1 %v6297_v15  ;;  %1858 = vmatprep.subr.bf16.mxu0 %v6308_v30  ;;  %v7001_v55 = vunpack.i.h.bf16 %v6999_v41 }
 0x117   :  { %v6971_v61 = vunpack.i.h.bf16 %v6969_v56  ;;  %v6970_v62 = vunpack.i.l.bf16 %v6969_v56  ;;  %6807 = vmatprep.mubr.msk.bf16.mxu0 %vm937_vm0, %v891_v48  ;;  %v559_v27 = vadd.f32 %v527_v1, %v363_v14  ;;  %v560_v31 = vadd.f32 %v528_v6, %v364_v18  ;;  %1665 = vmatprep.subr.bf16.mxu1 %v6306_v25 }
 0x118   :  { %6808 = vmatmul.mubr.msk.bf16.gmra.mrb[4].mxu0 %vm937_vm0, %v892_v57  ;;  %v7000_v56 = vunpack.i.l.bf16 %v6999_v41  ;;  %v370_v3 = vmul.f32 %v7001_v55, %v8101_v20 }
 0x119   :  { %v530_v17 = vmul.f32 %v6971_v61, %v8104_v21  ;;  %v529_v7 = vmul.f32 %v6970_v62, %v8104_v21  ;;  %1859 = vmatpush1.bf16.msra.mxu0 %v6307_v34  ;;  %v7016_v51 = vpop.permute.xlu0 %7015 }
 0x11a   :  { %1666 = vmatpush1.bf16.msra.mxu1 %v6305_v37  ;;  %v7018_v59 = vunpack.i.h.bf16 %v7016_v51  ;;  %v7017_v61 = vunpack.i.l.bf16 %v7016_v51  ;;  %v369_v4 = vmul.f32 %v7000_v56, %v8101_v20 }
 0x11b   :  { %v561_v19 = vadd.f32 %v529_v7, %v365_v43  ;;  %v562_v23 = vadd.f32 %v530_v17, %v366_v39  ;;  %v6975_v24 = vpop.permute.xlu1 %6974 }
 0x11c   :  { %v6977_v28 = vunpack.i.h.bf16 %v6975_v24  ;;  %v6976_v29 = vunpack.i.l.bf16 %v6975_v24  ;;  %v730_v12 = vmul.f32 %v7018_v59, %v8117_v38  ;;  %v729_v14 = vmul.f32 %v7017_v61, %v8117_v38 }
 0x11d   :  { %v757_v32 = vadd.f32 %v725_v63, %v561_v19  ;;  %v758_v33 = vadd.f32 %v726_v49, %v562_v23 }
 0x11e   :  { %v724_v35 = vmul.f32 %v6977_v28, %v8117_v38  ;;  %v723_v36 = vmul.f32 %v6976_v29, %v8117_v38 }
 0x11f   :  { %v796_v39 = vmul.f32 %v8129_v54, %v757_v32  ;;  %v797_v40 = vmul.f32 %v8129_v54, %v758_v33 }
 0x120   :  { %v755_v11 = vadd.f32 %v723_v36, %v559_v27  ;;  %v756_v42 = vadd.f32 %v724_v35, %v560_v31  ;;  %v6987_v43 = vpop.permute.xlu1 %6986 }
 0x121   :  { %v835_v44 = vadd.f32 %v8135_v60, %v796_v39  ;;  %v836_v45 = vadd.f32 %v8135_v60, %v797_v40  ;;  %v6989_v17 = vunpack.i.h.bf16 %v6987_v43  ;;  %v6988_v7 = vunpack.i.l.bf16 %v6987_v43  ;;  %v7034_v39 = vpop.permute.xlu0 %7033 }
 0x122   :  { %v794_v46 = vmul.f32 %v8129_v54, %v755_v11  ;;  %v795_v47 = vmul.f32 %v8129_v54, %v756_v42 }
 0x123   :  { %v867_v52 = vmax.f32 %v835_v44, 0.0  ;;  %v868_v53 = vmax.f32 %v836_v45, 0.0  ;;  %v368_v25 = vmul.f32 %v6989_v17, %v8101_v20  ;;  %v367_v27 = vmul.f32 %v6988_v7, %v8101_v20 }
 0x124   :  { %v833_v48 = vadd.f32 %v8135_v60, %v794_v46  ;;  %v834_v49 = vadd.f32 %v8135_v60, %v795_v47 }
 0x125   :  { %v6993_v50 = vpop.permute.xlu1 %6992  ;;  %v894_v2 = vpack.c.bf16 %v868_v53, %v867_v52  ;;  %v7036_v52 = vunpack.i.h.bf16 %v7034_v39  ;;  %v7035_v53 = vunpack.i.l.bf16 %v7034_v39 }
 0x126   :  { %v865_v57 = vmax.f32 %v833_v48, 0.0  ;;  %v866_v58 = vmax.f32 %v834_v49, 0.0  ;;  %v6995_v62 = vunpack.i.h.bf16 %v6993_v50  ;;  %v6994_v63 = vunpack.i.l.bf16 %v6993_v50  ;;  %v7051_v49 = vpop.permute.xlu0 %7050 }
 0x128   :  { %v893_v26 = vpack.c.bf16 %v866_v58, %v865_v57  ;;  %v532_v15 = vmul.f32 %v6995_v62, %v8104_v21  ;;  %v531_v18 = vmul.f32 %v6994_v63, %v8104_v21  ;;  %v7053_v58 = vunpack.i.h.bf16 %v7051_v49 }
 0x129   :  { %v7004_v1 = vpop.permute.xlu1 %7003 }
 0x12a   :  { %v7006_v5 = vunpack.i.h.bf16 %v7004_v1  ;;  %v7005_v6 = vunpack.i.l.bf16 %v7004_v1  ;;  %6811 = vmatprep.mubr.msk.bf16.mxu0 %vm937_vm0, %v893_v26  ;;  %v563_v32 = vadd.f32 %v531_v18, %v367_v27  ;;  %v564_v33 = vadd.f32 %v532_v15, %v368_v25 }
 0x12b   :  { %6812 = vmatmul.mubr.msk.bf16.gmra.mrb[8].mxu0 %vm937_vm0, %v894_v2  ;;  %v7052_v26 = vunpack.i.l.bf16 %v7051_v49  ;;  %v374_v1 = vmul.f32 %v7036_v52, %v8101_v20  ;;  %v373_v2 = vmul.f32 %v7035_v53, %v8101_v20 }
 0x12c   :  { %v534_v9 = vmul.f32 %v7006_v5, %v8104_v21  ;;  %v533_v10 = vmul.f32 %v7005_v6, %v8104_v21 }
 0x12e   :  { %v565_v19 = vadd.f32 %v533_v10, %v369_v4  ;;  %v566_v23 = vadd.f32 %v534_v9, %v370_v3  ;;  %v7010_v24 = vpop.permute.xlu1 %7009  ;;  %v734_v9 = vmul.f32 %v7053_v58, %v8117_v38  ;;  %v733_v10 = vmul.f32 %v7052_v26, %v8117_v38 }
 0x12f   :  { %v7012_v28 = vunpack.i.h.bf16 %v7010_v24  ;;  %v7011_v29 = vunpack.i.l.bf16 %v7010_v24 }
 0x130   :  { %v761_v30 = vadd.f32 %v729_v14, %v565_v19  ;;  %v762_v31 = vadd.f32 %v730_v12, %v566_v23 }
 0x131   :  { %v728_v34 = vmul.f32 %v7012_v28, %v8117_v38  ;;  %v727_v35 = vmul.f32 %v7011_v29, %v8117_v38 }
 0x132   :  { %v800_v36 = vmul.f32 %v8129_v54, %v761_v30  ;;  %v801_v37 = vmul.f32 %v8129_v54, %v762_v31 }
 0x133   :  { %v759_v40 = vadd.f32 %v727_v35, %v563_v32  ;;  %v760_v41 = vadd.f32 %v728_v34, %v564_v33  ;;  %v7022_v11 = vpop.permute.xlu1 %7021  ;;  %v7069_v34 = vpop.permute.xlu0 %7068 }
 0x134   :  { %v839_v42 = vadd.f32 %v8135_v60, %v800_v36  ;;  %v840_v43 = vadd.f32 %v8135_v60, %v801_v37  ;;  %v7024_v5 = vunpack.i.h.bf16 %v7022_v11  ;;  %v7023_v6 = vunpack.i.l.bf16 %v7022_v11 }
 0x135   :  { %v798_v44 = vmul.f32 %v8129_v54, %v759_v40  ;;  %v799_v45 = vmul.f32 %v8129_v54, %v760_v41 }
 0x136   :  { %v871_v50 = vmax.f32 %v839_v42, 0.0  ;;  %v872_v51 = vmax.f32 %v840_v43, 0.0  ;;  %v372_v23 = vmul.f32 %v7024_v5, %v8101_v20  ;;  %v371_v24 = vmul.f32 %v7023_v6, %v8101_v20 }
 0x137   :  { %v837_v46 = vadd.f32 %v8135_v60, %v798_v44  ;;  %v838_v47 = vadd.f32 %v8135_v60, %v799_v45 }
 0x138   :  { %v7028_v48 = vpop.permute.xlu1 %7027  ;;  %v896_v63 = vpack.c.bf16 %v872_v51, %v871_v50  ;;  %v7070_v51 = vunpack.i.l.bf16 %v7069_v34 }
 0x139   :  { %v869_v55 = vmax.f32 %v837_v46, 0.0  ;;  %v870_v56 = vmax.f32 %v838_v47, 0.0  ;;  %v7030_v59 = vunpack.i.h.bf16 %v7028_v48  ;;  %v7029_v61 = vunpack.i.l.bf16 %v7028_v48  ;;  %v7086_v46 = vpop.permute.xlu0 %7085 }
 0x13a   :  { %v7071_v48 = vunpack.i.h.bf16 %v7069_v34  ;;  %v7087_v58 = vunpack.i.l.bf16 %v7086_v46 }
 0x13b   :  { %v895_v57 = vpack.c.bf16 %v870_v56, %v869_v55  ;;  %v536_v12 = vmul.f32 %v7030_v59, %v8104_v21  ;;  %v535_v14 = vmul.f32 %v7029_v61, %v8104_v21  ;;  %v7088_v55 = vunpack.i.h.bf16 %v7086_v46 }
 0x13c   :  { %v7039_v62 = vpop.permute.xlu1 %7038  ;;  %v378_v59 = vmul.f32 %v7071_v48, %v8101_v20  ;;  %v1321_v48 = vld [vmem:[#allocation7 + $0x180] sm:$0xff] }
 0x13d   :  { %v7041_v3 = vunpack.i.h.bf16 %v7039_v62  ;;  %v7040_v4 = vunpack.i.l.bf16 %v7039_v62  ;;  %6815 = vmatprep.mubr.msk.bf16.mxu0 %vm937_vm0, %v895_v57  ;;  %v567_v30 = vadd.f32 %v535_v14, %v371_v24  ;;  %v568_v31 = vadd.f32 %v536_v12, %v372_v23 }
 0x13e   :  { %6816 = vmatmul.mubr.msk.bf16.gmra.mrb[12].mxu0 %vm937_vm0, %v896_v63  ;;  %v738_v5 = vmul.f32 %v7088_v55, %v8117_v38  ;;  %v1326_v55 = vld [vmem:[#allocation7 + $0x1a8] sm:$0xff] }
 0x13f   :  { %v538_v17 = vmul.f32 %v7041_v3, %v8104_v21  ;;  %v537_v7 = vmul.f32 %v7040_v4, %v8104_v21 }
 0x141   :  { %v569_v15 = vadd.f32 %v537_v7, %v373_v2  ;;  %v570_v18 = vadd.f32 %v538_v17, %v374_v1  ;;  %v7045_v19 = vpop.permute.xlu1 %7044  ;;  %v377_v1 = vmul.f32 %v7070_v51, %v8101_v20 }
 0x142   :  { %v7047_v25 = vunpack.i.h.bf16 %v7045_v19  ;;  %v7046_v27 = vunpack.i.l.bf16 %v7045_v19 }
 0x143   :  { %v765_v28 = vadd.f32 %v733_v10, %v569_v15  ;;  %v766_v29 = vadd.f32 %v734_v9, %v570_v18  ;;  %v737_v9 = vmul.f32 %v7087_v58, %v8117_v38 }
 0x144   :  { %v732_v32 = vmul.f32 %v7047_v25, %v8117_v38  ;;  %v731_v33 = vmul.f32 %v7046_v27, %v8117_v38 }
 0x145   :  { %v804_v35 = vmul.f32 %v8129_v54, %v765_v28  ;;  %v805_v36 = vmul.f32 %v8129_v54, %v766_v29  ;;  %v1313_v29 = vld [vmem:[#allocation7 + $0x140] sm:$0xff] }
 0x146   :  { %v763_v37 = vadd.f32 %v731_v33, %v567_v30  ;;  %v764_v39 = vadd.f32 %v732_v32, %v568_v31  ;;  %v7057_v40 = vpop.permute.xlu1 %7056  ;;  %v1317_v30 = vld [vmem:[#allocation7 + $0x160] sm:$0xff]  ;;  %v1314_v31 = vld [vmem:[#allocation7 + $0x148] sm:$0xff] }
 0x147   :  { %v843_v41 = vadd.f32 %v8135_v60, %v804_v35  ;;  %v844_v11 = vadd.f32 %v8135_v60, %v805_v36  ;;  %v7058_v63 = vunpack.i.l.bf16 %v7057_v40  ;;  %v7059_v4 = vunpack.i.h.bf16 %v7057_v40  ;;  %v7104_v35 = vpop.permute.xlu0 %7103 }
 0x148   :  { %v802_v42 = vmul.f32 %v8129_v54, %v763_v37  ;;  %v803_v43 = vmul.f32 %v8129_v54, %v764_v39  ;;  %v6314_v36 = vcombine.high %v1313_v29, %v1317_v30  ;;  %v1318_v37 = vld [vmem:[#allocation7 + $0x168] sm:$0xff] }
 0x149   :  { %v875_v49 = vmax.f32 %v843_v41, 0.0  ;;  %v876_v50 = vmax.f32 %v844_v11, 0.0  ;;  %v375_v12 = vmul.f32 %v7058_v63, %v8101_v20  ;;  %v376_v19 = vmul.f32 %v7059_v4, %v8101_v20  ;;  %v1330_v4 = vld [vmem:[#allocation7 + $0x1c8] sm:$0xff] }
 0x14a   :  { %v841_v44 = vadd.f32 %v8135_v60, %v802_v42  ;;  %v842_v45 = vadd.f32 %v8135_v60, %v803_v43  ;;  %v6315_v41 = vcombine.low %v1314_v31, %v1318_v37  ;;  %v6316_v11 = vcombine.high %v1314_v31, %v1318_v37  ;;  %1667 = vmatprep.subr.bf16.mxu1 %v6314_v36 }
 0x14b   :  { %v7063_v47 = vpop.permute.xlu1 %7062  ;;  %v898_v62 = vpack.c.bf16 %v876_v50, %v875_v49  ;;  %v1325_v49 = vld [vmem:[#allocation7 + $0x1a0] sm:$0xff]  ;;  %v1322_v50 = vld [vmem:[#allocation7 + $0x188] sm:$0xff]  ;;  %v7121_v58 = vpop.permute.xlu0 %7120 }
 0x14c   :  { %v873_v52 = vmax.f32 %v841_v44, 0.0  ;;  %v874_v53 = vmax.f32 %v842_v45, 0.0  ;;  %v7064_v56 = vunpack.i.l.bf16 %v7063_v47  ;;  %v7065_v26 = vunpack.i.h.bf16 %v7063_v47  ;;  %1860 = vmatprep.subr.bf16.mxu0 %v6316_v11 }
 0x14d   :  { %v6313_v45 = vcombine.low %v1313_v29, %v1317_v30  ;;  %1861 = vmatpush1.bf16.msra.mxu0 %v6315_v41 }
 0x14e   :  { %v897_v57 = vpack.c.bf16 %v874_v53, %v873_v52  ;;  %v539_v6 = vmul.f32 %v7064_v56, %v8104_v21  ;;  %v540_v10 = vmul.f32 %v7065_v26, %v8104_v21  ;;  %v6322_v53 = vcombine.high %v1321_v48, %v1325_v49 }
 0x14f   :  { %v7074_v61 = vpop.permute.xlu1 %7073  ;;  %1668 = vmatpush1.bf16.msra.mxu1 %v6313_v45  ;;  %v6323_v26 = vcombine.low %v1322_v50, %v1326_v55 }
 0x150   :  { %v7076_v2 = vunpack.i.h.bf16 %v7074_v61  ;;  %v7075_v3 = vunpack.i.l.bf16 %v7074_v61  ;;  %6819 = vmatprep.mubr.msk.bf16.mxu0 %vm937_vm0, %v897_v57  ;;  %v571_v25 = vadd.f32 %v539_v6, %v375_v12  ;;  %v572_v32 = vadd.f32 %v540_v10, %v376_v19  ;;  %1669 = vmatprep.subr.bf16.mxu1 %v6322_v53 }
 0x151   :  { %6820 = vmatmul.mubr.msk.bf16.gmra.mrb[16].mxu0 %vm937_vm0, %v898_v62  ;;  %v7105_v6 = vunpack.i.l.bf16 %v7104_v35  ;;  %v7123_v10 = vunpack.i.h.bf16 %v7121_v58 }
 0x152   :  { %v542_v17 = vmul.f32 %v7076_v2, %v8104_v21  ;;  %v541_v7 = vmul.f32 %v7075_v3, %v8104_v21  ;;  %v1329_v2 = vld [vmem:[#allocation7 + $0x1c0] sm:$0xff] }
 0x153   :  { %v1333_v3 = vld [vmem:[#allocation7 + $0x1e0] sm:$0xff]  ;;  %v381_v30 = vmul.f32 %v7105_v6, %v8101_v20  ;;  %v742_v37 = vmul.f32 %v7123_v10, %v8117_v38 }
 0x154   :  { %v573_v14 = vadd.f32 %v541_v7, %v377_v1  ;;  %v574_v15 = vadd.f32 %v542_v17, %v378_v59  ;;  %v7080_v18 = vpop.permute.xlu1 %7079  ;;  %v6324_v59 = vcombine.high %v1322_v50, %v1326_v55  ;;  %v6321_v1 = vcombine.low %v1321_v48, %v1325_v49  ;;  %v7139_v55 = vpop.permute.xlu0 %7138 }
 0x155   :  { %v7082_v23 = vunpack.i.h.bf16 %v7080_v18  ;;  %v7081_v24 = vunpack.i.l.bf16 %v7080_v18  ;;  %v6330_v12 = vcombine.high %v1329_v2, %v1333_v3  ;;  %v7122_v18 = vunpack.i.l.bf16 %v7121_v58 }
 0x156   :  { %v769_v27 = vadd.f32 %v737_v9, %v573_v14  ;;  %v770_v28 = vadd.f32 %v738_v5, %v574_v15  ;;  %v7106_v5 = vunpack.i.h.bf16 %v7104_v35  ;;  %1862 = vmatprep.subr.bf16.mxu0 %v6324_v59  ;;  %v1334_v9 = vld [vmem:[#allocation7 + $0x1e8] sm:$0xff]  ;;  %1670 = vmatpush1.bf16.msra.mxu1 %v6321_v1 }
 0x157   :  { %v736_v33 = vmul.f32 %v7082_v23, %v8117_v38  ;;  %v735_v34 = vmul.f32 %v7081_v24, %v8117_v38  ;;  %1863 = vmatpush1.bf16.msra.mxu0 %v6323_v26  ;;  %v6332_v14 = vcombine.high %v1330_v4, %v1334_v9  ;;  %v6331_v19 = vcombine.low %v1330_v4, %v1334_v9 }
 0x158   :  { %v808_v39 = vmul.f32 %v8129_v54, %v769_v27  ;;  %v809_v40 = vmul.f32 %v8129_v54, %v770_v28  ;;  %v6329_v23 = vcombine.low %v1329_v2, %v1333_v3  ;;  %1671 = vmatprep.subr.bf16.mxu1 %v6330_v12  ;;  %v382_v29 = vmul.f32 %v7106_v5, %v8101_v20  ;;  %v7156_v4 = vpop.permute.xlu0 %7155 }
 0x159   :  { %v767_v42 = vadd.f32 %v735_v34, %v571_v25  ;;  %v768_v43 = vadd.f32 %v736_v33, %v572_v32  ;;  %v8253_v44 = vpop.permute.xlu1 %7091  ;;  %1864 = vmatprep.subr.bf16.mxu0 %v6332_v14  ;;  %v7140_v9 = vunpack.i.l.bf16 %v7139_v55  ;;  %v7158_v14 = vunpack.i.h.bf16 %v7156_v4 }
 0x15a   :  { %v847_v46 = vadd.f32 %v8135_v60, %v808_v39  ;;  %v848_v47 = vadd.f32 %v8135_v60, %v809_v40  ;;  %v7094_v33 = vunpack.i.h.bf16 %v8253_v44  ;;  %v7093_v34 = vunpack.i.l.bf16 %v8253_v44  ;;  %1672 = vmatpush1.bf16.msra.mxu1 %v6329_v23 }
 0x15b   :  { %v806_v51 = vmul.f32 %v8129_v54, %v767_v42  ;;  %v807_v52 = vmul.f32 %v8129_v54, %v768_v43  ;;  %v741_v39 = vmul.f32 %v7122_v18, %v8117_v38  ;;  %1865 = vmatpush1.bf16.msra.mxu0 %v6331_v19 }
 0x15c   :  { %v879_v62 = vmax.f32 %v847_v46, 0.0  ;;  %v880_v63 = vmax.f32 %v848_v47, 0.0  ;;  %v380_v44 = vmul.f32 %v7094_v33, %v8101_v20  ;;  %v379_v45 = vmul.f32 %v7093_v34, %v8101_v20 }
 0x15d   :  { %v845_v56 = vadd.f32 %v8135_v60, %v806_v51  ;;  %v846_v57 = vadd.f32 %v8135_v60, %v807_v52  ;;  %v746_v33 = vmul.f32 %v7158_v14, %v8117_v38 }
 0x15e   :  { %v7098_v61 = vpop.permute.xlu1 %7097  ;;  %v900_v28 = vpack.c.bf16 %v880_v63, %v879_v62 }
 0x15f   :  { %v877_v17 = vmax.f32 %v845_v56, 0.0  ;;  %v878_v7 = vmax.f32 %v846_v57, 0.0  ;;  %v7100_v24 = vunpack.i.h.bf16 %v7098_v61  ;;  %v7099_v25 = vunpack.i.l.bf16 %v7098_v61 }
 0x161   :  { %v899_v15 = vpack.c.bf16 %v878_v7, %v877_v17  ;;  %v544_v40 = vmul.f32 %v7100_v24, %v8104_v21  ;;  %v543_v41 = vmul.f32 %v7099_v25, %v8104_v21  ;;  %v7141_v7 = vunpack.i.h.bf16 %v7139_v55 }
 0x162   :  { %v7109_v27 = vpop.permute.xlu1 %7108 }
 0x163   :  { %v7111_v31 = vunpack.i.h.bf16 %v7109_v27  ;;  %v7110_v32 = vunpack.i.l.bf16 %v7109_v27  ;;  %6823 = vmatprep.mubr.msk.bf16.mxu0 %vm937_vm0, %v899_v15  ;;  %v575_v50 = vadd.f32 %v543_v41, %v379_v45  ;;  %v576_v51 = vadd.f32 %v544_v40, %v380_v44 }
 0x164   :  { %6824 = vmatmul.mubr.msk.bf16.gmra.mrb[20].mxu0 %vm937_vm0, %v900_v28  ;;  %v7157_v15 = vunpack.i.l.bf16 %v7156_v4  ;;  %v386_v27 = vmul.f32 %v7141_v7, %v8101_v20  ;;  %v385_v28 = vmul.f32 %v7140_v9, %v8101_v20  ;;  %v1280_v7 = vld [vmem:[#allocation7 + $0x38] sm:$0xff] }
 0x165   :  { %v546_v35 = vmul.f32 %v7111_v31, %v8104_v21  ;;  %v545_v36 = vmul.f32 %v7110_v32, %v8104_v21 }
 0x166   :  { %v745_v34 = vmul.f32 %v7157_v15, %v8117_v38 }
 0x167   :  { %v577_v11 = vadd.f32 %v545_v36, %v381_v30  ;;  %v578_v42 = vadd.f32 %v546_v35, %v382_v29  ;;  %v7115_v43 = vpop.permute.xlu1 %7114  ;;  %v8291_v35 = vld [vmem:[#allocation7 + $0x10] sm:$0xff] }
 0x168   :  { %v7117_v46 = vunpack.i.h.bf16 %v7115_v43  ;;  %v7116_v47 = vunpack.i.l.bf16 %v7115_v43  ;;  %v8293_v36 = vld [vmem:[#allocation7 + $0x30] sm:$0xff] }
 0x169   :  { %v773_v48 = vadd.f32 %v741_v39, %v577_v11  ;;  %v774_v49 = vadd.f32 %v742_v37, %v578_v42  ;;  %v6277_v40 = vcombine.low %v8291_v35, %v8293_v36  ;;  %v6278_v41 = vcombine.high %v8291_v35, %v8293_v36 }
 0x16a   :  { %v740_v52 = vmul.f32 %v7117_v46, %v8117_v38  ;;  %v739_v53 = vmul.f32 %v7116_v47, %v8117_v38 }
 0x16b   :  { %v812_v56 = vmul.f32 %v8129_v54, %v773_v48  ;;  %v813_v57 = vmul.f32 %v8129_v54, %v774_v49  ;;  %2043 = vmatprep.subr.bf16.mxu1 %v6278_v41  ;;  %v1288_v41 = vld [vmem:[#allocation7 + $0x78] sm:$0xff] }
 0x16c   :  { %v771_v58 = vadd.f32 %v739_v53, %v575_v50  ;;  %v772_v26 = vadd.f32 %v740_v52, %v576_v51  ;;  %v7127_v59 = vpop.permute.xlu1 %7126 }
 0x16d   :  { %v851_v61 = vadd.f32 %v8135_v60, %v812_v56  ;;  %v852_v62 = vadd.f32 %v8135_v60, %v813_v57  ;;  %v7129_v31 = vunpack.i.h.bf16 %v7127_v59  ;;  %v7128_v32 = vunpack.i.l.bf16 %v7127_v59 }
 0x16e   :  { %v810_v63 = vmul.f32 %v8129_v54, %v771_v58  ;;  %v811_v1 = vmul.f32 %v8129_v54, %v772_v26 }
 0x16f   :  { %v883_v6 = vmax.f32 %v851_v61, 0.0  ;;  %v884_v17 = vmax.f32 %v852_v62, 0.0  ;;  %v384_v46 = vmul.f32 %v7129_v31, %v8101_v20  ;;  %v383_v47 = vmul.f32 %v7128_v32, %v8101_v20  ;;  %v1283_v32 = vld [vmem:[#allocation7 + $0x50] sm:$0xff] }
 0x170   :  { %v849_v2 = vadd.f32 %v8135_v60, %v810_v63  ;;  %v850_v3 = vadd.f32 %v8135_v60, %v811_v1 }
 0x171   :  { %v7133_v5 = vpop.permute.xlu1 %7132  ;;  %v902_v25 = vpack.c.bf16 %v884_v17, %v883_v6  ;;  %v1276_v17 = vld [vmem:[#allocation7 + $0x18] sm:$0xff] }
 0x172   :  { %v881_v10 = vmax.f32 %v849_v2, 0.0  ;;  %v882_v12 = vmax.f32 %v850_v3, 0.0  ;;  %v7135_v19 = vunpack.i.h.bf16 %v7133_v5  ;;  %v7134_v23 = vunpack.i.l.bf16 %v7133_v5 }
 0x173   :  { %v6280_v9 = vcombine.high %v1276_v17, %v1280_v7 }
 0x174   :  { %v901_v18 = vpack.c.bf16 %v882_v12, %v881_v10  ;;  %v548_v11 = vmul.f32 %v7135_v19, %v8104_v21  ;;  %v547_v42 = vmul.f32 %v7134_v23, %v8104_v21 }
 0x175   :  { %v7144_v24 = vpop.permute.xlu1 %7143  ;;  %2236 = vmatprep.subr.bf16.mxu0 %v6280_v9 }
 0x176   :  { %v7146_v29 = vunpack.i.h.bf16 %v7144_v24  ;;  %v7145_v30 = vunpack.i.l.bf16 %v7144_v24  ;;  %6827 = vmatprep.mubr.msk.bf16.mxu0 %vm937_vm0, %v901_v18  ;;  %v579_v52 = vadd.f32 %v547_v42, %v383_v47  ;;  %v580_v53 = vadd.f32 %v548_v11, %v384_v46  ;;  %v1295_v47 = vld [vmem:[#allocation7 + $0xb0] sm:$0xff] }
 0x177   :  { %6828 = vmatmul.mubr.msk.bf16.gmra.mrb[24].mxu0 %vm937_vm0, %v902_v25 }
 0x178   :  { %v550_v37 = vmul.f32 %v7146_v29, %v8104_v21  ;;  %v549_v39 = vmul.f32 %v7145_v30, %v8104_v21 }
 0x17a   :  { %v581_v43 = vadd.f32 %v549_v39, %v385_v28  ;;  %v582_v44 = vadd.f32 %v550_v37, %v386_v27  ;;  %v7150_v45 = vpop.permute.xlu1 %7149  ;;  %v1287_v37 = vld [vmem:[#allocation7 + $0x70] sm:$0xff]  ;;  %v1284_v39 = vld [vmem:[#allocation7 + $0x58] sm:$0xff] }
 0x17b   :  { %v7152_v48 = vunpack.i.h.bf16 %v7150_v45  ;;  %v7151_v49 = vunpack.i.l.bf16 %v7150_v45  ;;  %v1291_v45 = vld [vmem:[#allocation7 + $0x90] sm:$0xff]  ;;  %v6288_v46 = vcombine.high %v1284_v39, %v1288_v41 }
 0x17c   :  { %v777_v50 = vadd.f32 %v745_v34, %v581_v43  ;;  %v778_v51 = vadd.f32 %v746_v33, %v582_v44  ;;  %v6279_v43 = vcombine.low %v1276_v17, %v1280_v7  ;;  %v6286_v44 = vcombine.high %v1283_v32, %v1287_v37 }
 0x17d   :  { %v744_v55 = vmul.f32 %v7152_v48, %v8117_v38  ;;  %v743_v56 = vmul.f32 %v7151_v49, %v8117_v38  ;;  %v1292_v48 = vld [vmem:[#allocation7 + $0x98] sm:$0xff] }
 0x17e   :  { %v816_v21 = vmul.f32 %v8129_v54, %v777_v50  ;;  %v817_v57 = vmul.f32 %v8129_v54, %v778_v51  ;;  %v1296_v49 = vld [vmem:[#allocation7 + $0xb8] sm:$0xff]  ;;  %v6285_v50 = vcombine.low %v1283_v32, %v1287_v37  ;;  %v6287_v51 = vcombine.low %v1284_v39, %v1288_v41  ;;  %v1323_v32 = vld [vmem:[#allocation7 + $0x190] sm:$0xff] }
 0x17f   :  { %v775_v58 = vadd.f32 %v743_v56, %v579_v52  ;;  %v776_v26 = vadd.f32 %v744_v55, %v580_v53  ;;  %v6294_v52 = vcombine.high %v1291_v45, %v1295_v47  ;;  %v1299_v53 = vld [vmem:[#allocation7 + $0xd0] sm:$0xff]  ;;  %v6296_v55 = vcombine.high %v1292_v48, %v1296_v49  ;;  %v1324_v37 = vld [vmem:[#allocation7 + $0x198] sm:$0xff] }
 0x180   :  { %v855_v59 = vadd.f32 %v8135_v60, %v816_v21  ;;  %v856_v20 = vadd.f32 %v8135_v60, %v817_v57  ;;  %v1303_v56 = vld [vmem:[#allocation7 + $0xf0] sm:$0xff]  ;;  %v1300_v21 = vld [vmem:[#allocation7 + $0xd8] sm:$0xff] }
 0x181   :  { %v814_v61 = vmul.f32 %v8129_v54, %v775_v58  ;;  %v815_v62 = vmul.f32 %v8129_v54, %v776_v26  ;;  %v8318_v54 = vld [vmem:[#allocation2] ss:$0 sm:$0xff]  ;;  %v6293_v58 = vcombine.low %v1291_v45, %v1295_v47  ;;  %v1307_v26 = vld [vmem:[#allocation7 + $0x110] sm:$0xff]  ;;  %v6302_v35 = vcombine.high %v1299_v53, %v1303_v56 }
 0x182   :  { %v887_v2 = vmax.f32 %v855_v59, 0.0  ;;  %v888_v38 = vmax.f32 %v856_v20, 0.0  ;;  %v1304_v57 = vld [vmem:[#allocation7 + $0xf8] sm:$0xff]  ;;  %v1311_v59 = vld [vmem:[#allocation7 + $0x130] sm:$0xff]  ;;  %v6295_v20 = vcombine.low %v1292_v48, %v1296_v49 }
 0x183   :  { %v853_v63 = vadd.f32 %v8135_v60, %v814_v61  ;;  %v854_v1 = vadd.f32 %v8135_v60, %v815_v62  ;;  %v8320_v60 = vld [vmem:[#allocation5] ss:$0 sm:$0xff]  ;;  %v6304_v36 = vcombine.high %v1300_v21, %v1304_v57  ;;  %v6303_v7 = vcombine.low %v1300_v21, %v1304_v57  ;;  %v1331_v49 = vld [vmem:[#allocation7 + $0x1d0] sm:$0xff] }
 0x184   :  { %v904_v6 = vpack.c.bf16 %v888_v38, %v887_v2  ;;  %v1328_v39 = vld [vmem:[#allocation7 + $0x1b8] sm:$0xff] }
 0x185   :  { %v885_v3 = vmax.f32 %v853_v63, 0.0  ;;  %v886_v4 = vmax.f32 %v854_v1, 0.0  ;;  %v1308_v63 = vld [vmem:[#allocation7 + $0x118] sm:$0xff]  ;;  %v6328_v48 = vcombine.high %v1324_v37, %v1328_v39 }
 0x186   :  { %v1312_v1 = vld [vmem:[#allocation7 + $0x138] sm:$0xff] }
 0x187   :  { %v903_v5 = vpack.c.bf16 %v886_v4, %v885_v3  ;;  %v6301_v3 = vcombine.low %v1299_v53, %v1303_v56  ;;  %v6310_v4 = vcombine.high %v1307_v26, %v1311_v59  ;;  %v1332_v53 = vld [vmem:[#allocation7 + $0x1d8] sm:$0xff] }
 0x189   :  { %6831 = vmatprep.mubr.msk.bf16.mxu0 %vm937_vm0, %v903_v5 }
 0x18a   :  { %6832 = vmatmul.mubr.msk.bf16.gmra.mrb[28].mxu0 %vm937_vm0, %v904_v6 }
 0x18b   :  { %1882 = vmatprep.mubr.bf16.mxu0 %v7812_v0 }
 0x1d8   :  { %v6805_v10 = vpop.f32.mrb[0].mxu0 }
 0x1d9   :  { %v1156_v12 = vmul.f32 %v6805_v10, %v8318_v54  ;;  %v1020_v14 = vpop.f32.mrb[1].mxu0 }
 0x1da   :  { %v1154_v15 = vmul.f32 %v8318_v54, %v1020_v14  ;;  %v6806_v18 = vpop.f32.mrb[2].mxu0 }
 0x1db   :  { %v1195_v19 = vadd.f32 %v8320_v60, %v1156_v12  ;;  %v1157_v23 = vmul.f32 %v6806_v18, %v8318_v54  ;;  %v1023_v24 = vpop.f32.mrb[3].mxu0  ;;  %v6312_v12 = vcombine.high %v1308_v63, %v1312_v1  ;;  %v1315_v18 = vld [vmem:[#allocation7 + $0x150] sm:$0xff] }
 0x1dc   :  { %v1193_v25 = vadd.f32 %v8320_v60, %v1154_v15  ;;  %v1155_v27 = vmul.f32 %v8318_v54, %v1023_v24  ;;  %v6309_v24 = vcombine.low %v1307_v26, %v1311_v59 }
 0x1dd   :  { %v1196_v28 = vadd.f32 %v8320_v60, %v1157_v23  ;;  %v1227_v30 = vmax.f32 %v1195_v19, 0.0 }
 0x1de   :  { %v1194_v29 = vadd.f32 %v8320_v60, %v1155_v27  ;;  %v1225_v33 = vmax.f32 %v1193_v25, 0.0  ;;  %v1319_v25 = vld [vmem:[#allocation7 + $0x170] sm:$0xff]  ;;  %v6311_v27 = vcombine.low %v1308_v63, %v1312_v1 }
 0x1df   :  { %v1228_v31 = vmax.f32 %v1196_v28, 0.0  ;;  %v1316_v28 = vld [vmem:[#allocation7 + $0x158] sm:$0xff]  ;;  %v6317_v45 = vcombine.low %v1315_v18, %v1319_v25 }
 0x1e0   :  { %v1226_v34 = vmax.f32 %v1194_v29, 0.0  ;;  %v1320_v29 = vld [vmem:[#allocation7 + $0x178] sm:$0xff] }
 0x1e1   :  { %v8330_v11 = vpack.c.bf16 %v1228_v31, %v1227_v30 }
 0x1e2   :  { %v8332_v42 = vpack.c.bf16 %v1226_v34, %v1225_v33  ;;  %v1327_v34 = vld [vmem:[#allocation7 + $0x1b0] sm:$0xff] }
 0x1e3   :  { %v6326_v47 = vcombine.high %v1323_v32, %v1327_v34 }
 0x1e4   :  { %1690 = vmatmul.mubr.bf16.vlgmr.msra.gmra.mrb[0].mxu1 %v8332_v42  ;;  %1883 = vmatmul.mubr.bf16.vlgmr.msra.gmra.mrb[32].mxu0 %v8332_v42 }
 0x1e5   :  { %1699 = vmatprep.mubr.bf16.mxu1 %v7812_v0  ;;  %1892 = vmatprep.mubr.bf16.mxu0 %v7812_v0 }
 0x1e6   :  { %2044 = vmatpush1.bf16.msra.mxu1 %v6277_v40  ;;  %2237 = vmatpush1.bf16.msra.mxu0 %v6279_v43  ;;  %v6318_v43 = vcombine.high %v1315_v18, %v1319_v25 }
 0x1e7   :  { %2045 = vmatprep.subr.bf16.mxu1 %v6286_v44  ;;  %2238 = vmatprep.subr.bf16.mxu0 %v6288_v46  ;;  %v6320_v44 = vcombine.high %v1316_v28, %v1320_v29  ;;  %v6319_v46 = vcombine.low %v1316_v28, %v1320_v29 }
 0x1ea   :  { %2046 = vmatpush1.bf16.msra.mxu1 %v6285_v50  ;;  %2239 = vmatpush1.bf16.msra.mxu0 %v6287_v51  ;;  %v6325_v50 = vcombine.low %v1323_v32, %v1327_v34  ;;  %v1335_v51 = vld [vmem:[#allocation7 + $0x1f0] sm:$0xff] }
 0x1eb   :  { %v6809_v61 = vpop.f32.mrb[4].mxu0  ;;  %2047 = vmatprep.subr.bf16.mxu1 %v6294_v52  ;;  %2240 = vmatprep.subr.bf16.mxu0 %v6296_v55  ;;  %v6327_v52 = vcombine.low %v1324_v37, %v1328_v39  ;;  %v1336_v55 = vld [vmem:[#allocation7 + $0x1f8] sm:$0xff]  ;;  %v6334_v56 = vcombine.high %v1331_v49, %v1335_v51 }
 0x1ec   :  { %v1160_v40 = vmul.f32 %v6809_v61, %v8318_v54  ;;  %v1036_v62 = vpop.f32.mrb[5].mxu0  ;;  %1700 = vmatmul.mubr.bf16.gmra.mrb[4].mxu1 %v8330_v11  ;;  %1893 = vmatmul.mubr.bf16.gmra.mrb[36].mxu0 %v8330_v11  ;;  %v6336_v21 = vcombine.high %v1332_v53, %v1336_v55  ;;  %v6335_v26 = vcombine.low %v1332_v53, %v1336_v55 }
 0x1ed   :  { %v1158_v2 = vmul.f32 %v8318_v54, %v1036_v62  ;;  %v6810_v38 = vpop.f32.mrb[6].mxu0  ;;  %1709 = vmatprep.mubr.bf16.mxu1 %v7812_v0  ;;  %1902 = vmatprep.mubr.bf16.mxu0 %v7812_v0 }
 0x1ee   :  { %v1199_v5 = vadd.f32 %v8320_v60, %v1160_v40  ;;  %v1161_v6 = vmul.f32 %v6810_v38, %v8318_v54  ;;  %v1039_v17 = vpop.f32.mrb[7].mxu0  ;;  %2048 = vmatpush1.bf16.msra.mxu1 %v6293_v58  ;;  %2241 = vmatpush1.bf16.msra.mxu0 %v6295_v20  ;;  %v6333_v58 = vcombine.low %v1331_v49, %v1335_v51 }
 0x1ef   :  { %v1197_v9 = vadd.f32 %v8320_v60, %v1158_v2  ;;  %v1159_v10 = vmul.f32 %v8318_v54, %v1039_v17  ;;  %2049 = vmatprep.subr.bf16.mxu1 %v6302_v35  ;;  %2242 = vmatprep.subr.bf16.mxu0 %v6304_v36 }
 0x1f0   :  { %v1200_v14 = vadd.f32 %v8320_v60, %v1161_v6  ;;  %v1231_v19 = vmax.f32 %v1199_v5, 0.0 }
 0x1f1   :  { %v1198_v15 = vadd.f32 %v8320_v60, %v1159_v10  ;;  %v1229_v30 = vmax.f32 %v1197_v9, 0.0 }
 0x1f2   :  { %v1232_v23 = vmax.f32 %v1200_v14, 0.0  ;;  %2050 = vmatpush1.bf16.msra.mxu1 %v6301_v3  ;;  %2243 = vmatpush1.bf16.msra.mxu0 %v6303_v7 }
 0x1f3   :  { %v1230_v31 = vmax.f32 %v1198_v15, 0.0  ;;  %2051 = vmatprep.subr.bf16.mxu1 %v6310_v4  ;;  %2244 = vmatprep.subr.bf16.mxu0 %v6312_v12 }
 0x1f4   :  { %v8353_v33 = vpack.c.bf16 %v1232_v23, %v1231_v19 }
 0x1f5   :  { %v8355_v41 = vpack.c.bf16 %v1230_v31, %v1229_v30 }
 0x1f6   :  { %2052 = vmatpush1.bf16.msra.mxu1 %v6309_v24  ;;  %2245 = vmatpush1.bf16.msra.mxu0 %v6311_v27 }
 0x1f7   :  { %1710 = vmatmul.mubr.bf16.gmra.mrb[8].mxu1 %v8355_v41  ;;  %1903 = vmatmul.mubr.bf16.gmra.mrb[40].mxu0 %v8355_v41 }
 0x1f8   :  { %1719 = vmatprep.mubr.bf16.mxu1 %v7812_v0  ;;  %1912 = vmatprep.mubr.bf16.mxu0 %v7812_v0 }
 0x1f9   :  { %2053 = vmatprep.subr.bf16.mxu1 %v6318_v43  ;;  %2246 = vmatprep.subr.bf16.mxu0 %v6320_v44 }
 0x1fa   :  { %2054 = vmatpush1.bf16.msra.mxu1 %v6317_v45  ;;  %2247 = vmatpush1.bf16.msra.mxu0 %v6319_v46 }
 0x1fb   :  { %2055 = vmatprep.subr.bf16.mxu1 %v6326_v47  ;;  %2248 = vmatprep.subr.bf16.mxu0 %v6328_v48 }
 0x1fe   :  { %v6813_v57 = vpop.f32.mrb[8].mxu0  ;;  %2056 = vmatpush1.bf16.msra.mxu1 %v6325_v50  ;;  %2249 = vmatpush1.bf16.msra.mxu0 %v6327_v52 }
 0x1ff   :  { %v1164_v59 = vmul.f32 %v6813_v57, %v8318_v54  ;;  %v1052_v20 = vpop.f32.mrb[9].mxu0  ;;  %1720 = vmatmul.mubr.bf16.gmra.mrb[12].mxu1 %v8353_v33  ;;  %1913 = vmatmul.mubr.bf16.gmra.mrb[44].mxu0 %v8353_v33 }
 0x200   :  { %v1162_v61 = vmul.f32 %v8318_v54, %v1052_v20  ;;  %v6814_v35 = vpop.f32.mrb[10].mxu0  ;;  %1729 = vmatprep.mubr.bf16.mxu1 %v7812_v0  ;;  %1922 = vmatprep.mubr.bf16.mxu0 %v7812_v0 }
 0x201   :  { %v1203_v36 = vadd.f32 %v8320_v60, %v1164_v59  ;;  %v1165_v40 = vmul.f32 %v6814_v35, %v8318_v54  ;;  %v1055_v62 = vpop.f32.mrb[11].mxu0  ;;  %2057 = vmatprep.subr.bf16.mxu1 %v6334_v56  ;;  %2250 = vmatprep.subr.bf16.mxu0 %v6336_v21 }
 0x202   :  { %v1201_v63 = vadd.f32 %v8320_v60, %v1162_v61  ;;  %v1163_v1 = vmul.f32 %v8318_v54, %v1055_v62  ;;  %2058 = vmatpush1.bf16.msra.mxu1 %v6333_v58  ;;  %2251 = vmatpush1.bf16.msra.mxu0 %v6335_v26 }
 0x203   :  { %v1204_v2 = vadd.f32 %v8320_v60, %v1165_v40  ;;  %v1235_v3 = vmax.f32 %v1203_v36, 0.0 }
 0x204   :  { %v1202_v38 = vadd.f32 %v8320_v60, %v1163_v1  ;;  %v1233_v5 = vmax.f32 %v1201_v63, 0.0 }
 0x205   :  { %v1236_v4 = vmax.f32 %v1204_v2, 0.0 }
 0x206   :  { %v1234_v6 = vmax.f32 %v1202_v38, 0.0 }
 0x207   :  { %v8373_v17 = vpack.c.bf16 %v1236_v4, %v1235_v3 }
 0x208   :  { %v8375_v7 = vpack.c.bf16 %v1234_v6, %v1233_v5 }
 0x20a   :  { %1730 = vmatmul.mubr.bf16.gmra.mrb[16].mxu1 %v8375_v7  ;;  %1923 = vmatmul.mubr.bf16.gmra.mrb[48].mxu0 %v8375_v7 }
 0x20b   :  { %1739 = vmatprep.mubr.bf16.mxu1 %v7812_v0  ;;  %1932 = vmatprep.mubr.bf16.mxu0 %v7812_v0 }
 0x211   :  { %v6817_v9 = vpop.f32.mrb[12].mxu0 }
 0x212   :  { %v1168_v10 = vmul.f32 %v6817_v9, %v8318_v54  ;;  %v1068_v12 = vpop.f32.mrb[13].mxu0  ;;  %1740 = vmatmul.mubr.bf16.gmra.mrb[20].mxu1 %v8373_v17  ;;  %1933 = vmatmul.mubr.bf16.gmra.mrb[52].mxu0 %v8373_v17 }
 0x213   :  { %v1166_v14 = vmul.f32 %v8318_v54, %v1068_v12  ;;  %v6818_v15 = vpop.f32.mrb[14].mxu0  ;;  %1749 = vmatprep.mubr.bf16.mxu1 %v7812_v0  ;;  %1942 = vmatprep.mubr.bf16.mxu0 %v7812_v0 }
 0x214   :  { %v1207_v18 = vadd.f32 %v8320_v60, %v1168_v10  ;;  %v1169_v19 = vmul.f32 %v6818_v15, %v8318_v54  ;;  %v1071_v23 = vpop.f32.mrb[15].mxu0 }
 0x215   :  { %v1205_v24 = vadd.f32 %v8320_v60, %v1166_v14  ;;  %v1167_v25 = vmul.f32 %v8318_v54, %v1071_v23 }
 0x216   :  { %v1208_v27 = vadd.f32 %v8320_v60, %v1169_v19  ;;  %v1239_v29 = vmax.f32 %v1207_v18, 0.0 }
 0x217   :  { %v1206_v28 = vadd.f32 %v8320_v60, %v1167_v25  ;;  %v1237_v31 = vmax.f32 %v1205_v24, 0.0 }
 0x218   :  { %v1240_v30 = vmax.f32 %v1208_v27, 0.0 }
 0x219   :  { %v1238_v32 = vmax.f32 %v1206_v28, 0.0 }
 0x21a   :  { %v8393_v34 = vpack.c.bf16 %v1240_v30, %v1239_v29 }
 0x21b   :  { %v8395_v37 = vpack.c.bf16 %v1238_v32, %v1237_v31 }
 0x21d   :  { %1750 = vmatmul.mubr.bf16.gmra.mrb[24].mxu1 %v8395_v37  ;;  %1943 = vmatmul.mubr.bf16.gmra.mrb[56].mxu0 %v8395_v37 }
 0x21e   :  { %1759 = vmatprep.mubr.bf16.mxu1 %v7812_v0  ;;  %1952 = vmatprep.mubr.bf16.mxu0 %v7812_v0 }
 0x224   :  { %v6821_v39 = vpop.f32.mrb[16].mxu0 }
 0x225   :  { %v1172_v43 = vmul.f32 %v6821_v39, %v8318_v54  ;;  %v1084_v44 = vpop.f32.mrb[17].mxu0  ;;  %1760 = vmatmul.mubr.bf16.gmra.mrb[28].mxu1 %v8393_v34  ;;  %1953 = vmatmul.mubr.bf16.gmra.mrb[60].mxu0 %v8393_v34 }
 0x226   :  { %v1170_v45 = vmul.f32 %v8318_v54, %v1084_v44  ;;  %v6822_v46 = vpop.f32.mrb[18].mxu0  ;;  %1769 = vmatprep.mubr.bf16.mxu1 %v7812_v0  ;;  %1962 = vmatprep.mubr.bf16.mxu0 %v7812_v0 }
 0x227   :  { %v1211_v47 = vadd.f32 %v8320_v60, %v1172_v43  ;;  %v1173_v48 = vmul.f32 %v6822_v46, %v8318_v54  ;;  %v1087_v49 = vpop.f32.mrb[19].mxu0 }
 0x228   :  { %v1209_v50 = vadd.f32 %v8320_v60, %v1170_v45  ;;  %v1171_v51 = vmul.f32 %v8318_v54, %v1087_v49 }
 0x229   :  { %v1212_v52 = vadd.f32 %v8320_v60, %v1173_v48  ;;  %v1243_v55 = vmax.f32 %v1211_v47, 0.0 }
 0x22a   :  { %v1210_v53 = vadd.f32 %v8320_v60, %v1171_v51  ;;  %v1241_v21 = vmax.f32 %v1209_v50, 0.0 }
 0x22b   :  { %v1244_v56 = vmax.f32 %v1212_v52, 0.0 }
 0x22c   :  { %v1242_v57 = vmax.f32 %v1210_v53, 0.0 }
 0x22d   :  { %v8413_v58 = vpack.c.bf16 %v1244_v56, %v1243_v55 }
 0x22e   :  { %v8415_v26 = vpack.c.bf16 %v1242_v57, %v1241_v21 }
 0x230   :  { %1770 = vmatmul.mubr.bf16.gmra.mrb[32].mxu1 %v8415_v26  ;;  %1963 = vmatmul.mubr.bf16.gmra.mrb[64].mxu0 %v8415_v26 }
 0x231   :  { %1779 = vmatprep.mubr.bf16.mxu1 %v7812_v0  ;;  %1972 = vmatprep.mubr.bf16.mxu0 %v7812_v0 }
 0x237   :  { %v6825_v59 = vpop.f32.mrb[20].mxu0 }
 0x238   :  { %v1176_v20 = vmul.f32 %v6825_v59, %v8318_v54  ;;  %v1100_v61 = vpop.f32.mrb[21].mxu0  ;;  %1780 = vmatmul.mubr.bf16.gmra.mrb[36].mxu1 %v8413_v58  ;;  %1973 = vmatmul.mubr.bf16.gmra.mrb[68].mxu0 %v8413_v58 }
 0x239   :  { %v1174_v35 = vmul.f32 %v8318_v54, %v1100_v61  ;;  %v6826_v36 = vpop.f32.mrb[22].mxu0  ;;  %1789 = vmatprep.mubr.bf16.mxu1 %v7812_v0  ;;  %1982 = vmatprep.mubr.bf16.mxu0 %v7812_v0 }
 0x23a   :  { %v1215_v40 = vadd.f32 %v8320_v60, %v1176_v20  ;;  %v1177_v62 = vmul.f32 %v6826_v36, %v8318_v54  ;;  %v1103_v63 = vpop.f32.mrb[23].mxu0 }
 0x23b   :  { %v1213_v1 = vadd.f32 %v8320_v60, %v1174_v35  ;;  %v1175_v2 = vmul.f32 %v8318_v54, %v1103_v63 }
 0x23c   :  { %v1216_v38 = vadd.f32 %v8320_v60, %v1177_v62  ;;  %v1247_v4 = vmax.f32 %v1215_v40, 0.0  ;;  %v7165_v62 = vld [vmem:[#allocation8 + $0x4] ss:$16 sps:$4 sm:$0xff]  }
 0x23d   :  { %v1214_v3 = vadd.f32 %v8320_v60, %v1175_v2  ;;  %v1245_v6 = vmax.f32 %v1213_v1, 0.0  ;;  %5170 = vmatprep.subr.bf16.mxu1 %v7165_v62  ;;  %v7166_v1 = vld [vmem:[#allocation8 + $0x20] ss:$16 sps:$4 sm:$0xff]   ;;  %v7171_v2 = vld [vmem:[#allocation8 + $0x44] ss:$16 sps:$4 sm:$0xff]  }
 0x23e   :  { %v1248_v5 = vmax.f32 %v1216_v38, 0.0  ;;  %v7169_v38 = vld [vmem:[#allocation8 + $0x40] ss:$16 sps:$4 sm:$0xff]  }
 0x23f   :  { %v1246_v9 = vmax.f32 %v1214_v3, 0.0  ;;  %v7174_v3 = vld [vmem:[#allocation8 + $0x64] ss:$16 sps:$4 sm:$0xff]  }
 0x240   :  { %v8433_v10 = vpack.c.bf16 %v1248_v5, %v1247_v4  ;;  %v7175_v4 = vld [vmem:[#allocation8 + $0x80] ss:$16 sps:$4 sm:$0xff]   ;;  %v7177_v5 = vld [vmem:[#allocation8 + $0x84] ss:$16 sps:$4 sm:$0xff]  }
 0x241   :  { %v8435_v12 = vpack.c.bf16 %v1246_v9, %v1245_v6  ;;  %v7180_v6 = vld [vmem:[#allocation8 + $0xa4] ss:$16 sps:$4 sm:$0xff]  }
 0x242   :  { %v7183_v9 = vld [vmem:[#allocation8 + $0xc4] ss:$16 sps:$4 sm:$0xff]  }
 0x243   :  { %1790 = vmatmul.mubr.bf16.gmra.mrb[40].mxu1 %v8435_v12  ;;  %1983 = vmatmul.mubr.bf16.gmra.mrb[72].mxu0 %v8435_v12 }
 0x244   :  { %1799 = vmatprep.mubr.bf16.mxu1 %v7812_v0  ;;  %1992 = vmatprep.mubr.bf16.mxu0 %v7812_v0 }
 0x24a   :  { %v6829_v14 = vpop.f32.mrb[24].mxu0 }
 0x24b   :  { %v1180_v15 = vmul.f32 %v6829_v14, %v8318_v54  ;;  %v1116_v18 = vpop.f32.mrb[25].mxu0  ;;  %1800 = vmatmul.mubr.bf16.gmra.mrb[44].mxu1 %v8433_v10  ;;  %1993 = vmatmul.mubr.bf16.gmra.mrb[76].mxu0 %v8433_v10  ;;  %v7184_v14 = vld [vmem:[#allocation8 + $0xe0] ss:$16 sps:$4 sm:$0xff]  }
 0x24c   :  { %v1178_v19 = vmul.f32 %v8318_v54, %v1116_v18  ;;  %v6830_v23 = vpop.f32.mrb[26].mxu0  ;;  %1809 = vmatprep.mubr.bf16.mxu1 %v7812_v0  ;;  %2002 = vmatprep.mubr.bf16.mxu0 %v7812_v0  ;;  %v7195_v18 = vld [vmem:[#allocation8 + $0x2c] ss:$16 sps:$4 sm:$0xff]  }
 0x24d   :  { %v1219_v24 = vadd.f32 %v8320_v60, %v1180_v15  ;;  %v1181_v25 = vmul.f32 %v6830_v23, %v8318_v54  ;;  %v1119_v27 = vpop.f32.mrb[27].mxu0  ;;  %v7189_v15 = vld [vmem:[#allocation8 + $0xc] ss:$16 sps:$4 sm:$0xff]   ;;  %v7193_v23 = vld [vmem:[#allocation8 + $0x28] ss:$16 sps:$4 sm:$0xff]  }
 0x24e   :  { %v1217_v28 = vadd.f32 %v8320_v60, %v1178_v19  ;;  %v1179_v29 = vmul.f32 %v8318_v54, %v1119_v27  ;;  %5334 = vmatprep.subr.bf16.mxu0 %v7189_v15  ;;  %v7192_v19 = vld [vmem:[#allocation8 + $0x104] ss:$16 sps:$4 sm:$0xff]   ;;  %v7201_v27 = vld [vmem:[#allocation8 + $0x4c] ss:$16 sps:$4 sm:$0xff]  }
 0x24f   :  { %v1220_v30 = vadd.f32 %v8320_v60, %v1181_v25  ;;  %v1251_v32 = vmax.f32 %v1219_v24, 0.0  ;;  %v7190_v24 = vld [vmem:[#allocation8 + $0x100] ss:$16 sps:$4 sm:$0xff]   ;;  %v7199_v25 = vld [vmem:[#allocation8 + $0x48] ss:$16 sps:$4 sm:$0xff]  }
 0x250   :  { %v1218_v31 = vadd.f32 %v8320_v60, %v1179_v29  ;;  %v1249_v43 = vmax.f32 %v1217_v28, 0.0  ;;  %v7196_v28 = vld [vmem:[#allocation8 + $0x120] ss:$16 sps:$4 sm:$0xff]   ;;  %v7204_v29 = vld [vmem:[#allocation8 + $0x6c] ss:$16 sps:$4 sm:$0xff]  }
 0x251   :  { %v1252_v39 = vmax.f32 %v1220_v30, 0.0  ;;  %v7202_v30 = vld [vmem:[#allocation8 + $0x68] ss:$16 sps:$4 sm:$0xff]  }
 0x252   :  { %v1250_v44 = vmax.f32 %v1218_v31, 0.0  ;;  %v8519_v31 = vsub.s32 3, %v8087_v8 }
 0x253   :  { %v8453_v45 = vpack.c.bf16 %v1252_v39, %v1251_v32  ;;  %v7210_v32 = vld [vmem:[#allocation8 + $0x8c] ss:$16 sps:$4 sm:$0xff]  }
 0x254   :  { %v8455_v46 = vpack.c.bf16 %v1250_v44, %v1249_v43  ;;  %v2727_v39 = vld [vmem:[%s9565_s9] sm:$0xff]  ;;  %v7207_v44 = vld [vmem:[#allocation8 + $0x144] ss:$16 sps:$4 sm:$0xff]  }
 0x255   :  { %v7205_v43 = vld [vmem:[#allocation8 + $0x140] ss:$16 sps:$4 sm:$0xff]  }
 0x256   :  { %1810 = vmatmul.mubr.bf16.gmra.mrb[48].mxu1 %v8455_v46  ;;  %2003 = vmatmul.mubr.bf16.gmra.mrb[80].mxu0 %v8455_v46 }
 0x257   :  { %1819 = vmatprep.mubr.bf16.mxu1 %v7812_v0  ;;  %2012 = vmatprep.mubr.bf16.mxu0 %v7812_v0 }
 0x25d   :  { %v6833_v47 = vpop.f32.mrb[28].mxu0 }
 0x25e   :  { %v1184_v48 = vmul.f32 %v6833_v47, %v8318_v54  ;;  %v1132_v49 = vpop.f32.mrb[29].mxu0  ;;  %1820 = vmatmul.mubr.bf16.gmra.mrb[52].mxu1 %v8453_v45  ;;  %2013 = vmatmul.mubr.bf16.gmra.mrb[84].mxu0 %v8453_v45 }
 0x25f   :  { %v1182_v50 = vmul.f32 %v8318_v54, %v1132_v49  ;;  %v6834_v51 = vpop.f32.mrb[30].mxu0  ;;  %1829 = vmatprep.mubr.bf16.mxu1 %v7812_v0  ;;  %2022 = vmatprep.mubr.bf16.mxu0 %v7812_v0 }
 0x260   :  { %v1223_v52 = vadd.f32 %v8320_v60, %v1184_v48  ;;  %v1185_v53 = vmul.f32 %v6834_v51, %v8318_v54  ;;  %v1135_v55 = vpop.f32.mrb[31].mxu0  ;;  %v7213_v51 = vld [vmem:[#allocation8 + $0xac] ss:$16 sps:$4 sm:$0xff]  }
 0x261   :  { %v1221_v56 = vadd.f32 %v8320_v60, %v1182_v50  ;;  %v1183_v21 = vmul.f32 %v8318_v54, %v1135_v55  ;;  %v7163_v54 = vld [vmem:[#allocation8] ss:$16 sps:$4 sm:$0xff]  }
 0x262   :  { %v1224_v57 = vadd.f32 %v8320_v60, %v1185_v53  ;;  %v1255_v20 = vmax.f32 %v1223_v52, 0.0  ;;  %v8539_v52 = vrot.slane %v2727_v39, %v8094_v13  ;;  %v8542_v53 = vrot.slane %v2727_v39, %v8107_v22 }
 0x263   :  { %v1222_v59 = vadd.f32 %v8320_v60, %v1183_v21  ;;  %v1253_v35 = vmax.f32 %v1221_v56, 0.0  ;;  %v7168_v60 = vld [vmem:[#allocation8 + $0x24] ss:$16 sps:$4 sm:$0xff]   ;;  %v8545_v21 = vrot.slane %v2727_v39, %v8097_v16 }
 0x264   :  { %v1256_v61 = vmax.f32 %v1224_v57, 0.0  ;;  %v8548_v57 = vrot.slane %v2727_v39, %v8519_v31 }
 0x265   :  { %v1254_v36 = vmax.f32 %v1222_v59, 0.0 }
 0x266   :  { %v8473_v40 = vpack.c.bf16 %v1256_v61, %v1255_v20 }
 0x267   :  { %v8475_v63 = vpack.c.bf16 %v1254_v36, %v1253_v35  ;;  %v7211_v36 = vld [vmem:[#allocation8 + $0xa8] ss:$16 sps:$4 sm:$0xff]  }
 0x269   :  { %1830 = vmatmul.mubr.bf16.gmra.mrb[56].mxu1 %v8475_v63  ;;  %2023 = vmatmul.mubr.bf16.gmra.mrb[88].mxu0 %v8475_v63 }
 0x26a   :  { %1839 = vmatprep.mubr.bf16.mxu1 %v7812_v0  ;;  %2032 = vmatprep.mubr.bf16.mxu0 %v7812_v0 }
 0x271   :  { %1840 = vmatmul.mubr.bf16.gmra.mrb[60].mxu1 %v8473_v40  ;;  %2033 = vmatmul.mubr.bf16.gmra.mrb[92].mxu0 %v8473_v40 }
 0x272   :  { %2075 = vmatprep.mubr.bf16.mxu1 %v7812_v0  ;;  %2268 = vmatprep.mubr.bf16.mxu0 %v7812_v0 }
 0x279   :  { %2076 = vmatmul.mubr.bf16.vlgmr.msra.gmra.mrb[64].mxu1 %v8332_v42  ;;  %2269 = vmatmul.mubr.bf16.vlgmr.msra.gmra.mrb[96].mxu0 %v8332_v42  ;;  %v7172_v42 = vld [vmem:[#allocation8 + $0x60] ss:$16 sps:$4 sm:$0xff]  }
 0x27a   :  { %2085 = vmatprep.mubr.bf16.mxu1 %v7812_v0  ;;  %2278 = vmatprep.mubr.bf16.mxu0 %v7812_v0 }
 0x27b   :  { %5171 = vmatpush1.bf16.msra.mxu1 %v7163_v54 }
 0x27c   :  { %5172 = vmatprep.subr.bf16.mxu1 %v7168_v60 }
 0x27f   :  { %5173 = vmatpush1.bf16.msra.mxu1 %v7166_v1 }
 0x280   :  { %5174 = vmatprep.subr.bf16.mxu1 %v7171_v2  ;;  %v7219_v2 = vld [vmem:[#allocation8 + $0xcc] ss:$16 sps:$4 sm:$0xff]  }
 0x281   :  { %2086 = vmatmul.mubr.bf16.gmra.mrb[68].mxu1 %v8330_v11  ;;  %2279 = vmatmul.mubr.bf16.gmra.mrb[100].mxu0 %v8330_v11  ;;  %v7178_v11 = vld [vmem:[#allocation8 + $0xa0] ss:$16 sps:$4 sm:$0xff]  }
 0x282   :  { %2095 = vmatprep.mubr.bf16.mxu1 %v7812_v0  ;;  %2288 = vmatprep.mubr.bf16.mxu0 %v7812_v0 }
 0x283   :  { %5175 = vmatpush1.bf16.msra.mxu1 %v7169_v38 }
 0x284   :  { %5176 = vmatprep.subr.bf16.mxu1 %v7174_v3 }
 0x287   :  { %5177 = vmatpush1.bf16.msra.mxu1 %v7172_v42 }
 0x288   :  { %5178 = vmatprep.subr.bf16.mxu1 %v7177_v5 }
 0x289   :  { %2096 = vmatmul.mubr.bf16.gmra.mrb[72].mxu1 %v8355_v41  ;;  %2289 = vmatmul.mubr.bf16.gmra.mrb[104].mxu0 %v8355_v41  ;;  %v7181_v41 = vld [vmem:[#allocation8 + $0xc0] ss:$16 sps:$4 sm:$0xff]  }
 0x28a   :  { %2105 = vmatprep.mubr.bf16.mxu1 %v7812_v0  ;;  %2298 = vmatprep.mubr.bf16.mxu0 %v7812_v0 }
 0x28b   :  { %5179 = vmatpush1.bf16.msra.mxu1 %v7175_v4 }
 0x28c   :  { %5180 = vmatprep.subr.bf16.mxu1 %v7180_v6 }
 0x28f   :  { %5181 = vmatpush1.bf16.msra.mxu1 %v7178_v11 }
 0x290   :  { %5182 = vmatprep.subr.bf16.mxu1 %v7183_v9 }
 0x291   :  { %2106 = vmatmul.mubr.bf16.gmra.mrb[76].mxu1 %v8353_v33  ;;  %2299 = vmatmul.mubr.bf16.gmra.mrb[108].mxu0 %v8353_v33  ;;  %v7186_v33 = vld [vmem:[#allocation8 + $0xe4] ss:$16 sps:$4 sm:$0xff]  }
 0x292   :  { %2115 = vmatprep.mubr.bf16.mxu1 %v7812_v0  ;;  %2308 = vmatprep.mubr.bf16.mxu0 %v7812_v0 }
 0x293   :  { %5183 = vmatpush1.bf16.msra.mxu1 %v7181_v41 }
 0x294   :  { %5184 = vmatprep.subr.bf16.mxu1 %v7186_v33  ;;  %v7214_v33 = vld [vmem:[#allocation8 + $0x160] ss:$16 sps:$4 sm:$0xff]  }
 0x297   :  { %5185 = vmatpush1.bf16.msra.mxu1 %v7184_v14  ;;  %v7216_v14 = vld [vmem:[#allocation8 + $0x164] ss:$16 sps:$4 sm:$0xff]  }
 0x298   :  { %5186 = vmatprep.subr.bf16.mxu1 %v7192_v19 }
 0x299   :  { %2116 = vmatmul.mubr.bf16.gmra.mrb[80].mxu1 %v8375_v7  ;;  %2309 = vmatmul.mubr.bf16.gmra.mrb[112].mxu0 %v8375_v7  ;;  %v7187_v7 = vld [vmem:[#allocation8 + $0x8] ss:$16 sps:$4 sm:$0xff]  }
 0x29a   :  { %2125 = vmatprep.mubr.bf16.mxu1 %v7812_v0  ;;  %2318 = vmatprep.mubr.bf16.mxu0 %v7812_v0 }
 0x29b   :  { %5335 = vmatpush1.bf16.msra.mxu0 %v7187_v7  ;;  %5187 = vmatpush1.bf16.msra.mxu1 %v7190_v24 }
 0x29c   :  { %5336 = vmatprep.subr.bf16.mxu0 %v7195_v18  ;;  %v7217_v18 = vld [vmem:[#allocation8 + $0xc8] ss:$16 sps:$4 sm:$0xff]  }
 0x29f   :  { %5337 = vmatpush1.bf16.msra.mxu0 %v7193_v23 }
 0x2a0   :  { %5338 = vmatprep.subr.bf16.mxu0 %v7201_v27 }
 0x2a1   :  { %2126 = vmatmul.mubr.bf16.gmra.mrb[84].mxu1 %v8373_v17  ;;  %2319 = vmatmul.mubr.bf16.gmra.mrb[116].mxu0 %v8373_v17  ;;  %v7198_v17 = vld [vmem:[#allocation8 + $0x124] ss:$16 sps:$4 sm:$0xff]  }
 0x2a2   :  { %2135 = vmatprep.mubr.bf16.mxu1 %v7812_v0  ;;  %2328 = vmatprep.mubr.bf16.mxu0 %v7812_v0 }
 0x2a3   :  { %5188 = vmatprep.subr.bf16.mxu1 %v7198_v17  ;;  %5339 = vmatpush1.bf16.msra.mxu0 %v7199_v25 }
 0x2a4   :  { %5189 = vmatpush1.bf16.msra.mxu1 %v7196_v28  ;;  %5340 = vmatprep.subr.bf16.mxu0 %v7204_v29 }
 0x2a5   :  { %5190 = vmatprep.subr.bf16.mxu1 %v7207_v44 }
 0x2a7   :  { %5341 = vmatpush1.bf16.msra.mxu0 %v7202_v30 }
 0x2a8   :  { %5342 = vmatprep.subr.bf16.mxu0 %v7210_v32  ;;  %5191 = vmatpush1.bf16.msra.mxu1 %v7205_v43 }
 0x2a9   :  { %2136 = vmatmul.mubr.bf16.gmra.mrb[88].mxu1 %v8395_v37  ;;  %2329 = vmatmul.mubr.bf16.gmra.mrb[120].mxu0 %v8395_v37  ;;  %v2429_v37 = vld [vmem:[%s9564_s8] sm:$0xff] }
 0x2aa   :  { %2145 = vmatprep.mubr.bf16.mxu1 %v7812_v0  ;;  %2338 = vmatprep.mubr.bf16.mxu0 %v7812_v0  ;;  %v8527_v47 = vrot.slane %v2429_v37, %v8094_v13  ;;  %v8530_v48 = vrot.slane %v2429_v37, %v8107_v22  ;;  %v8533_v49 = vrot.slane %v2429_v37, %v8097_v16 }
 0x2ab   :  { %v8536_v50 = vrot.slane %v2429_v37, %v8519_v31  ;;  %5192 = vmatprep.subr.bf16.mxu1 %v7216_v14 }
 0x2ac   :  { %5193 = vmatpush1.bf16.msra.mxu1 %v7214_v33 }
 0x2b1   :  { %2146 = vmatmul.mubr.bf16.gmra.mrb[92].mxu1 %v8393_v34  ;;  %2339 = vmatmul.mubr.bf16.gmra.mrb[124].mxu0 %v8393_v34  ;;  %v7208_v34 = vld [vmem:[#allocation8 + $0x88] ss:$16 sps:$4 sm:$0xff]  }
 0x2b2   :  { %2155 = vmatprep.mubr.bf16.mxu1 %v7812_v0  ;;  %2348 = vmatprep.mubr.bf16.mxu0 %v7812_v0 }
 0x2b3   :  { %5343 = vmatpush1.bf16.msra.mxu0 %v7208_v34 }
 0x2b4   :  { %5344 = vmatprep.subr.bf16.mxu0 %v7213_v51 }
 0x2b7   :  { %v1691_v55 = vpop.f32.mrb[0].mxu1  ;;  %v1884_v56 = vpop.f32.mrb[32].mxu0  ;;  %5345 = vmatpush1.bf16.msra.mxu0 %v7211_v36 }
 0x2b8   :  { %v2471_v59 = vmul.f32 %v8527_v47, %v1691_v55  ;;  %v2473_v20 = vmul.f32 %v8530_v48, %v1884_v56  ;;  %v1693_v61 = vpop.f32.mrb[1].mxu1  ;;  %v1886_v35 = vpop.f32.mrb[33].mxu0  ;;  %5346 = vmatprep.subr.bf16.mxu0 %v7219_v2 }
 0x2b9   :  { %v2472_v62 = vmul.f32 %v8533_v49, %v1693_v61  ;;  %v2474_v54 = vmul.f32 %v8536_v50, %v1886_v35  ;;  %v1695_v60 = vpop.f32.mrb[2].mxu1  ;;  %v1888_v1 = vpop.f32.mrb[34].mxu0  ;;  %2156 = vmatmul.mubr.bf16.gmra.mrb[96].mxu1 %v8415_v26  ;;  %2349 = vmatmul.mubr.bf16.gmra.mrb[128].mxu0 %v8415_v26 }
 0x2ba   :  { %v2769_v38 = vadd.f32 %v8539_v52, %v2471_v59  ;;  %v2771_v3 = vadd.f32 %v8542_v53, %v2473_v20  ;;  %v2479_v42 = vmul.f32 %v8527_v47, %v1695_v60  ;;  %v2481_v4 = vmul.f32 %v8530_v48, %v1888_v1  ;;  %v1697_v5 = vpop.f32.mrb[3].mxu1  ;;  %v1890_v11 = vpop.f32.mrb[35].mxu0  ;;  %2165 = vmatprep.mubr.bf16.mxu1 %v7812_v0  ;;  %v7222_v59 = vld [vmem:[#allocation8 + $0xec] ss:$16 sps:$4 sm:$0xff]   ;;  %v7220_v60 = vld [vmem:[#allocation8 + $0xe8] ss:$16 sps:$4 sm:$0xff]  }
 0x2bb   :  { %v2770_v6 = vadd.f32 %v8545_v21, %v2472_v62  ;;  %v2772_v41 = vadd.f32 %v8548_v57, %v2474_v54  ;;  %v2480_v9 = vmul.f32 %v8533_v49, %v1697_v5  ;;  %v2482_v26 = vmul.f32 %v8536_v50, %v1890_v11  ;;  %2358 = vmatprep.mubr.bf16.mxu0 %v7812_v0  ;;  %v7228_v5 = vld [vmem:[#allocation8 + $0x10c] ss:$16 sps:$4 sm:$0xff]  }
 0x2bc   :  { %v2777_v15 = vadd.f32 %v8539_v52, %v2479_v42  ;;  %v2779_v7 = vadd.f32 %v8542_v53, %v2481_v4  ;;  %v3025_v24 = vmax.f32 %v2769_v38, 0.0  ;;  %v3027_v17 = vmax.f32 %v2771_v3, 0.0  ;;  %5347 = vmatpush1.bf16.msra.mxu0 %v7217_v18 }
 0x2bd   :  { %v2778_v19 = vadd.f32 %v8545_v21, %v2480_v9  ;;  %v2780_v23 = vadd.f32 %v8548_v57, %v2482_v26  ;;  %v3026_v28 = vmax.f32 %v2770_v6, 0.0  ;;  %v3028_v29 = vmax.f32 %v2772_v41, 0.0  ;;  %5348 = vmatprep.subr.bf16.mxu0 %v7222_v59 }
 0x2be   :  { %v3033_v25 = vmax.f32 %v2777_v15, 0.0  ;;  %v3035_v27 = vmax.f32 %v2779_v7, 0.0 }
 0x2bf   :  { %v3034_v30 = vmax.f32 %v2778_v19, 0.0  ;;  %v3036_v37 = vmax.f32 %v2780_v23, 0.0  ;;  %v1701_v32 = vpop.f32.mrb[4].mxu1  ;;  %v1894_v39 = vpop.f32.mrb[36].mxu0  ;;  %v7226_v23 = vld [vmem:[#allocation8 + $0x108] ss:$16 sps:$4 sm:$0xff]  }
 0x2c0   :  { %v3281_v43 = vmax.f32 %v3025_v24, %v3033_v25  ;;  %v3323_v44 = vmax.f32 %v3027_v17, %v3035_v27  ;;  %v2487_v34 = vmul.f32 %v8527_v47, %v1701_v32  ;;  %v2489_v51 = vmul.f32 %v8530_v48, %v1894_v39  ;;  %v1703_v55 = vpop.f32.mrb[5].mxu1  ;;  %v1896_v56 = vpop.f32.mrb[37].mxu0  ;;  %5349 = vmatpush1.bf16.msra.mxu0 %v7220_v60  ;;  %v7223_v39 = vld [vmem:[#allocation8 + $0x180] ss:$16 sps:$4 sm:$0xff]  }
 0x2c1   :  { %v3302_v20 = vmax.f32 %v3026_v28, %v3034_v30  ;;  %v3344_v61 = vmax.f32 %v3028_v29, %v3036_v37  ;;  %v2488_v35 = vmul.f32 %v8533_v49, %v1703_v55  ;;  %v2490_v36 = vmul.f32 %v8536_v50, %v1896_v56  ;;  %v1705_v62 = vpop.f32.mrb[6].mxu1  ;;  %v1898_v54 = vpop.f32.mrb[38].mxu0  ;;  %2166 = vmatmul.mubr.bf16.gmra.mrb[100].mxu1 %v8413_v58  ;;  %v7225_v28 = vld [vmem:[#allocation8 + $0x184] ss:$16 sps:$4 sm:$0xff]   ;;  %v7231_v55 = vld [vmem:[#allocation8 + $0x12c] ss:$16 sps:$4 sm:$0xff]  }
 0x2c2   :  { %v2785_v1 = vadd.f32 %v8539_v52, %v2487_v34  ;;  %v2787_v2 = vadd.f32 %v8542_v53, %v2489_v51  ;;  %v2495_v38 = vmul.f32 %v8527_v47, %v1705_v62  ;;  %v2497_v3 = vmul.f32 %v8530_v48, %v1898_v54  ;;  %2359 = vmatmul.mubr.bf16.gmra.mrb[132].mxu0 %v8413_v58  ;;  %v1707_v42 = vpop.f32.mrb[7].mxu1  ;;  %v1900_v4 = vpop.f32.mrb[39].mxu0 }
 0x2c3   :  { %v2786_v11 = vadd.f32 %v8545_v21, %v2488_v35  ;;  %v2788_v6 = vadd.f32 %v8548_v57, %v2490_v36  ;;  %v2496_v41 = vmul.f32 %v8533_v49, %v1707_v42  ;;  %v2498_v9 = vmul.f32 %v8536_v50, %v1900_v4  ;;  %2175 = vmatprep.mubr.bf16.mxu1 %v7812_v0 }
 0x2c4   :  { %v3041_v26 = vmax.f32 %v2785_v1, 0.0  ;;  %v3043_v33 = vmax.f32 %v2787_v2, 0.0  ;;  %v2793_v14 = vadd.f32 %v8539_v52, %v2495_v38  ;;  %v2795_v15 = vadd.f32 %v8542_v53, %v2497_v3  ;;  %2368 = vmatprep.mubr.bf16.mxu0 %v7812_v0  ;;  %5350 = vmatprep.subr.bf16.mxu0 %v7228_v5 }
 0x2c5   :  { %v3042_v58 = vmax.f32 %v2786_v11, 0.0  ;;  %v3044_v7 = vmax.f32 %v2788_v6, 0.0  ;;  %v2794_v18 = vadd.f32 %v8545_v21, %v2496_v41  ;;  %v2796_v19 = vadd.f32 %v8548_v57, %v2498_v9  ;;  %5194 = vmatprep.subr.bf16.mxu1 %v7225_v28  ;;  %5351 = vmatpush1.bf16.msra.mxu0 %v7226_v23  ;;  %v7235_v6 = vld [vmem:[#allocation8 + $0x148] ss:$16 sps:$4 sm:$0xff]  }
 0x2c6   :  { %v3282_v24 = vmax.f32 %v3281_v43, %v3041_v26  ;;  %v3324_v17 = vmax.f32 %v3323_v44, %v3043_v33  ;;  %v3049_v25 = vmax.f32 %v2793_v14, 0.0  ;;  %v3051_v27 = vmax.f32 %v2795_v15, 0.0  ;;  %v7229_v43 = vld [vmem:[#allocation8 + $0x128] ss:$16 sps:$4 sm:$0xff]   ;;  %5195 = vmatpush1.bf16.msra.mxu1 %v7223_v39  ;;  %5352 = vmatprep.subr.bf16.mxu0 %v7231_v55 }
 0x2c7   :  { %v3303_v29 = vmax.f32 %v3302_v20, %v3042_v58  ;;  %v3345_v30 = vmax.f32 %v3344_v61, %v3044_v7  ;;  %v3050_v37 = vmax.f32 %v2794_v18, 0.0  ;;  %v3052_v32 = vmax.f32 %v2796_v19, 0.0  ;;  %v7237_v20 = vld [vmem:[#allocation8 + $0x14c] ss:$16 sps:$4 sm:$0xff]  }
 0x2c8   :  { %v3283_v34 = vmax.f32 %v3282_v24, %v3049_v25  ;;  %v3325_v51 = vmax.f32 %v3324_v17, %v3051_v27  ;;  %v7240_v17 = vld [vmem:[#allocation8 + $0x16c] ss:$16 sps:$4 sm:$0xff]  }
 0x2c9   :  { %v3304_v56 = vmax.f32 %v3303_v29, %v3050_v37  ;;  %v3346_v59 = vmax.f32 %v3345_v30, %v3052_v32  ;;  %2176 = vmatmul.mubr.bf16.gmra.mrb[104].mxu1 %v8435_v12  ;;  %5353 = vmatpush1.bf16.msra.mxu0 %v7229_v43  ;;  %v7238_v30 = vld [vmem:[#allocation8 + $0x168] ss:$16 sps:$4 sm:$0xff]  }
 0x2ca   :  { %2369 = vmatmul.mubr.bf16.gmra.mrb[136].mxu0 %v8435_v12  ;;  %v1711_v44 = vpop.f32.mrb[8].mxu1  ;;  %v1904_v35 = vpop.f32.mrb[40].mxu0  ;;  %2185 = vmatprep.mubr.bf16.mxu1 %v7812_v0 }
 0x2cb   :  { %v2503_v61 = vmul.f32 %v8527_v47, %v1711_v44  ;;  %v2505_v36 = vmul.f32 %v8530_v48, %v1904_v35  ;;  %v1713_v62 = vpop.f32.mrb[9].mxu1  ;;  %v1906_v54 = vpop.f32.mrb[41].mxu0  ;;  %2378 = vmatprep.mubr.bf16.mxu0 %v7812_v0  ;;  %5354 = vmatprep.subr.bf16.mxu0 %v7237_v20  ;;  %v7246_v35 = vld [vmem:[#allocation8 + $0x18c] ss:$16 sps:$4 sm:$0xff]  }
 0x2cc   :  { %v2504_v60 = vmul.f32 %v8533_v49, %v1713_v62  ;;  %v2506_v1 = vmul.f32 %v8536_v50, %v1906_v54  ;;  %v1715_v2 = vpop.f32.mrb[10].mxu1  ;;  %v1908_v12 = vpop.f32.mrb[42].mxu0 }
 0x2cd   :  { %v2801_v38 = vadd.f32 %v8539_v52, %v2503_v61  ;;  %v2803_v3 = vadd.f32 %v8542_v53, %v2505_v36  ;;  %v2511_v42 = vmul.f32 %v8527_v47, %v1715_v2  ;;  %v2513_v4 = vmul.f32 %v8530_v48, %v1908_v12  ;;  %v1717_v5 = vpop.f32.mrb[11].mxu1  ;;  %v1910_v11 = vpop.f32.mrb[43].mxu0  ;;  %5355 = vmatpush1.bf16.msra.mxu0 %v7235_v6 }
 0x2ce   :  { %v2802_v41 = vadd.f32 %v8545_v21, %v2504_v60  ;;  %v2804_v9 = vadd.f32 %v8548_v57, %v2506_v1  ;;  %v2512_v26 = vmul.f32 %v8533_v49, %v1717_v5  ;;  %v2514_v33 = vmul.f32 %v8536_v50, %v1910_v11  ;;  %5356 = vmatprep.subr.bf16.mxu0 %v7240_v17  ;;  %v7234_v5 = vld [vmem:[#allocation8 + $0x1a4] ss:$16 sps:$4 sm:$0xff]   ;;  %v7244_v11 = vld [vmem:[#allocation8 + $0x188] ss:$16 sps:$4 sm:$0xff]   ;;  %v7249_v17 = vld [vmem:[#allocation8 + $0x1ac] ss:$16 sps:$4 sm:$0xff]  }
 0x2cf   :  { %v3057_v14 = vmax.f32 %v2801_v38, 0.0  ;;  %v3059_v15 = vmax.f32 %v2803_v3, 0.0  ;;  %v2809_v58 = vadd.f32 %v8539_v52, %v2511_v42  ;;  %v2811_v7 = vadd.f32 %v8542_v53, %v2513_v4  ;;  %5196 = vmatprep.subr.bf16.mxu1 %v7234_v5 }
 0x2d0   :  { %v3058_v18 = vmax.f32 %v2802_v41, 0.0  ;;  %v3060_v19 = vmax.f32 %v2804_v9, 0.0  ;;  %v2810_v23 = vadd.f32 %v8545_v21, %v2512_v26  ;;  %v2812_v24 = vadd.f32 %v8548_v57, %v2514_v33  ;;  %v7232_v33 = vld [vmem:[#allocation8 + $0x1a0] ss:$16 sps:$4 sm:$0xff]  }
 0x2d1   :  { %v3284_v25 = vmax.f32 %v3283_v34, %v3057_v14  ;;  %v3326_v27 = vmax.f32 %v3325_v51, %v3059_v15  ;;  %v3065_v28 = vmax.f32 %v2809_v58, 0.0  ;;  %v3067_v29 = vmax.f32 %v2811_v7, 0.0  ;;  %2186 = vmatmul.mubr.bf16.gmra.mrb[108].mxu1 %v8433_v10  ;;  %5357 = vmatpush1.bf16.msra.mxu0 %v7238_v30  ;;  %v7243_v30 = vld [vmem:[#allocation8 + $0x1c4] ss:$16 sps:$4 sm:$0xff]  }
 0x2d2   :  { %v3305_v37 = vmax.f32 %v3304_v56, %v3058_v18  ;;  %v3347_v32 = vmax.f32 %v3346_v59, %v3060_v19  ;;  %v3066_v39 = vmax.f32 %v2810_v23, 0.0  ;;  %v3068_v55 = vmax.f32 %v2812_v24, 0.0  ;;  %2379 = vmatmul.mubr.bf16.gmra.mrb[140].mxu0 %v8433_v10  ;;  %v1721_v43 = vpop.f32.mrb[12].mxu1  ;;  %v1914_v44 = vpop.f32.mrb[44].mxu0  ;;  %2195 = vmatprep.mubr.bf16.mxu1 %v7812_v0 }
 0x2d3   :  { %v3285_v20 = vmax.f32 %v3284_v25, %v3065_v28  ;;  %v3327_v34 = vmax.f32 %v3326_v27, %v3067_v29  ;;  %v2519_v51 = vmul.f32 %v8527_v47, %v1721_v43  ;;  %v2521_v61 = vmul.f32 %v8530_v48, %v1914_v44  ;;  %v1723_v36 = vpop.f32.mrb[13].mxu1  ;;  %v1916_v62 = vpop.f32.mrb[45].mxu0  ;;  %2388 = vmatprep.mubr.bf16.mxu0 %v7812_v0  ;;  %v7241_v44 = vld [vmem:[#allocation8 + $0x1c0] ss:$16 sps:$4 sm:$0xff]  }
 0x2d4   :  { %v3306_v56 = vmax.f32 %v3305_v37, %v3066_v39  ;;  %v3348_v59 = vmax.f32 %v3347_v32, %v3068_v55  ;;  %v2520_v54 = vmul.f32 %v8533_v49, %v1723_v36  ;;  %v2522_v10 = vmul.f32 %v8536_v50, %v1916_v62  ;;  %v1725_v60 = vpop.f32.mrb[14].mxu1  ;;  %v1918_v1 = vpop.f32.mrb[46].mxu0  ;;  %5358 = vmatprep.subr.bf16.mxu0 %v7246_v35  ;;  %v7247_v37 = vld [vmem:[#allocation8 + $0x1a8] ss:$16 sps:$4 sm:$0xff]   ;;  %v7255_v35 = vld [vmem:[#allocation8 + $0x1cc] ss:$16 sps:$4 sm:$0xff]  }
 0x2d5   :  { %v2817_v2 = vadd.f32 %v8539_v52, %v2519_v51  ;;  %v2819_v12 = vadd.f32 %v8542_v53, %v2521_v61  ;;  %v2527_v38 = vmul.f32 %v8527_v47, %v1725_v60  ;;  %v2529_v3 = vmul.f32 %v8530_v48, %v1918_v1  ;;  %v1727_v42 = vpop.f32.mrb[15].mxu1  ;;  %v1920_v4 = vpop.f32.mrb[47].mxu0  ;;  %5197 = vmatpush1.bf16.msra.mxu1 %v7232_v33 }
 0x2d6   :  { %v2818_v6 = vadd.f32 %v8545_v21, %v2520_v54  ;;  %v2820_v41 = vadd.f32 %v8548_v57, %v2522_v10  ;;  %v2528_v9 = vmul.f32 %v8533_v49, %v1727_v42  ;;  %v2530_v26 = vmul.f32 %v8536_v50, %v1920_v4  ;;  %5359 = vmatpush1.bf16.msra.mxu0 %v7244_v11  ;;  %v7252_v10 = vld [vmem:[#allocation8 + $0x1e4] ss:$16 sps:$4 sm:$0xff]  }
 0x2d7   :  { %v3073_v14 = vmax.f32 %v2817_v2, 0.0  ;;  %v3075_v15 = vmax.f32 %v2819_v12, 0.0  ;;  %v2825_v58 = vadd.f32 %v8539_v52, %v2527_v38  ;;  %v2827_v7 = vadd.f32 %v8542_v53, %v2529_v3  ;;  %5198 = vmatprep.subr.bf16.mxu1 %v7243_v30  ;;  %5360 = vmatprep.subr.bf16.mxu0 %v7249_v17  ;;  %v7250_v38 = vld [vmem:[#allocation8 + $0x1e0] ss:$16 sps:$4 sm:$0xff]  }
 0x2d8   :  { %v3074_v18 = vmax.f32 %v2818_v6, 0.0  ;;  %v3076_v19 = vmax.f32 %v2820_v41, 0.0  ;;  %v2826_v23 = vadd.f32 %v8545_v21, %v2528_v9  ;;  %v2828_v24 = vadd.f32 %v8548_v57, %v2530_v26  ;;  %v7253_v41 = vld [vmem:[#allocation8 + $0x1c8] ss:$16 sps:$4 sm:$0xff]  }
 0x2d9   :  { %v3286_v25 = vmax.f32 %v3285_v20, %v3073_v14  ;;  %v3328_v27 = vmax.f32 %v3327_v34, %v3075_v15  ;;  %v3081_v28 = vmax.f32 %v2825_v58, 0.0  ;;  %v3083_v29 = vmax.f32 %v2827_v7, 0.0  ;;  %2196 = vmatmul.mubr.bf16.gmra.mrb[112].mxu1 %v8455_v46  ;;  %v7258_v15 = vld [vmem:[#allocation8 + $0x1ec] ss:$16 sps:$4 sm:$0xff]  }
 0x2da   :  { %v3307_v32 = vmax.f32 %v3306_v56, %v3074_v18  ;;  %v3349_v39 = vmax.f32 %v3348_v59, %v3076_v19  ;;  %v3082_v55 = vmax.f32 %v2826_v23, 0.0  ;;  %v3084_v43 = vmax.f32 %v2828_v24, 0.0  ;;  %2389 = vmatmul.mubr.bf16.gmra.mrb[144].mxu0 %v8455_v46  ;;  %2205 = vmatprep.mubr.bf16.mxu1 %v7812_v0 }
 0x2db   :  { %v3287_v51 = vmax.f32 %v3286_v25, %v3081_v28  ;;  %v3329_v20 = vmax.f32 %v3328_v27, %v3083_v29  ;;  %2398 = vmatprep.mubr.bf16.mxu0 %v7812_v0  ;;  %5199 = vmatpush1.bf16.msra.mxu1 %v7241_v44 }
 0x2dc   :  { %v3308_v34 = vmax.f32 %v3307_v32, %v3082_v55  ;;  %v3350_v61 = vmax.f32 %v3349_v39, %v3084_v43  ;;  %5361 = vmatpush1.bf16.msra.mxu0 %v7247_v37  ;;  %5200 = vmatprep.subr.bf16.mxu1 %v7252_v10  ;;  %v7256_v37 = vld [vmem:[#allocation8 + $0x1e8] ss:$16 sps:$4 sm:$0xff]  }
 0x2dd   :  { %v1731_v36 = vpop.f32.mrb[16].mxu1  ;;  %v1924_v62 = vpop.f32.mrb[48].mxu0  ;;  %5362 = vmatprep.subr.bf16.mxu0 %v7255_v35 }
 0x2de   :  { %v2535_v56 = vmul.f32 %v8527_v47, %v1731_v36  ;;  %v2537_v46 = vmul.f32 %v8530_v48, %v1924_v62  ;;  %v1733_v59 = vpop.f32.mrb[17].mxu1  ;;  %v1926_v54 = vpop.f32.mrb[49].mxu0 }
 0x2df   :  { %v2536_v60 = vmul.f32 %v8533_v49, %v1733_v59  ;;  %v2538_v1 = vmul.f32 %v8536_v50, %v1926_v54  ;;  %v1735_v2 = vpop.f32.mrb[18].mxu1  ;;  %v1928_v12 = vpop.f32.mrb[50].mxu0  ;;  %5201 = vmatpush1.bf16.msra.mxu1 %v7250_v38 }
 0x2e0   :  { %v2833_v3 = vadd.f32 %v8539_v52, %v2535_v56  ;;  %v2835_v42 = vadd.f32 %v8542_v53, %v2537_v46  ;;  %v2543_v4 = vmul.f32 %v8527_v47, %v1735_v2  ;;  %v2545_v5 = vmul.f32 %v8530_v48, %v1928_v12  ;;  %v1737_v11 = vpop.f32.mrb[19].mxu1  ;;  %v1930_v6 = vpop.f32.mrb[51].mxu0  ;;  %5363 = vmatpush1.bf16.msra.mxu0 %v7253_v41 }
 0x2e1   :  { %v2834_v9 = vadd.f32 %v8545_v21, %v2536_v60  ;;  %v2836_v26 = vadd.f32 %v8548_v57, %v2538_v1  ;;  %v2544_v33 = vmul.f32 %v8533_v49, %v1737_v11  ;;  %v2546_v14 = vmul.f32 %v8536_v50, %v1930_v6  ;;  %2206 = vmatmul.mubr.bf16.gmra.mrb[116].mxu1 %v8453_v45 }
 0x2e2   :  { %v3089_v58 = vmax.f32 %v2833_v3, 0.0  ;;  %v3091_v7 = vmax.f32 %v2835_v42, 0.0  ;;  %v2841_v18 = vadd.f32 %v8539_v52, %v2543_v4  ;;  %v2843_v19 = vadd.f32 %v8542_v53, %v2545_v5  ;;  %2399 = vmatmul.mubr.bf16.gmra.mrb[148].mxu0 %v8453_v45  ;;  %2215 = vmatprep.mubr.bf16.mxu1 %v7812_v0 }
 0x2e3   :  { %v3090_v23 = vmax.f32 %v2834_v9, 0.0  ;;  %v3092_v24 = vmax.f32 %v2836_v26, 0.0  ;;  %v2842_v17 = vadd.f32 %v8545_v21, %v2544_v33  ;;  %v2844_v25 = vadd.f32 %v8548_v57, %v2546_v14  ;;  %2408 = vmatprep.mubr.bf16.mxu0 %v7812_v0  ;;  %5364 = vmatprep.subr.bf16.mxu0 %v7258_v15 }
 0x2e4   :  { %v3288_v27 = vmax.f32 %v3287_v51, %v3089_v58  ;;  %v3330_v28 = vmax.f32 %v3329_v20, %v3091_v7  ;;  %v3097_v29 = vmax.f32 %v2841_v18, 0.0  ;;  %v3099_v30 = vmax.f32 %v2843_v19, 0.0  ;;  %5365 = vmatpush1.bf16.msra.mxu0 %v7256_v37 }
 0x2e5   :  { %v3309_v32 = vmax.f32 %v3308_v34, %v3090_v23  ;;  %v3351_v39 = vmax.f32 %v3350_v61, %v3092_v24  ;;  %v3098_v45 = vmax.f32 %v2842_v17, 0.0  ;;  %v3100_v55 = vmax.f32 %v2844_v25, 0.0  ;;  %v1741_v43 = vpop.f32.mrb[20].mxu1  ;;  %v1934_v44 = vpop.f32.mrb[52].mxu0 }
 0x2e6   :  { %v3289_v35 = vmax.f32 %v3288_v27, %v3097_v29  ;;  %v3331_v36 = vmax.f32 %v3330_v28, %v3099_v30  ;;  %v2551_v62 = vmul.f32 %v8527_v47, %v1741_v43  ;;  %v2553_v56 = vmul.f32 %v8530_v48, %v1934_v44  ;;  %v1743_v46 = vpop.f32.mrb[21].mxu1  ;;  %v1936_v51 = vpop.f32.mrb[53].mxu0  ;;  %v7261_v28 = vld [vmem:[#allocation8 + $0x204] ss:$16 sps:$4 sm:$0xff]  }
 0x2e7   :  { %v3310_v20 = vmax.f32 %v3309_v32, %v3098_v45  ;;  %v3352_v59 = vmax.f32 %v3351_v39, %v3100_v55  ;;  %v2552_v54 = vmul.f32 %v8533_v49, %v1743_v46  ;;  %v2554_v34 = vmul.f32 %v8536_v50, %v1936_v51  ;;  %v1745_v61 = vpop.f32.mrb[22].mxu1  ;;  %v1938_v10 = vpop.f32.mrb[54].mxu0  ;;  %5211 = vmatprep.subr.bf16.mxu1 %v7261_v28 }
 0x2e8   :  { %v2849_v60 = vadd.f32 %v8539_v52, %v2551_v62  ;;  %v2851_v1 = vadd.f32 %v8542_v53, %v2553_v56  ;;  %v2559_v2 = vmul.f32 %v8527_v47, %v1745_v61  ;;  %v2561_v12 = vmul.f32 %v8530_v48, %v1938_v10  ;;  %v1747_v38 = vpop.f32.mrb[23].mxu1  ;;  %v1940_v3 = vpop.f32.mrb[55].mxu0 }
 0x2e9   :  { %v2850_v42 = vadd.f32 %v8545_v21, %v2552_v54  ;;  %v2852_v4 = vadd.f32 %v8548_v57, %v2554_v34  ;;  %v2560_v5 = vmul.f32 %v8533_v49, %v1747_v38  ;;  %v2562_v11 = vmul.f32 %v8536_v50, %v1940_v3  ;;  %2216 = vmatmul.mubr.bf16.gmra.mrb[120].mxu1 %v8475_v63 }
 0x2ea   :  { %v3105_v6 = vmax.f32 %v2849_v60, 0.0  ;;  %v3107_v41 = vmax.f32 %v2851_v1, 0.0  ;;  %v2857_v9 = vadd.f32 %v8539_v52, %v2559_v2  ;;  %v2859_v26 = vadd.f32 %v8542_v53, %v2561_v12  ;;  %2409 = vmatmul.mubr.bf16.gmra.mrb[152].mxu0 %v8475_v63  ;;  %2225 = vmatprep.mubr.bf16.mxu1 %v7812_v0  ;;  %v7264_v63 = vld [vmem:[#allocation8 + $0x20c] ss:$16 sps:$4 sm:$0xff]  }
 0x2eb   :  { %v3106_v33 = vmax.f32 %v2850_v42, 0.0  ;;  %v3108_v14 = vmax.f32 %v2852_v4, 0.0  ;;  %v2858_v15 = vadd.f32 %v8545_v21, %v2560_v5  ;;  %v2860_v58 = vadd.f32 %v8548_v57, %v2562_v11  ;;  %2418 = vmatprep.mubr.bf16.mxu0 %v7812_v0  ;;  %5375 = vmatprep.subr.bf16.mxu0 %v7264_v63 }
 0x2ec   :  { %v3290_v7 = vmax.f32 %v3289_v35, %v3105_v6  ;;  %v3332_v18 = vmax.f32 %v3331_v36, %v3107_v41  ;;  %v3113_v19 = vmax.f32 %v2857_v9, 0.0  ;;  %v3115_v23 = vmax.f32 %v2859_v26, 0.0 }
 0x2ed   :  { %v3311_v24 = vmax.f32 %v3310_v20, %v3106_v33  ;;  %v3353_v17 = vmax.f32 %v3352_v59, %v3108_v14  ;;  %v3114_v25 = vmax.f32 %v2858_v15, 0.0  ;;  %v3116_v27 = vmax.f32 %v2860_v58, 0.0 }
 0x2ee   :  { %v3291_v29 = vmax.f32 %v3290_v7, %v3113_v19  ;;  %v3333_v30 = vmax.f32 %v3332_v18, %v3115_v23 }
 0x2ef   :  { %v3312_v37 = vmax.f32 %v3311_v24, %v3114_v25  ;;  %v3354_v32 = vmax.f32 %v3353_v17, %v3116_v27 }
 0x2f0   :  { %v1751_v39 = vpop.f32.mrb[24].mxu1  ;;  %v1944_v45 = vpop.f32.mrb[56].mxu0 }
 0x2f1   :  { %v2567_v0 = vmul.f32 %v8527_v47, %v1751_v39  ;;  %v2569_v55 = vmul.f32 %v8530_v48, %v1944_v45  ;;  %v1753_v43 = vpop.f32.mrb[25].mxu1  ;;  %v1946_v44 = vpop.f32.mrb[57].mxu0  ;;  %2226 = vmatmul.mubr.bf16.gmra.mrb[124].mxu1 %v8473_v40 }
 0x2f2   :  { %v2568_v35 = vmul.f32 %v8533_v49, %v1753_v43  ;;  %v2570_v36 = vmul.f32 %v8536_v50, %v1946_v44  ;;  %2419 = vmatmul.mubr.bf16.gmra.mrb[156].mxu0 %v8473_v40  ;;  %v1755_v62 = vpop.f32.mrb[26].mxu1  ;;  %v1948_v56 = vpop.f32.mrb[58].mxu0 }
 0x2f3   :  { %v2865_v46 = vadd.f32 %v8539_v52, %v2567_v0  ;;  %v2867_v51 = vadd.f32 %v8542_v53, %v2569_v55  ;;  %v2575_v20 = vmul.f32 %v8527_v47, %v1755_v62  ;;  %v2577_v59 = vmul.f32 %v8530_v48, %v1948_v56  ;;  %v1757_v54 = vpop.f32.mrb[27].mxu1  ;;  %v1950_v34 = vpop.f32.mrb[59].mxu0 }
 0x2f4   :  { %v2866_v61 = vadd.f32 %v8545_v21, %v2568_v35  ;;  %v2868_v10 = vadd.f32 %v8548_v57, %v2570_v36  ;;  %v2576_v60 = vmul.f32 %v8533_v49, %v1757_v54  ;;  %v2578_v40 = vmul.f32 %v8536_v50, %v1950_v34 }
 0x2f5   :  { %v3121_v1 = vmax.f32 %v2865_v46, 0.0  ;;  %v3123_v2 = vmax.f32 %v2867_v51, 0.0  ;;  %v2873_v12 = vadd.f32 %v8539_v52, %v2575_v20  ;;  %v2875_v38 = vadd.f32 %v8542_v53, %v2577_v59 }
 0x2f6   :  { %v3122_v3 = vmax.f32 %v2866_v61, 0.0  ;;  %v3124_v42 = vmax.f32 %v2868_v10, 0.0  ;;  %v2874_v4 = vadd.f32 %v8545_v21, %v2576_v60  ;;  %v2876_v5 = vadd.f32 %v8548_v57, %v2578_v40 }
 0x2f7   :  { %v3292_v11 = vmax.f32 %v3291_v29, %v3121_v1  ;;  %v3334_v6 = vmax.f32 %v3333_v30, %v3123_v2  ;;  %v3129_v41 = vmax.f32 %v2873_v12, 0.0  ;;  %v3131_v9 = vmax.f32 %v2875_v38, 0.0 }
 0x2f8   :  { %v3313_v26 = vmax.f32 %v3312_v37, %v3122_v3  ;;  %v3355_v33 = vmax.f32 %v3354_v32, %v3124_v42  ;;  %v3130_v14 = vmax.f32 %v2874_v4, 0.0  ;;  %v3132_v15 = vmax.f32 %v2876_v5, 0.0  ;;  %v1761_v58 = vpop.f32.mrb[28].mxu1  ;;  %v1954_v7 = vpop.f32.mrb[60].mxu0 }
 0x2f9   :  { %v3293_v18 = vmax.f32 %v3292_v11, %v3129_v41  ;;  %v3335_v19 = vmax.f32 %v3334_v6, %v3131_v9  ;;  %v2583_v23 = vmul.f32 %v8527_v47, %v1761_v58  ;;  %v2585_v24 = vmul.f32 %v8530_v48, %v1954_v7  ;;  %v1763_v17 = vpop.f32.mrb[29].mxu1  ;;  %v1956_v25 = vpop.f32.mrb[61].mxu0 }
 0x2fa   :  { %v3314_v27 = vmax.f32 %v3313_v26, %v3130_v14  ;;  %v3356_v28 = vmax.f32 %v3355_v33, %v3132_v15  ;;  %v2584_v63 = vmul.f32 %v8533_v49, %v1763_v17  ;;  %v2586_v29 = vmul.f32 %v8536_v50, %v1956_v25  ;;  %v1765_v30 = vpop.f32.mrb[30].mxu1  ;;  %v1958_v37 = vpop.f32.mrb[62].mxu0 }
 0x2fb   :  { %v2881_v32 = vadd.f32 %v8539_v52, %v2583_v23  ;;  %v2883_v39 = vadd.f32 %v8542_v53, %v2585_v24  ;;  %v2591_v45 = vmul.f32 %v8527_v47, %v1765_v30  ;;  %v2593_v0 = vmul.f32 %v8530_v48, %v1958_v37  ;;  %v1767_v55 = vpop.f32.mrb[31].mxu1  ;;  %v1960_v43 = vpop.f32.mrb[63].mxu0 }
 0x2fc   :  { %v2882_v44 = vadd.f32 %v8545_v21, %v2584_v63  ;;  %v2884_v35 = vadd.f32 %v8548_v57, %v2586_v29  ;;  %v2592_v36 = vmul.f32 %v8533_v49, %v1767_v55  ;;  %v2594_v62 = vmul.f32 %v8536_v50, %v1960_v43 }
 0x2fd   :  { %v3137_v56 = vmax.f32 %v2881_v32, 0.0  ;;  %v3139_v46 = vmax.f32 %v2883_v39, 0.0  ;;  %v2889_v51 = vadd.f32 %v8539_v52, %v2591_v45  ;;  %v2891_v20 = vadd.f32 %v8542_v53, %v2593_v0 }
 0x2fe   :  { %v3138_v59 = vmax.f32 %v2882_v44, 0.0  ;;  %v3140_v54 = vmax.f32 %v2884_v35, 0.0  ;;  %v2890_v34 = vadd.f32 %v8545_v21, %v2592_v36  ;;  %v2892_v61 = vadd.f32 %v8548_v57, %v2594_v62 }
 0x2ff   :  { %v3294_v10 = vmax.f32 %v3293_v18, %v3137_v56  ;;  %v3336_v60 = vmax.f32 %v3335_v19, %v3139_v46  ;;  %v3145_v40 = vmax.f32 %v2889_v51, 0.0  ;;  %v3147_v1 = vmax.f32 %v2891_v20, 0.0 }
 0x300   :  { %v3315_v2 = vmax.f32 %v3314_v27, %v3138_v59  ;;  %v3357_v12 = vmax.f32 %v3356_v28, %v3140_v54  ;;  %v3146_v38 = vmax.f32 %v2890_v34, 0.0  ;;  %v3148_v3 = vmax.f32 %v2892_v61, 0.0 }
 0x301   :  { %v8708_v42 = vmax.f32 %v3294_v10, %v3145_v40  ;;  %v8710_v4 = vmax.f32 %v3336_v60, %v3147_v1 }
 0x302   :  { %v8712_v5 = vmax.f32 %v3315_v2, %v3146_v38  ;;  %v8714_v11 = vmax.f32 %v3357_v12, %v3148_v3 }
 0x303   :  { %v1771_v6 = vpop.f32.mrb[32].mxu1  ;;  %v1964_v41 = vpop.f32.mrb[64].mxu0  ;;  %v3296_v28 = vrot.slane %v8708_v42, 4 }
 0x304   :  { %v2599_v9 = vmul.f32 %v8527_v47, %v1771_v6  ;;  %v2601_v26 = vmul.f32 %v8530_v48, %v1964_v41  ;;  %v1773_v33 = vpop.f32.mrb[33].mxu1  ;;  %v1966_v14 = vpop.f32.mrb[65].mxu0  ;;  %v3317_v63 = vrot.slane %v8712_v5, 4 }
 0x305   :  { %v2600_v15 = vmul.f32 %v8533_v49, %v1773_v33  ;;  %v2602_v58 = vmul.f32 %v8536_v50, %v1966_v14  ;;  %v1775_v7 = vpop.f32.mrb[34].mxu1  ;;  %v1968_v18 = vpop.f32.mrb[66].mxu0 }
 0x306   :  { %v1777_v19 = vpop.f32.mrb[35].mxu1  ;;  %v1970_v23 = vpop.f32.mrb[67].mxu0  ;;  %v2897_v24 = vadd.f32 %v8539_v52, %v2599_v9  ;;  %v2899_v17 = vadd.f32 %v8542_v53, %v2601_v26  ;;  %v2607_v29 = vmul.f32 %v8527_v47, %v1775_v7  ;;  %v2609_v30 = vmul.f32 %v8530_v48, %v1968_v18 }
 0x307   :  { %v2898_v25 = vadd.f32 %v8545_v21, %v2600_v15  ;;  %v2900_v27 = vadd.f32 %v8548_v57, %v2602_v58  ;;  %v2608_v39 = vmul.f32 %v8533_v49, %v1777_v19  ;;  %v2610_v45 = vmul.f32 %v8536_v50, %v1970_v23 }
 0x308   :  { %v3153_v37 = vmax.f32 %v2897_v24, 0.0  ;;  %v3155_v32 = vmax.f32 %v2899_v17, 0.0  ;;  %v2905_v43 = vadd.f32 %v8539_v52, %v2607_v29  ;;  %v2907_v44 = vadd.f32 %v8542_v53, %v2609_v30 }
 0x309   :  { %v3154_v46 = vmax.f32 %v2898_v25, 0.0  ;;  %v3156_v51 = vmax.f32 %v2900_v27, 0.0  ;;  %v2906_v20 = vadd.f32 %v8545_v21, %v2608_v39  ;;  %v2908_v59 = vadd.f32 %v8548_v57, %v2610_v45 }
 0x30a   :  { %v3161_v61 = vmax.f32 %v2905_v43, 0.0  ;;  %v3163_v10 = vmax.f32 %v2907_v44, 0.0  ;;  %v3359_v30 = vrot.slane %v8714_v11, 4  ;;  %v2449_v39 = vsub.s32 4, %v8087_v8 }
 0x30b   :  { %v1781_v0 = vpop.f32.mrb[36].mxu1  ;;  %v1974_v55 = vpop.f32.mrb[68].mxu0  ;;  %v3162_v12 = vmax.f32 %v2906_v20, 0.0  ;;  %v3164_v38 = vmax.f32 %v2908_v59, 0.0  ;;  %v8753_v44 = vmax.f32 %v8708_v42, %v3296_v28 }
 0x30c   :  { %v2615_v35 = vmul.f32 %v8527_v47, %v1781_v0  ;;  %v2617_v36 = vmul.f32 %v8530_v48, %v1974_v55  ;;  %v1783_v62 = vpop.f32.mrb[37].mxu1  ;;  %v1976_v56 = vpop.f32.mrb[69].mxu0  ;;  %v3449_v41 = vmax.f32 %v3153_v37, %v3161_v61  ;;  %v3491_v9 = vmax.f32 %v3155_v32, %v3163_v10 }
 0x30d   :  { %v1785_v54 = vpop.f32.mrb[38].mxu1  ;;  %v1978_v34 = vpop.f32.mrb[70].mxu0  ;;  %v2616_v3 = vmul.f32 %v8533_v49, %v1783_v62  ;;  %v2618_v6 = vmul.f32 %v8536_v50, %v1976_v56  ;;  %v3470_v14 = vmax.f32 %v3154_v46, %v3162_v12  ;;  %v3512_v15 = vmax.f32 %v3156_v51, %v3164_v38 }
 0x30e   :  { %v2913_v60 = vadd.f32 %v8539_v52, %v2615_v35  ;;  %v2915_v40 = vadd.f32 %v8542_v53, %v2617_v36  ;;  %v1787_v1 = vpop.f32.mrb[39].mxu1  ;;  %v1980_v2 = vpop.f32.mrb[71].mxu0  ;;  %v2623_v23 = vmul.f32 %v8527_v47, %v1785_v54  ;;  %v2625_v24 = vmul.f32 %v8530_v48, %v1978_v34 }
 0x30f   :  { %v2914_v58 = vadd.f32 %v8545_v21, %v2616_v3  ;;  %v2916_v7 = vadd.f32 %v8548_v57, %v2618_v6  ;;  %v2624_v27 = vmul.f32 %v8533_v49, %v1787_v1  ;;  %v2626_v29 = vmul.f32 %v8536_v50, %v1980_v2 }
 0x310   :  { %v3169_v26 = vmax.f32 %v2913_v60, 0.0  ;;  %v3171_v33 = vmax.f32 %v2915_v40, 0.0  ;;  %v2921_v37 = vadd.f32 %v8539_v52, %v2623_v23  ;;  %v2923_v32 = vadd.f32 %v8542_v53, %v2625_v24 }
 0x311   :  { %v3170_v17 = vmax.f32 %v2914_v58, 0.0  ;;  %v3172_v25 = vmax.f32 %v2916_v7, 0.0  ;;  %v2922_v55 = vadd.f32 %v8545_v21, %v2624_v27  ;;  %v2924_v43 = vadd.f32 %v8548_v57, %v2626_v29 }
 0x312   :  { %v3450_v18 = vmax.f32 %v3449_v41, %v3169_v26  ;;  %v3492_v19 = vmax.f32 %v3491_v9, %v3171_v33  ;;  %v8756_v35 = vmax.f32 %v8712_v5, %v3317_v63  ;;  %v3177_v36 = vmax.f32 %v2921_v37, 0.0 }
 0x313   :  { %v3471_v45 = vmax.f32 %v3470_v14, %v3170_v17  ;;  %v3513_v0 = vmax.f32 %v3512_v15, %v3172_v25  ;;  %v3179_v62 = vmax.f32 %v2923_v32, 0.0  ;;  %v3178_v51 = vmax.f32 %v2922_v55, 0.0 }
 0x314   :  { %v3180_v20 = vmax.f32 %v2924_v43, 0.0  ;;  %v3451_v10 = vmax.f32 %v3450_v18, %v3177_v36 }
 0x315   :  { %v3493_v60 = vmax.f32 %v3492_v19, %v3179_v62  ;;  %v3472_v40 = vmax.f32 %v3471_v45, %v3178_v51 }
 0x316   :  { %v1791_v56 = vpop.f32.mrb[40].mxu1  ;;  %v1984_v46 = vpop.f32.mrb[72].mxu0  ;;  %v3514_v1 = vmax.f32 %v3513_v0, %v3180_v20 }
 0x317   :  { %v2631_v59 = vmul.f32 %v8527_v47, %v1791_v56  ;;  %v2633_v54 = vmul.f32 %v8530_v48, %v1984_v46  ;;  %v1793_v34 = vpop.f32.mrb[41].mxu1  ;;  %v1986_v61 = vpop.f32.mrb[73].mxu0 }
 0x318   :  { %v2632_v42 = vmul.f32 %v8533_v49, %v1793_v34  ;;  %v2634_v28 = vmul.f32 %v8536_v50, %v1986_v61  ;;  %v1795_v5 = vpop.f32.mrb[42].mxu1  ;;  %v1988_v63 = vpop.f32.mrb[74].mxu0 }
 0x319   :  { %v2929_v2 = vadd.f32 %v8539_v52, %v2631_v59  ;;  %v2931_v12 = vadd.f32 %v8542_v53, %v2633_v54  ;;  %v1797_v38 = vpop.f32.mrb[43].mxu1  ;;  %v1990_v3 = vpop.f32.mrb[75].mxu0  ;;  %v2639_v9 = vmul.f32 %v8527_v47, %v1795_v5  ;;  %v2641_v26 = vmul.f32 %v8530_v48, %v1988_v63 }
 0x31a   :  { %v2930_v6 = vadd.f32 %v8545_v21, %v2632_v42  ;;  %v2932_v41 = vadd.f32 %v8548_v57, %v2634_v28  ;;  %v2640_v15 = vmul.f32 %v8533_v49, %v1797_v38  ;;  %v2642_v58 = vmul.f32 %v8536_v50, %v1990_v3 }
 0x31b   :  { %v3185_v33 = vmax.f32 %v2929_v2, 0.0  ;;  %v3187_v14 = vmax.f32 %v2931_v12, 0.0  ;;  %v2937_v19 = vadd.f32 %v8539_v52, %v2639_v9  ;;  %v2939_v23 = vadd.f32 %v8542_v53, %v2641_v26 }
 0x31c   :  { %v3186_v7 = vmax.f32 %v2930_v6, 0.0  ;;  %v3188_v18 = vmax.f32 %v2932_v41, 0.0  ;;  %v2938_v25 = vadd.f32 %v8545_v21, %v2640_v15  ;;  %v2940_v27 = vadd.f32 %v8548_v57, %v2642_v58 }
 0x31d   :  { %v3452_v24 = vmax.f32 %v3451_v10, %v3185_v33  ;;  %v3494_v17 = vmax.f32 %v3493_v60, %v3187_v14  ;;  %v3193_v32 = vmax.f32 %v2937_v19, 0.0  ;;  %v3195_v45 = vmax.f32 %v2939_v23, 0.0 }
 0x31e   :  { %v3473_v29 = vmax.f32 %v3472_v40, %v3186_v7  ;;  %v3515_v37 = vmax.f32 %v3514_v1, %v3188_v18  ;;  %v1801_v0 = vpop.f32.mrb[44].mxu1  ;;  %v1994_v55 = vpop.f32.mrb[76].mxu0  ;;  %v3194_v43 = vmax.f32 %v2938_v25, 0.0  ;;  %v3196_v36 = vmax.f32 %v2940_v27, 0.0 }
 0x31f   :  { %v2647_v62 = vmul.f32 %v8527_v47, %v1801_v0  ;;  %v2649_v56 = vmul.f32 %v8530_v48, %v1994_v55  ;;  %v1803_v46 = vpop.f32.mrb[45].mxu1  ;;  %v1996_v51 = vpop.f32.mrb[77].mxu0  ;;  %v3453_v20 = vmax.f32 %v3452_v24, %v3193_v32  ;;  %v3495_v59 = vmax.f32 %v3494_v17, %v3195_v45 }
 0x320   :  { %v2648_v54 = vmul.f32 %v8533_v49, %v1803_v46  ;;  %v2650_v34 = vmul.f32 %v8536_v50, %v1996_v51  ;;  %v1805_v61 = vpop.f32.mrb[46].mxu1  ;;  %v1998_v10 = vpop.f32.mrb[78].mxu0  ;;  %v3474_v60 = vmax.f32 %v3473_v29, %v3194_v43  ;;  %v3516_v42 = vmax.f32 %v3515_v37, %v3196_v36  ;;  %v8801_v51 = vld [vmem:[%s9564_s8] sm:$0xff] }
 0x321   :  { %v2945_v28 = vadd.f32 %v8539_v52, %v2647_v62  ;;  %v2947_v5 = vadd.f32 %v8542_v53, %v2649_v56  ;;  %v1807_v63 = vpop.f32.mrb[47].mxu1  ;;  %v2000_v40 = vpop.f32.mrb[79].mxu0  ;;  %v2655_v12 = vmul.f32 %v8527_v47, %v1805_v61  ;;  %v2657_v38 = vmul.f32 %v8530_v48, %v1998_v10  ;;  %v8815_v10 = vld [vmem:[%s9565_s9] sm:$0xff] }
 0x322   :  { %v2946_v1 = vadd.f32 %v8545_v21, %v2648_v54  ;;  %v2948_v2 = vadd.f32 %v8548_v57, %v2650_v34  ;;  %v2656_v41 = vmul.f32 %v8533_v49, %v1807_v63  ;;  %v2658_v9 = vmul.f32 %v8536_v50, %v2000_v40 }
 0x323   :  { %v3201_v3 = vmax.f32 %v2945_v28, 0.0  ;;  %v3203_v6 = vmax.f32 %v2947_v5, 0.0  ;;  %v2953_v14 = vadd.f32 %v8539_v52, %v2655_v12  ;;  %v2955_v15 = vadd.f32 %v8542_v53, %v2657_v38 }
 0x324   :  { %v3202_v26 = vmax.f32 %v2946_v1, 0.0  ;;  %v3204_v33 = vmax.f32 %v2948_v2, 0.0  ;;  %v2954_v18 = vadd.f32 %v8545_v21, %v2656_v41  ;;  %v2956_v19 = vadd.f32 %v8548_v57, %v2658_v9 }
 0x325   :  { %v3454_v58 = vmax.f32 %v3453_v20, %v3201_v3  ;;  %v3496_v7 = vmax.f32 %v3495_v59, %v3203_v6  ;;  %v3209_v17 = vmax.f32 %v2953_v14, 0.0  ;;  %v3211_v25 = vmax.f32 %v2955_v15, 0.0 }
 0x326   :  { %v3475_v23 = vmax.f32 %v3474_v60, %v3202_v26  ;;  %v3517_v24 = vmax.f32 %v3516_v42, %v3204_v33  ;;  %v3298_v27 = vrot.slane %v8753_v44, 2  ;;  %v8794_v29 = vmax.f32 %v8714_v11, %v3359_v30 }
 0x327   :  { %v3210_v37 = vmax.f32 %v2954_v18, 0.0  ;;  %v3212_v32 = vmax.f32 %v2956_v19, 0.0  ;;  %v3455_v45 = vmax.f32 %v3454_v58, %v3209_v17  ;;  %v3497_v0 = vmax.f32 %v3496_v7, %v3211_v25 }
 0x328   :  { %v2457_v55 = vsub.s32 6, %v8087_v8  ;;  %v2453_v43 = vsub.s32 5, %v8087_v8  ;;  %v8806_v11 = vrot.slane %v8801_v51, %v2449_v39  ;;  %v2461_v30 = vsub.s32 7, %v8087_v8 }
 0x329   :  { %v3476_v36 = vmax.f32 %v3475_v23, %v3210_v37  ;;  %v3518_v62 = vmax.f32 %v3517_v24, %v3212_v32  ;;  %v1811_v56 = vpop.f32.mrb[48].mxu1  ;;  %v2004_v46 = vpop.f32.mrb[80].mxu0  ;;  %v3319_v20 = vrot.slane %v8756_v35, 2  ;;  %v8820_v60 = vrot.slane %v8815_v10, %v2449_v39 }
 0x32a   :  { %v2663_v59 = vmul.f32 %v8527_v47, %v1811_v56  ;;  %v2665_v54 = vmul.f32 %v8530_v48, %v2004_v46  ;;  %v1813_v34 = vpop.f32.mrb[49].mxu1  ;;  %v2006_v61 = vpop.f32.mrb[81].mxu0  ;;  %v8823_v42 = vmax.f32 %v8753_v44, %v3298_v27  ;;  %v3361_v28 = vrot.slane %v8794_v29, 2 }
 0x32b   :  { %v2664_v5 = vmul.f32 %v8533_v49, %v1813_v34  ;;  %v2666_v63 = vmul.f32 %v8536_v50, %v2006_v61  ;;  %v1815_v40 = vpop.f32.mrb[50].mxu1  ;;  %v2008_v1 = vpop.f32.mrb[82].mxu0 }
 0x32c   :  { %v2961_v2 = vadd.f32 %v8539_v52, %v2663_v59  ;;  %v2963_v12 = vadd.f32 %v8542_v53, %v2665_v54  ;;  %v2671_v38 = vmul.f32 %v8527_v47, %v1815_v40  ;;  %v2673_v39 = vmul.f32 %v8530_v48, %v2008_v1  ;;  %v1817_v3 = vpop.f32.mrb[51].mxu1  ;;  %v2010_v6 = vpop.f32.mrb[83].mxu0 }
 0x32d   :  { %v2962_v44 = vadd.f32 %v8545_v21, %v2664_v5  ;;  %v2964_v41 = vadd.f32 %v8548_v57, %v2666_v63  ;;  %v2672_v9 = vmul.f32 %v8533_v49, %v1817_v3  ;;  %v2674_v26 = vmul.f32 %v8536_v50, %v2010_v6 }
 0x32e   :  { %v3217_v33 = vmax.f32 %v2961_v2, 0.0  ;;  %v3219_v14 = vmax.f32 %v2963_v12, 0.0  ;;  %v2969_v15 = vadd.f32 %v8539_v52, %v2671_v38  ;;  %v2971_v58 = vadd.f32 %v8542_v53, %v2673_v39 }
 0x32f   :  { %v3218_v7 = vmax.f32 %v2962_v44, 0.0  ;;  %v3220_v18 = vmax.f32 %v2964_v41, 0.0  ;;  %v2970_v19 = vadd.f32 %v8545_v21, %v2672_v9  ;;  %v2972_v23 = vadd.f32 %v8548_v57, %v2674_v26 }
 0x330   :  { %v3456_v24 = vmax.f32 %v3455_v45, %v3217_v33  ;;  %v3498_v17 = vmax.f32 %v3497_v0, %v3219_v14  ;;  %v3225_v25 = vmax.f32 %v2969_v15, 0.0  ;;  %v3227_v27 = vmax.f32 %v2971_v58, 0.0 }
 0x331   :  { %v3477_v37 = vmax.f32 %v3476_v36, %v3218_v7  ;;  %v3519_v32 = vmax.f32 %v3518_v62, %v3220_v18  ;;  %v3226_v56 = vmax.f32 %v2970_v19, 0.0  ;;  %v3228_v46 = vmax.f32 %v2972_v23, 0.0  ;;  %v1821_v59 = vpop.f32.mrb[52].mxu1  ;;  %v2014_v54 = vpop.f32.mrb[84].mxu0 }
 0x332   :  { %v3457_v34 = vmax.f32 %v3456_v24, %v3225_v25  ;;  %v3499_v61 = vmax.f32 %v3498_v17, %v3227_v27  ;;  %v2679_v5 = vmul.f32 %v8527_v47, %v1821_v59  ;;  %v2681_v63 = vmul.f32 %v8530_v48, %v2014_v54  ;;  %v1823_v40 = vpop.f32.mrb[53].mxu1  ;;  %v2016_v1 = vpop.f32.mrb[85].mxu0 }
 0x333   :  { %v3478_v2 = vmax.f32 %v3477_v37, %v3226_v56  ;;  %v3520_v12 = vmax.f32 %v3519_v32, %v3228_v46  ;;  %v2680_v45 = vmul.f32 %v8533_v49, %v1823_v40  ;;  %v2682_v0 = vmul.f32 %v8536_v50, %v2016_v1  ;;  %v1825_v36 = vpop.f32.mrb[54].mxu1  ;;  %v2018_v62 = vpop.f32.mrb[86].mxu0 }
 0x334   :  { %v2977_v38 = vadd.f32 %v8539_v52, %v2679_v5  ;;  %v2979_v39 = vadd.f32 %v8542_v53, %v2681_v63  ;;  %v2687_v3 = vmul.f32 %v8527_v47, %v1825_v36  ;;  %v2689_v6 = vmul.f32 %v8530_v48, %v2018_v62  ;;  %v1827_v44 = vpop.f32.mrb[55].mxu1  ;;  %v2020_v41 = vpop.f32.mrb[87].mxu0 }
 0x335   :  { %v2978_v9 = vadd.f32 %v8545_v21, %v2680_v45  ;;  %v2980_v26 = vadd.f32 %v8548_v57, %v2682_v0  ;;  %v2688_v33 = vmul.f32 %v8533_v49, %v1827_v44  ;;  %v2690_v14 = vmul.f32 %v8536_v50, %v2020_v41 }
 0x336   :  { %v3233_v15 = vmax.f32 %v2977_v38, 0.0  ;;  %v3235_v58 = vmax.f32 %v2979_v39, 0.0  ;;  %v2985_v7 = vadd.f32 %v8539_v52, %v2687_v3  ;;  %v2987_v18 = vadd.f32 %v8542_v53, %v2689_v6 }
 0x337   :  { %v3234_v19 = vmax.f32 %v2978_v9, 0.0  ;;  %v3236_v23 = vmax.f32 %v2980_v26, 0.0  ;;  %v2986_v24 = vadd.f32 %v8545_v21, %v2688_v33  ;;  %v2988_v17 = vadd.f32 %v8548_v57, %v2690_v14 }
 0x338   :  { %v3458_v25 = vmax.f32 %v3457_v34, %v3233_v15  ;;  %v3500_v27 = vmax.f32 %v3499_v61, %v3235_v58  ;;  %v3241_v37 = vmax.f32 %v2985_v7, 0.0  ;;  %v3243_v32 = vmax.f32 %v2987_v18, 0.0 }
 0x339   :  { %v3479_v56 = vmax.f32 %v3478_v2, %v3234_v19  ;;  %v3521_v46 = vmax.f32 %v3520_v12, %v3236_v23  ;;  %v3242_v59 = vmax.f32 %v2986_v24, 0.0  ;;  %v3244_v54 = vmax.f32 %v2988_v17, 0.0 }
 0x33a   :  { %v8859_v5 = vmax.f32 %v8756_v35, %v3319_v20  ;;  %v8864_v63 = vmax.f32 %v8794_v29, %v3361_v28  ;;  %v3459_v40 = vmax.f32 %v3458_v25, %v3241_v37  ;;  %v3501_v1 = vmax.f32 %v3500_v27, %v3243_v32 }
 0x33b   :  { %v3480_v34 = vmax.f32 %v3479_v56, %v3242_v59  ;;  %v3522_v61 = vmax.f32 %v3521_v46, %v3244_v54  ;;  %v8869_v2 = vrot.slane %v8801_v51, %v2457_v55  ;;  %v8874_v12 = vrot.slane %v8815_v10, %v2457_v55 }
 0x33c   :  { %v1831_v35 = vpop.f32.mrb[56].mxu1  ;;  %v2024_v20 = vpop.f32.mrb[88].mxu0  ;;  %v8879_v29 = vrot.slane %v8801_v51, %v2453_v43  ;;  %v8884_v28 = vrot.slane %v8815_v10, %v2453_v43  ;;  %v8889_v45 = vrot.slane %v8801_v51, %v2461_v30  ;;  %v8894_v55 = vrot.slane %v8815_v10, %v2461_v30 }
 0x33d   :  { %v3300_v0 = vrot.slane %v8823_v42, 1  ;;  %v3338_v36 = vrot.slane %v8710_v4, 4  ;;  %v2695_v62 = vmul.f32 %v8527_v47, %v1831_v35  ;;  %v2697_v38 = vmul.f32 %v8530_v48, %v2024_v20  ;;  %v1833_v43 = vpop.f32.mrb[57].mxu1  ;;  %v2026_v39 = vpop.f32.mrb[89].mxu0 }
 0x33e   :  { %v2696_v3 = vmul.f32 %v8533_v49, %v1833_v43  ;;  %v2698_v51 = vmul.f32 %v8536_v50, %v2026_v39  ;;  %v1835_v6 = vpop.f32.mrb[58].mxu1  ;;  %v2028_v44 = vpop.f32.mrb[90].mxu0  ;;  %v3321_v8 = vrot.slane %v8859_v5, 1  ;;  %v3363_v30 = vrot.slane %v8864_v63, 1 }
 0x33f   :  { %v2993_v10 = vadd.f32 %v8539_v52, %v2695_v62  ;;  %v2995_v41 = vadd.f32 %v8542_v53, %v2697_v38  ;;  %v2703_v9 = vmul.f32 %v8527_v47, %v1835_v6  ;;  %v2705_v26 = vmul.f32 %v8530_v48, %v2028_v44  ;;  %v1837_v33 = vpop.f32.mrb[59].mxu1  ;;  %v2030_v14 = vpop.f32.mrb[91].mxu0 }
 0x340   :  { %v2994_v15 = vadd.f32 %v8545_v21, %v2696_v3  ;;  %v2996_v58 = vadd.f32 %v8548_v57, %v2698_v51  ;;  %v2704_v7 = vmul.f32 %v8533_v49, %v1837_v33  ;;  %v2706_v18 = vmul.f32 %v8536_v50, %v2030_v14 }
 0x341   :  { %v3249_v19 = vmax.f32 %v2993_v10, 0.0  ;;  %v3251_v23 = vmax.f32 %v2995_v41, 0.0  ;;  %v3001_v24 = vadd.f32 %v8539_v52, %v2703_v9  ;;  %v3003_v17 = vadd.f32 %v8542_v53, %v2705_v26 }
 0x342   :  { %v3250_v25 = vmax.f32 %v2994_v15, 0.0  ;;  %v3252_v27 = vmax.f32 %v2996_v58, 0.0  ;;  %v3002_v37 = vadd.f32 %v8545_v21, %v2704_v7  ;;  %v3004_v32 = vadd.f32 %v8548_v57, %v2706_v18 }
 0x343   :  { %v3460_v56 = vmax.f32 %v3459_v40, %v3249_v19  ;;  %v3502_v46 = vmax.f32 %v3501_v1, %v3251_v23  ;;  %v3257_v59 = vmax.f32 %v3001_v24, 0.0  ;;  %v3259_v54 = vmax.f32 %v3003_v17, 0.0 }
 0x344   :  { %v3481_v35 = vmax.f32 %v3480_v34, %v3250_v25  ;;  %v3523_v20 = vmax.f32 %v3522_v61, %v3252_v27  ;;  %v3258_v62 = vmax.f32 %v3002_v37, 0.0  ;;  %v3260_v38 = vmax.f32 %v3004_v32, 0.0  ;;  %v1841_v43 = vpop.f32.mrb[60].mxu1  ;;  %v2034_v39 = vpop.f32.mrb[92].mxu0 }
 0x345   :  { %v3461_v3 = vmax.f32 %v3460_v56, %v3257_v59  ;;  %v3503_v51 = vmax.f32 %v3502_v46, %v3259_v54  ;;  %v2711_v6 = vmul.f32 %v8527_v47, %v1841_v43  ;;  %v2713_v44 = vmul.f32 %v8530_v48, %v2034_v39  ;;  %v1843_v10 = vpop.f32.mrb[61].mxu1  ;;  %v2036_v41 = vpop.f32.mrb[93].mxu0 }
 0x346   :  { %v3482_v9 = vmax.f32 %v3481_v35, %v3258_v62  ;;  %v3524_v26 = vmax.f32 %v3523_v20, %v3260_v38  ;;  %v2712_v40 = vmul.f32 %v8533_v49, %v1843_v10  ;;  %v2714_v1 = vmul.f32 %v8536_v50, %v2036_v41  ;;  %v1845_v34 = vpop.f32.mrb[62].mxu1  ;;  %v2038_v61 = vpop.f32.mrb[94].mxu0 }
 0x347   :  { %v3009_v33 = vadd.f32 %v8539_v52, %v2711_v6  ;;  %v3011_v14 = vadd.f32 %v8542_v53, %v2713_v44  ;;  %v2719_v15 = vmul.f32 %v8527_v47, %v1845_v34  ;;  %v2721_v58 = vmul.f32 %v8530_v48, %v2038_v61  ;;  %v1847_v7 = vpop.f32.mrb[63].mxu1  ;;  %v2040_v18 = vpop.f32.mrb[95].mxu0 }
 0x348   :  { %v3010_v19 = vadd.f32 %v8545_v21, %v2712_v40  ;;  %v3012_v23 = vadd.f32 %v8548_v57, %v2714_v1  ;;  %v2720_v24 = vmul.f32 %v8533_v49, %v1847_v7  ;;  %v2722_v17 = vmul.f32 %v8536_v50, %v2040_v18 }
 0x349   :  { %v3265_v25 = vmax.f32 %v3009_v33, 0.0  ;;  %v3267_v27 = vmax.f32 %v3011_v14, 0.0  ;;  %v3017_v37 = vadd.f32 %v8539_v52, %v2719_v15  ;;  %v3019_v32 = vadd.f32 %v8542_v53, %v2721_v58 }
 0x34a   :  { %v3266_v56 = vmax.f32 %v3010_v19, 0.0  ;;  %v3268_v47 = vmax.f32 %v3012_v23, 0.0  ;;  %v3018_v48 = vadd.f32 %v8545_v21, %v2720_v24  ;;  %v3020_v46 = vadd.f32 %v8548_v57, %v2722_v17 }
 0x34b   :  { %v3462_v59 = vmax.f32 %v3461_v3, %v3265_v25  ;;  %v3504_v54 = vmax.f32 %v3503_v51, %v3267_v27  ;;  %v3273_v35 = vmax.f32 %v3017_v37, 0.0  ;;  %v3275_v20 = vmax.f32 %v3019_v32, 0.0 }
 0x34c   :  { %v3483_v62 = vmax.f32 %v3482_v9, %v3266_v56  ;;  %v3525_v49 = vmax.f32 %v3524_v26, %v3268_v47  ;;  %v3274_v38 = vmax.f32 %v3018_v48, 0.0  ;;  %v3276_v50 = vmax.f32 %v3020_v46, 0.0  ;;  %v2077_v43 = vpop.f32.mrb[64].mxu1  ;;  %v2270_v39 = vpop.f32.mrb[96].mxu0 }
 0x34d   :  { %v3463_v6 = vmax.f32 %v3462_v59, %v3273_v35  ;;  %v3505_v52 = vmax.f32 %v3504_v54, %v3275_v20  ;;  %v2475_v53 = vmul.f32 %v8806_v11, %v2077_v43  ;;  %v2477_v44 = vmul.f32 %v8869_v2, %v2270_v39  ;;  %v2079_v10 = vpop.f32.mrb[65].mxu1  ;;  %v2272_v21 = vpop.f32.mrb[97].mxu0 }
 0x34e   :  { %v3484_v41 = vmax.f32 %v3483_v62, %v3274_v38  ;;  %v3526_v57 = vmax.f32 %v3525_v49, %v3276_v50  ;;  %v2476_v3 = vmul.f32 %v8879_v29, %v2079_v10  ;;  %v2478_v51 = vmul.f32 %v8889_v45, %v2272_v21  ;;  %v2081_v9 = vpop.f32.mrb[66].mxu1  ;;  %v2274_v26 = vpop.f32.mrb[98].mxu0 }
 0x34f   :  { %v8939_v40 = vmax.f32 %v8710_v4, %v3338_v36  ;;  %v3464_v1 = vrot.slane %v3463_v6, 4  ;;  %v3506_v34 = vrot.slane %v3505_v52, 4  ;;  %v2773_v61 = vadd.f32 %v8820_v60, %v2475_v53  ;;  %v2083_v33 = vpop.f32.mrb[67].mxu1  ;;  %v2276_v14 = vpop.f32.mrb[99].mxu0 }
 0x350   :  { %v8945_v15 = vmax.f32 %v8823_v42, %v3300_v0  ;;  %v3485_v58 = vrot.slane %v3484_v41, 4  ;;  %v3527_v7 = vrot.slane %v3526_v57, 4  ;;  %v2775_v18 = vadd.f32 %v8874_v12, %v2477_v44 }
 0x351   :  { %v3465_v19 = vmax.f32 %v3463_v6, %v3464_v1  ;;  %v2774_v23 = vadd.f32 %v8884_v28, %v2476_v3  ;;  %v8952_v4 = vmax.f32 %v8859_v5, %v3321_v8  ;;  %v8957_v36 = vmax.f32 %v8864_v63, %v3363_v30 }
 0x352   :  { %v8959_v24 = vmax.f32 %v3505_v52, %v3506_v34  ;;  %v3486_v42 = vmax.f32 %v3484_v41, %v3485_v58  ;;  %v3528_v0 = vmax.f32 %v3526_v57, %v3527_v7  ;;  %v2776_v17 = vadd.f32 %v8894_v55, %v2478_v51 }
 0x353   :  { %v3466_v25 = vrot.slane %v3465_v19, 2  ;;  %v3029_v27 = vmax.f32 %v2773_v61, 0.0  ;;  %v2483_v37 = vmul.f32 %v8806_v11, %v2081_v9  ;;  %v2485_v32 = vmul.f32 %v8869_v2, %v2274_v26 }
 0x354   :  { %v3487_v56 = vrot.slane %v3486_v42, 2  ;;  %v3031_v5 = vmax.f32 %v2775_v18, 0.0  ;;  %v2484_v8 = vmul.f32 %v8879_v29, %v2083_v33  ;;  %v2486_v47 = vmul.f32 %v8889_v45, %v2276_v14  ;;  %v2087_v63 = vpop.f32.mrb[68].mxu1  ;;  %v2280_v30 = vpop.f32.mrb[100].mxu0 }
 0x355   :  { %v3467_v48 = vmax.f32 %v3465_v19, %v3466_v25  ;;  %v3529_v46 = vrot.slane %v3528_v0, 2  ;;  %v2781_v59 = vadd.f32 %v8820_v60, %v2483_v37  ;;  %v2783_v54 = vadd.f32 %v8874_v12, %v2485_v32  ;;  %v2089_v35 = vpop.f32.mrb[69].mxu1  ;;  %v2282_v20 = vpop.f32.mrb[101].mxu0 }
 0x356   :  { %v3030_v62 = vmax.f32 %v2774_v23, 0.0  ;;  %v3032_v49 = vmax.f32 %v2776_v17, 0.0  ;;  %v2782_v38 = vadd.f32 %v8884_v28, %v2484_v8  ;;  %v2784_v50 = vadd.f32 %v8894_v55, %v2486_v47  ;;  %v2091_v43 = vpop.f32.mrb[70].mxu1  ;;  %v2284_v39 = vpop.f32.mrb[102].mxu0 }
 0x357   :  { %v3468_v6 = vrot.slane %v3467_v48, 1  ;;  %v8970_v52 = vmax.f32 %v3486_v42, %v3487_v56  ;;  %v3037_v53 = vmax.f32 %v2781_v59, 0.0  ;;  %v3039_v44 = vmax.f32 %v2783_v54, 0.0  ;;  %v2093_v10 = vpop.f32.mrb[71].mxu1  ;;  %v2286_v21 = vpop.f32.mrb[103].mxu0 }
 0x358   :  { %v3038_v41 = vmax.f32 %v2782_v38, 0.0  ;;  %v3040_v57 = vmax.f32 %v2784_v50, 0.0  ;;  %v2491_v3 = vmul.f32 %v8806_v11, %v2087_v63  ;;  %v2493_v51 = vmul.f32 %v8869_v2, %v2280_v30 }
 0x359   :  { %v8974_v9 = vmax.f32 %v3467_v48, %v3468_v6  ;;  %v8976_v26 = vmax.f32 %v3528_v0, %v3529_v46  ;;  %v3365_v1 = vmax.f32 %v3029_v27, %v3037_v53  ;;  %v3407_v34 = vmax.f32 %v3031_v5, %v3039_v44 }
 0x35a   :  { %v3386_v61 = vmax.f32 %v3030_v62, %v3038_v41  ;;  %v3428_v33 = vmax.f32 %v3032_v49, %v3040_v57  ;;  %v2789_v14 = vadd.f32 %v8820_v60, %v2491_v3  ;;  %v2791_v58 = vadd.f32 %v8874_v12, %v2493_v51 }
 0x35b   :  { %v2492_v7 = vmul.f32 %v8879_v29, %v2089_v35  ;;  %v2494_v18 = vmul.f32 %v8889_v45, %v2282_v20  ;;  %v2499_v19 = vmul.f32 %v8806_v11, %v2091_v43  ;;  %v2501_v23 = vmul.f32 %v8869_v2, %v2284_v39 }
 0x35c   :  { %v3045_v42 = vmax.f32 %v2789_v14, 0.0  ;;  %v3047_v17 = vmax.f32 %v2791_v58, 0.0  ;;  %v2500_v0 = vmul.f32 %v8879_v29, %v2093_v10  ;;  %v2502_v25 = vmul.f32 %v8889_v45, %v2286_v21  ;;  %v2097_v27 = vpop.f32.mrb[72].mxu1  ;;  %v2290_v37 = vpop.f32.mrb[104].mxu0 }
 0x35d   :  { %v2790_v32 = vadd.f32 %v8884_v28, %v2492_v7  ;;  %v2792_v56 = vadd.f32 %v8894_v55, %v2494_v18  ;;  %v2797_v5 = vadd.f32 %v8820_v60, %v2499_v19  ;;  %v2799_v8 = vadd.f32 %v8874_v12, %v2501_v23  ;;  %v2099_v47 = vpop.f32.mrb[73].mxu1  ;;  %v2292_v63 = vpop.f32.mrb[105].mxu0 }
 0x35e   :  { %v3366_v30 = vmax.f32 %v3365_v1, %v3045_v42  ;;  %v3408_v48 = vmax.f32 %v3407_v34, %v3047_v17  ;;  %v2798_v46 = vadd.f32 %v8884_v28, %v2500_v0  ;;  %v2800_v59 = vadd.f32 %v8894_v55, %v2502_v25  ;;  %v2101_v54 = vpop.f32.mrb[74].mxu1  ;;  %v2294_v35 = vpop.f32.mrb[106].mxu0 }
 0x35f   :  { %v3046_v20 = vmax.f32 %v2790_v32, 0.0  ;;  %v3048_v62 = vmax.f32 %v2792_v56, 0.0  ;;  %v3053_v49 = vmax.f32 %v2797_v5, 0.0  ;;  %v3055_v38 = vmax.f32 %v2799_v8, 0.0  ;;  %v2103_v50 = vpop.f32.mrb[75].mxu1  ;;  %v2296_v43 = vpop.f32.mrb[107].mxu0 }
 0x360   :  { %v3054_v39 = vmax.f32 %v2798_v46, 0.0  ;;  %v3056_v6 = vmax.f32 %v2800_v59, 0.0  ;;  %v2507_v53 = vmul.f32 %v8806_v11, %v2097_v27  ;;  %v2509_v44 = vmul.f32 %v8869_v2, %v2290_v37 }
 0x361   :  { %v3387_v10 = vmax.f32 %v3386_v61, %v3046_v20  ;;  %v3429_v21 = vmax.f32 %v3428_v33, %v3048_v62  ;;  %v3367_v41 = vmax.f32 %v3366_v30, %v3053_v49  ;;  %v3409_v57 = vmax.f32 %v3408_v48, %v3055_v38 }
 0x362   :  { %v2805_v3 = vadd.f32 %v8820_v60, %v2507_v53  ;;  %v2807_v51 = vadd.f32 %v8874_v12, %v2509_v44  ;;  %v2508_v1 = vmul.f32 %v8879_v29, %v2099_v47  ;;  %v2510_v34 = vmul.f32 %v8889_v45, %v2292_v63 }
 0x363   :  { %v3388_v14 = vmax.f32 %v3387_v10, %v3054_v39  ;;  %v3430_v58 = vmax.f32 %v3429_v21, %v3056_v6  ;;  %v2515_v7 = vmul.f32 %v8806_v11, %v2101_v54  ;;  %v2517_v18 = vmul.f32 %v8869_v2, %v2294_v35 }
 0x364   :  { %v3061_v19 = vmax.f32 %v2805_v3, 0.0  ;;  %v3063_v23 = vmax.f32 %v2807_v51, 0.0  ;;  %v2806_v61 = vadd.f32 %v8884_v28, %v2508_v1  ;;  %v2808_v33 = vadd.f32 %v8894_v55, %v2510_v34  ;;  %v2107_v42 = vpop.f32.mrb[76].mxu1  ;;  %v2300_v17 = vpop.f32.mrb[108].mxu0 }
 0x365   :  { %v2813_v0 = vadd.f32 %v8820_v60, %v2515_v7  ;;  %v2815_v25 = vadd.f32 %v8874_v12, %v2517_v18  ;;  %v2516_v27 = vmul.f32 %v8879_v29, %v2103_v50  ;;  %v2518_v37 = vmul.f32 %v8889_v45, %v2296_v43  ;;  %v2109_v32 = vpop.f32.mrb[77].mxu1  ;;  %v2302_v56 = vpop.f32.mrb[109].mxu0 }
 0x366   :  { %v3368_v5 = vmax.f32 %v3367_v41, %v3061_v19  ;;  %v3410_v8 = vmax.f32 %v3409_v57, %v3063_v23  ;;  %v3062_v47 = vmax.f32 %v2806_v61, 0.0  ;;  %v3064_v63 = vmax.f32 %v2808_v33, 0.0  ;;  %v2111_v30 = vpop.f32.mrb[78].mxu1  ;;  %v2304_v48 = vpop.f32.mrb[110].mxu0  ;;  %v7259_v19 = vld [vmem:[#allocation8 + $0x200] ss:$16 sps:$4 sm:$0xff]  }
 0x367   :  { %v3069_v46 = vmax.f32 %v2813_v0, 0.0  ;;  %v3071_v59 = vmax.f32 %v2815_v25, 0.0  ;;  %v2814_v54 = vadd.f32 %v8884_v28, %v2516_v27  ;;  %v2816_v35 = vadd.f32 %v8894_v55, %v2518_v37  ;;  %v2113_v20 = vpop.f32.mrb[79].mxu1  ;;  %v2306_v62 = vpop.f32.mrb[111].mxu0  ;;  %v7262_v23 = vld [vmem:[#allocation8 + $0x208] ss:$16 sps:$4 sm:$0xff]  }
 0x368   :  { %v3389_v49 = vmax.f32 %v3388_v14, %v3062_v47  ;;  %v3431_v38 = vmax.f32 %v3430_v58, %v3064_v63  ;;  %v3489_v50 = vrot.slane %v8970_v52, 1  ;;  %v3618_v43 = vsel %vm3617_vm1, %v8945_v15, %v8974_v9 }
 0x369   :  { %v3369_v39 = vmax.f32 %v3368_v5, %v3069_v46  ;;  %v3411_v6 = vmax.f32 %v3410_v8, %v3071_v59  ;;  %v3070_v53 = vmax.f32 %v2814_v54, 0.0  ;;  %v3072_v44 = vmax.f32 %v2816_v35, 0.0  ;;  %v7270_v8 = vld [vmem:[#allocation8 + $0x22c] ss:$16 sps:$4 sm:$0xff]  }
 0x36a   :  { %v3490_v10 = vmax.f32 %v8970_v52, %v3489_v50  ;;  %v3626_v21 = vpack.c.bf16 %v3618_v43, %v3618_v43  ;;  %v3531_v41 = vrot.slane %v8976_v26, 1  ;;  %v2523_v57 = vmul.f32 %v8806_v11, %v2107_v42 }
 0x36b   :  { %v3390_v3 = vmax.f32 %v3389_v49, %v3070_v53  ;;  %v3432_v51 = vmax.f32 %v3431_v38, %v3072_v44  ;;  %v2525_v1 = vmul.f32 %v8869_v2, %v2300_v17  ;;  %v2524_v34 = vmul.f32 %v8879_v29, %v2109_v32  ;;  %v7265_v49 = vld [vmem:[#allocation8 + $0x220] ss:$16 sps:$4 sm:$0xff]   ;;  %v7268_v38 = vld [vmem:[#allocation8 + $0x228] ss:$16 sps:$4 sm:$0xff]  }
 0x36c   :  { %v3619_v15 = vsel %vm3617_vm1, %v8952_v4, %v3490_v10  ;;  %v3532_v9 = vmax.f32 %v8976_v26, %v3531_v41  ;;  %v2821_v14 = vadd.f32 %v8820_v60, %v2523_v57  ;;  %v2526_v52 = vmul.f32 %v8889_v45, %v2302_v56  ;;  %v2117_v58 = vpop.f32.mrb[80].mxu1  ;;  %v2310_v7 = vpop.f32.mrb[112].mxu0  ;;  %v7267_v26 = vld [vmem:[#allocation8 + $0x224] ss:$16 sps:$4 sm:$0xff]   ;;  %v7276_v57 = vld [vmem:[#allocation8 + $0x24c] ss:$16 sps:$4 sm:$0xff]  }
 0x36d   :  { %v3627_v18 = vpack.c.bf16 %v3619_v15, %v3619_v15  ;;  %v2823_v61 = vadd.f32 %v8874_v12, %v2525_v1  ;;  %v2822_v33 = vadd.f32 %v8884_v28, %v2524_v34  ;;  %v2531_v42 = vmul.f32 %v8806_v11, %v2111_v30  ;;  %v2119_v17 = vpop.f32.mrb[81].mxu1  ;;  %v2312_v0 = vpop.f32.mrb[113].mxu0 }
 0x36e   :  { %v3621_v4 = vsel %vm3617_vm1, %v8957_v36, %v3532_v9  ;;  %v3077_v25 = vmax.f32 %v2821_v14, 0.0  ;;  %v2824_v27 = vadd.f32 %v8894_v55, %v2526_v52  ;;  %v2533_v37 = vmul.f32 %v8869_v2, %v2304_v48  ;;  %v2121_v32 = vpop.f32.mrb[82].mxu1  ;;  %v2314_v56 = vpop.f32.mrb[114].mxu0 }
 0x36f   :  { %5202 = vmatprep.mubr.bf16.mxu1 %v3627_v18  ;;  %5366 = vmatprep.mubr.bf16.mxu0 %v3627_v18  ;;  %v3629_v5 = vpack.c.bf16 %v3621_v4, %v3621_v4  ;;  %v3079_v47 = vmax.f32 %v2823_v61, 0.0  ;;  %v3078_v63 = vmax.f32 %v2822_v33, 0.0  ;;  %v2829_v30 = vadd.f32 %v8820_v60, %v2531_v42  ;;  %v9030_v46 = vpop.f32.mrb[83].mxu1  ;;  %v9032_v59 = vpop.f32.mrb[115].mxu0 }
 0x370   :  { %5203 = vmatmul.mubr.bf16.vlgmr.msra.gmra.mrb[128].mxu1 %v3626_v21  ;;  %5367 = vmatmul.mubr.bf16.vlgmr.msra.gmra.mrb[160].mxu0 %v3626_v21  ;;  %v3370_v36 = vmax.f32 %v3369_v39, %v3077_v25  ;;  %v3080_v54 = vmax.f32 %v2824_v27, 0.0  ;;  %v2831_v48 = vadd.f32 %v8874_v12, %v2533_v37  ;;  %v2532_v35 = vmul.f32 %v8879_v29, %v2113_v20  ;;  %v7273_v21 = vld [vmem:[#allocation8 + $0x244] ss:$16 sps:$4 sm:$0xff]   ;;  %v7282_v25 = vld [vmem:[#allocation8 + $0x26c] ss:$16 sps:$4 sm:$0xff]  }
 0x371   :  { %5212 = vmatpush1.bf16.msra.mxu1 %v7259_v19  ;;  %5376 = vmatpush1.bf16.msra.mxu0 %v7262_v23  ;;  %v3412_v50 = vmax.f32 %v3411_v6, %v3079_v47  ;;  %v3391_v43 = vmax.f32 %v3390_v3, %v3078_v63  ;;  %v3085_v53 = vmax.f32 %v2829_v30, 0.0  ;;  %v2534_v44 = vmul.f32 %v8889_v45, %v2306_v62  ;;  %v7271_v3 = vld [vmem:[#allocation8 + $0x240] ss:$16 sps:$4 sm:$0xff]   ;;  %v7279_v23 = vld [vmem:[#allocation8 + $0x264] ss:$16 sps:$4 sm:$0xff]  }
 0x372   :  { %5243 = vmatprep.mubr.bf16.mxu1 %v3629_v5  ;;  %5407 = vmatprep.mubr.bf16.mxu0 %v3629_v5  ;;  %v3433_v10 = vmax.f32 %v3432_v51, %v3080_v54  ;;  %v3087_v41 = vmax.f32 %v2831_v48, 0.0  ;;  %v2830_v39 = vadd.f32 %v8884_v28, %v2532_v35  ;;  %v2539_v1 = vmul.f32 %v8806_v11, %v2117_v58  ;;  %v7274_v51 = vld [vmem:[#allocation8 + $0x248] ss:$16 sps:$4 sm:$0xff]  }
 0x373   :  { %v3340_v20 = vrot.slane %v8939_v40, 2  ;;  %5213 = vmatprep.subr.bf16.mxu1 %v7267_v26  ;;  %5377 = vmatprep.subr.bf16.mxu0 %v7270_v8  ;;  %v3371_v34 = vmax.f32 %v3370_v36, %v3085_v53  ;;  %v2832_v6 = vadd.f32 %v8894_v55, %v2534_v44  ;;  %v2541_v62 = vmul.f32 %v8869_v2, %v2310_v7 }
 0x374   :  { %v3413_v15 = vmax.f32 %v3412_v50, %v3087_v41  ;;  %v3086_v9 = vmax.f32 %v2830_v39, 0.0  ;;  %v2837_v14 = vadd.f32 %v8820_v60, %v2539_v1  ;;  %v2540_v52 = vmul.f32 %v8879_v29, %v2119_v17  ;;  %v2127_v18 = vpop.f32.mrb[84].mxu1  ;;  %v2320_v19 = vpop.f32.mrb[116].mxu0 }
 0x375   :  { %5214 = vmatpush1.bf16.msra.mxu1 %v7265_v49  ;;  %5378 = vmatpush1.bf16.msra.mxu0 %v7268_v38  ;;  %v3088_v58 = vmax.f32 %v2832_v6, 0.0  ;;  %v2839_v61 = vadd.f32 %v8874_v12, %v2541_v62  ;;  %v2542_v33 = vmul.f32 %v8889_v45, %v2312_v0  ;;  %v2547_v42 = vmul.f32 %v8806_v11, %v2121_v32  ;;  %v2129_v7 = vpop.f32.mrb[85].mxu1  ;;  %v2322_v4 = vpop.f32.mrb[117].mxu0  ;;  %v7280_v38 = vld [vmem:[#allocation8 + $0x268] ss:$16 sps:$4 sm:$0xff]  }
 0x376   :  { %v3392_v26 = vmax.f32 %v3391_v43, %v3086_v9  ;;  %5215 = vmatprep.subr.bf16.mxu1 %v7273_v21  ;;  %5379 = vmatprep.subr.bf16.mxu0 %v7276_v57  ;;  %v3093_v27 = vmax.f32 %v2837_v14, 0.0  ;;  %v2838_v17 = vadd.f32 %v8884_v28, %v2540_v52  ;;  %v2549_v37 = vmul.f32 %v8869_v2, %v2314_v56  ;;  %v2131_v5 = vpop.f32.mrb[86].mxu1  ;;  %v2324_v8 = vpop.f32.mrb[118].mxu0  ;;  %v7277_v56 = vld [vmem:[#allocation8 + $0x260] ss:$16 sps:$4 sm:$0xff]  }
 0x377   :  { %v3434_v47 = vmax.f32 %v3433_v10, %v3088_v58  ;;  %v3095_v63 = vmax.f32 %v2839_v61, 0.0  ;;  %v2840_v30 = vadd.f32 %v8894_v55, %v2542_v33  ;;  %v2845_v0 = vadd.f32 %v8820_v60, %v2547_v42  ;;  %v2133_v32 = vpop.f32.mrb[87].mxu1  ;;  %v9051_v36 = vpop.f32.mrb[119].mxu0  ;;  %v7285_v21 = vld [vmem:[#allocation8 + $0x284] ss:$16 sps:$4 sm:$0xff]  }
 0x378   :  { %v3372_v54 = vmax.f32 %v3371_v34, %v3093_v27  ;;  %v3094_v48 = vmax.f32 %v2838_v17, 0.0  ;;  %v2847_v35 = vadd.f32 %v8874_v12, %v2549_v37  ;;  %v2548_v49 = vmul.f32 %v8879_v29, %v9030_v46  ;;  %v7288_v57 = vld [vmem:[#allocation8 + $0x28c] ss:$16 sps:$4 sm:$0xff]  }
 0x379   :  { %5216 = vmatpush1.bf16.msra.mxu1 %v7271_v3  ;;  %5380 = vmatpush1.bf16.msra.mxu0 %v7274_v51  ;;  %v3414_v50 = vmax.f32 %v3413_v15, %v3095_v63  ;;  %v3096_v43 = vmax.f32 %v2840_v30, 0.0  ;;  %v3101_v53 = vmax.f32 %v2845_v0, 0.0  ;;  %v2550_v44 = vmul.f32 %v8889_v45, %v9032_v59  ;;  %v7283_v3 = vld [vmem:[#allocation8 + $0x280] ss:$16 sps:$4 sm:$0xff]   ;;  %v7286_v59 = vld [vmem:[#allocation8 + $0x288] ss:$16 sps:$4 sm:$0xff]  }
 0x37a   :  { %5217 = vmatprep.subr.bf16.mxu1 %v7279_v23  ;;  %5381 = vmatprep.subr.bf16.mxu0 %v7282_v25  ;;  %v3393_v10 = vmax.f32 %v3392_v26, %v3094_v48  ;;  %v3103_v41 = vmax.f32 %v2847_v35, 0.0  ;;  %v2846_v39 = vadd.f32 %v8884_v28, %v2548_v49  ;;  %v2555_v46 = vmul.f32 %v8806_v11, %v2127_v18  ;;  %v7291_v18 = vld [vmem:[#allocation8 + $0x2a4] ss:$16 sps:$4 sm:$0xff]   ;;  %v7294_v27 = vld [vmem:[#allocation8 + $0x2ac] ss:$16 sps:$4 sm:$0xff]  }
 0x37b   :  { %v3435_v1 = vmax.f32 %v3434_v47, %v3096_v43  ;;  %v3373_v34 = vmax.f32 %v3372_v54, %v3101_v53  ;;  %v2848_v6 = vadd.f32 %v8894_v55, %v2550_v44  ;;  %v2557_v62 = vmul.f32 %v8869_v2, %v2320_v19 }
 0x37c   :  { %v3415_v15 = vmax.f32 %v3414_v50, %v3103_v41  ;;  %v3102_v9 = vmax.f32 %v2846_v39, 0.0  ;;  %v2853_v51 = vadd.f32 %v8820_v60, %v2555_v46  ;;  %v2556_v14 = vmul.f32 %v8879_v29, %v2129_v7  ;;  %v2137_v52 = vpop.f32.mrb[88].mxu1  ;;  %v2330_v58 = vpop.f32.mrb[120].mxu0  ;;  %v7292_v50 = vld [vmem:[#allocation8 + $0x2a8] ss:$16 sps:$4 sm:$0xff]  }
 0x37d   :  { %5218 = vmatpush1.bf16.msra.mxu1 %v7277_v56  ;;  %5382 = vmatpush1.bf16.msra.mxu0 %v7280_v38  ;;  %v3104_v23 = vmax.f32 %v2848_v6, 0.0  ;;  %v2855_v61 = vadd.f32 %v8874_v12, %v2557_v62  ;;  %v2558_v33 = vmul.f32 %v8889_v45, %v2322_v4  ;;  %v2563_v42 = vmul.f32 %v8806_v11, %v2131_v5  ;;  %v2139_v19 = vpop.f32.mrb[89].mxu1  ;;  %v2332_v26 = vpop.f32.mrb[121].mxu0  ;;  %v7300_v46 = vld [vmem:[#allocation8 + $0x2cc] ss:$16 sps:$4 sm:$0xff]  }
 0x37e   :  { %v3394_v25 = vmax.f32 %v3393_v10, %v3102_v9  ;;  %5219 = vmatprep.subr.bf16.mxu1 %v7285_v21  ;;  %5383 = vmatprep.subr.bf16.mxu0 %v7288_v57  ;;  %v3109_v17 = vmax.f32 %v2853_v51, 0.0  ;;  %v2854_v7 = vadd.f32 %v8884_v28, %v2556_v14  ;;  %v2565_v37 = vmul.f32 %v8869_v2, %v2324_v8  ;;  %v2141_v47 = vpop.f32.mrb[90].mxu1  ;;  %v2334_v63 = vpop.f32.mrb[122].mxu0  ;;  %v7289_v8 = vld [vmem:[#allocation8 + $0x2a0] ss:$16 sps:$4 sm:$0xff]  }
 0x37f   :  { %v3436_v30 = vmax.f32 %v3435_v1, %v3104_v23  ;;  %v3111_v0 = vmax.f32 %v2855_v61, 0.0  ;;  %v2856_v54 = vadd.f32 %v8894_v55, %v2558_v33  ;;  %v2861_v4 = vadd.f32 %v8820_v60, %v2563_v42  ;;  %v2143_v5 = vpop.f32.mrb[91].mxu1  ;;  %v9071_v48 = vpop.f32.mrb[123].mxu0  ;;  %v7297_v57 = vld [vmem:[#allocation8 + $0x2c4] ss:$16 sps:$4 sm:$0xff]  }
 0x380   :  { %v3374_v35 = vmax.f32 %v3373_v34, %v3109_v17  ;;  %v3110_v49 = vmax.f32 %v2854_v7, 0.0  ;;  %v2863_v56 = vadd.f32 %v8874_v12, %v2565_v37  ;;  %v2564_v38 = vmul.f32 %v8879_v29, %v2133_v32  ;;  %v7306_v17 = vld [vmem:[#allocation8 + $0x2ec] ss:$16 sps:$4 sm:$0xff]  }
 0x381   :  { %5220 = vmatpush1.bf16.msra.mxu1 %v7283_v3  ;;  %5384 = vmatpush1.bf16.msra.mxu0 %v7286_v59  ;;  %v3416_v43 = vmax.f32 %v3415_v15, %v3111_v0  ;;  %v3112_v53 = vmax.f32 %v2856_v54, 0.0  ;;  %v3117_v44 = vmax.f32 %v2861_v4, 0.0  ;;  %v2566_v10 = vmul.f32 %v8889_v45, %v9051_v36  ;;  %v7295_v3 = vld [vmem:[#allocation8 + $0x2c0] ss:$16 sps:$4 sm:$0xff]   ;;  %v7298_v36 = vld [vmem:[#allocation8 + $0x2c8] ss:$16 sps:$4 sm:$0xff]  }
 0x382   :  { %5221 = vmatprep.subr.bf16.mxu1 %v7291_v18  ;;  %5385 = vmatprep.subr.bf16.mxu0 %v7294_v27  ;;  %v3395_v41 = vmax.f32 %v3394_v25, %v3110_v49  ;;  %v3119_v39 = vmax.f32 %v2863_v56, 0.0  ;;  %v2862_v21 = vadd.f32 %v8884_v28, %v2564_v38  ;;  %v2571_v32 = vmul.f32 %v8806_v11, %v2137_v52  ;;  %v7303_v52 = vld [vmem:[#allocation8 + $0x2e4] ss:$16 sps:$4 sm:$0xff]  }
 0x383   :  { %v3437_v1 = vmax.f32 %v3436_v30, %v3112_v53  ;;  %v3375_v34 = vmax.f32 %v3374_v35, %v3117_v44  ;;  %v2864_v6 = vadd.f32 %v8894_v55, %v2566_v10  ;;  %v2573_v62 = vmul.f32 %v8869_v2, %v2330_v58 }
 0x384   :  { %v3417_v15 = vmax.f32 %v3416_v43, %v3119_v39  ;;  %v3118_v9 = vmax.f32 %v2862_v21, 0.0  ;;  %v2869_v59 = vadd.f32 %v8820_v60, %v2571_v32  ;;  %v2572_v51 = vmul.f32 %v8879_v29, %v2139_v19  ;;  %v2147_v14 = vpop.f32.mrb[92].mxu1  ;;  %v2340_v23 = vpop.f32.mrb[124].mxu0  ;;  %v7304_v43 = vld [vmem:[#allocation8 + $0x2e8] ss:$16 sps:$4 sm:$0xff]  }
 0x385   :  { %5222 = vmatpush1.bf16.msra.mxu1 %v7289_v8  ;;  %5386 = vmatpush1.bf16.msra.mxu0 %v7292_v50  ;;  %v3120_v18 = vmax.f32 %v2864_v6, 0.0  ;;  %v2871_v61 = vadd.f32 %v8874_v12, %v2573_v62  ;;  %v2574_v33 = vmul.f32 %v8889_v45, %v2332_v26  ;;  %v2579_v42 = vmul.f32 %v8806_v11, %v2141_v47  ;;  %v2149_v58 = vpop.f32.mrb[93].mxu1  ;;  %v2342_v25 = vpop.f32.mrb[125].mxu0  ;;  %v7312_v32 = vld [vmem:[#allocation8 + $0x30c] ss:$16 sps:$4 sm:$0xff]  }
 0x386   :  { %v3396_v27 = vmax.f32 %v3395_v41, %v3118_v9  ;;  %5223 = vmatprep.subr.bf16.mxu1 %v7297_v57  ;;  %5387 = vmatprep.subr.bf16.mxu0 %v7300_v46  ;;  %v3125_v7 = vmax.f32 %v2869_v59, 0.0  ;;  %v2870_v19 = vadd.f32 %v8884_v28, %v2572_v51  ;;  %v2581_v37 = vmul.f32 %v8869_v2, %v2334_v63  ;;  %v2151_v30 = vpop.f32.mrb[94].mxu1  ;;  %v2344_v0 = vpop.f32.mrb[126].mxu0  ;;  %v7301_v63 = vld [vmem:[#allocation8 + $0x2e0] ss:$16 sps:$4 sm:$0xff]  }
 0x387   :  { %v3438_v54 = vmax.f32 %v3437_v1, %v3120_v18  ;;  %v3127_v4 = vmax.f32 %v2871_v61, 0.0  ;;  %v2872_v35 = vadd.f32 %v8894_v55, %v2574_v33  ;;  %v2877_v26 = vadd.f32 %v8820_v60, %v2579_v42  ;;  %v2153_v47 = vpop.f32.mrb[95].mxu1  ;;  %v9090_v49 = vpop.f32.mrb[127].mxu0  ;;  %v7309_v46 = vld [vmem:[#allocation8 + $0x304] ss:$16 sps:$4 sm:$0xff]  }
 0x388   :  { %v3376_v56 = vmax.f32 %v3375_v34, %v3125_v7  ;;  %v3126_v38 = vmax.f32 %v2870_v19, 0.0  ;;  %v2879_v8 = vadd.f32 %v8874_v12, %v2581_v37  ;;  %v2580_v50 = vmul.f32 %v8879_v29, %v2143_v5  ;;  %v7318_v7 = vld [vmem:[#allocation8 + $0x32c] ss:$16 sps:$4 sm:$0xff]  }
 0x389   :  { %5224 = vmatpush1.bf16.msra.mxu1 %v7295_v3  ;;  %5388 = vmatpush1.bf16.msra.mxu0 %v7298_v36  ;;  %v3418_v53 = vmax.f32 %v3417_v15, %v3127_v4  ;;  %v3128_v44 = vmax.f32 %v2872_v35, 0.0  ;;  %v3133_v10 = vmax.f32 %v2877_v26, 0.0  ;;  %v2582_v41 = vmul.f32 %v8889_v45, %v9071_v48  ;;  %v7307_v3 = vld [vmem:[#allocation8 + $0x300] ss:$16 sps:$4 sm:$0xff]   ;;  %v7310_v48 = vld [vmem:[#allocation8 + $0x308] ss:$16 sps:$4 sm:$0xff]  }
 0x38a   :  { %5225 = vmatprep.subr.bf16.mxu1 %v7303_v52  ;;  %5389 = vmatprep.subr.bf16.mxu0 %v7306_v17  ;;  %v3397_v39 = vmax.f32 %v3396_v27, %v3126_v38  ;;  %v3135_v21 = vmax.f32 %v2879_v8, 0.0  ;;  %v2878_v57 = vadd.f32 %v8884_v28, %v2580_v50  ;;  %v2587_v5 = vmul.f32 %v8806_v11, %v2147_v14  ;;  %v7315_v14 = vld [vmem:[#allocation8 + $0x324] ss:$16 sps:$4 sm:$0xff]  }
 0x38b   :  { %v3439_v1 = vmax.f32 %v3438_v54, %v3128_v44  ;;  %v3377_v34 = vmax.f32 %v3376_v56, %v3133_v10  ;;  %v2880_v6 = vadd.f32 %v8894_v55, %v2582_v41  ;;  %v2589_v62 = vmul.f32 %v8869_v2, %v2340_v23 }
 0x38c   :  { %v3419_v15 = vmax.f32 %v3418_v53, %v3135_v21  ;;  %v3134_v9 = vmax.f32 %v2878_v57, 0.0  ;;  %v2885_v36 = vadd.f32 %v8820_v60, %v2587_v5  ;;  %v2588_v59 = vmul.f32 %v8879_v29, %v2149_v58  ;;  %v2157_v51 = vpop.f32.mrb[96].mxu1  ;;  %v2350_v18 = vpop.f32.mrb[128].mxu0  ;;  %v7316_v53 = vld [vmem:[#allocation8 + $0x328] ss:$16 sps:$4 sm:$0xff]  }
 0x38d   :  { %5226 = vmatpush1.bf16.msra.mxu1 %v7301_v63  ;;  %5390 = vmatpush1.bf16.msra.mxu0 %v7304_v43  ;;  %v3136_v52 = vmax.f32 %v2880_v6, 0.0  ;;  %v2887_v61 = vadd.f32 %v8874_v12, %v2589_v62  ;;  %v2590_v33 = vmul.f32 %v8889_v45, %v2342_v25  ;;  %v2595_v42 = vmul.f32 %v8806_v11, %v2151_v30  ;;  %v2159_v23 = vpop.f32.mrb[97].mxu1  ;;  %v2352_v27 = vpop.f32.mrb[129].mxu0  ;;  %v7321_v5 = vld [vmem:[#allocation8 + $0x344] ss:$16 sps:$4 sm:$0xff]  }
 0x38e   :  { %v3398_v17 = vmax.f32 %v3397_v39, %v3134_v9  ;;  %5227 = vmatprep.subr.bf16.mxu1 %v7309_v46  ;;  %5391 = vmatprep.subr.bf16.mxu0 %v7312_v32  ;;  %v3141_v19 = vmax.f32 %v2885_v36, 0.0  ;;  %v2886_v58 = vadd.f32 %v8884_v28, %v2588_v59  ;;  %v2597_v37 = vmul.f32 %v8869_v2, %v2344_v0  ;;  %v2161_v54 = vpop.f32.mrb[98].mxu1  ;;  %v9107_v4 = vpop.f32.mrb[130].mxu0  ;;  %v7313_v0 = vld [vmem:[#allocation8 + $0x320] ss:$16 sps:$4 sm:$0xff]  }
 0x38f   :  { %v3440_v35 = vmax.f32 %v3439_v1, %v3136_v52  ;;  %v3143_v26 = vmax.f32 %v2887_v61, 0.0  ;;  %v2888_v25 = vadd.f32 %v8894_v55, %v2590_v33  ;;  %v2893_v30 = vadd.f32 %v8820_v60, %v2595_v42  ;;  %v9111_v56 = vpop.f32.mrb[99].mxu1  ;;  %v9113_v38 = vpop.f32.mrb[131].mxu0  ;;  %v7322_v59 = vld [vmem:[#allocation8 + $0x348] ss:$16 sps:$4 sm:$0xff]  }
 0x390   :  { %v3378_v8 = vmax.f32 %v3377_v34, %v3141_v19  ;;  %v3142_v50 = vmax.f32 %v2886_v58, 0.0  ;;  %v2895_v63 = vadd.f32 %v8874_v12, %v2597_v37  ;;  %v2596_v43 = vmul.f32 %v8879_v29, %v2153_v47  ;;  %v7324_v47 = vld [vmem:[#allocation8 + $0x34c] ss:$16 sps:$4 sm:$0xff]  }
 0x391   :  { %5228 = vmatpush1.bf16.msra.mxu1 %v7307_v3  ;;  %5392 = vmatpush1.bf16.msra.mxu0 %v7310_v48  ;;  %v3420_v44 = vmax.f32 %v3419_v15, %v3143_v26  ;;  %v3144_v10 = vmax.f32 %v2888_v25, 0.0  ;;  %v3149_v41 = vmax.f32 %v2893_v30, 0.0  ;;  %v2598_v39 = vmul.f32 %v8889_v45, %v9090_v49  ;;  %v7319_v15 = vld [vmem:[#allocation8 + $0x340] ss:$16 sps:$4 sm:$0xff]   ;;  %v7328_v30 = vld [vmem:[#allocation8 + $0x368] ss:$16 sps:$4 sm:$0xff]  }
 0x392   :  { %v3508_v21 = vrot.slane %v8959_v24, 2  ;;  %5229 = vmatprep.subr.bf16.mxu1 %v7315_v14  ;;  %5393 = vmatprep.subr.bf16.mxu0 %v7318_v7  ;;  %v3399_v57 = vmax.f32 %v3398_v17, %v3142_v50  ;;  %v3151_v46 = vmax.f32 %v2895_v63, 0.0  ;;  %v2894_v32 = vadd.f32 %v8884_v28, %v2596_v43  ;;  %v7330_v17 = vld [vmem:[#allocation8 + $0x36c] ss:$16 sps:$4 sm:$0xff]  }
 0x393   :  { %v3441_v1 = vmax.f32 %v3440_v35, %v3144_v10  ;;  %v9121_v34 = vmax.f32 %v3378_v8, %v3149_v41  ;;  %v2896_v6 = vadd.f32 %v8894_v55, %v2598_v39  ;;  %v2603_v49 = vmul.f32 %v8806_v11, %v2157_v51  ;;  %v7327_v51 = vld [vmem:[#allocation8 + $0x364] ss:$16 sps:$4 sm:$0xff]   ;;  %v7331_v39 = vld [vmem:[#allocation8 + $0x380] ss:$16 sps:$4 sm:$0xff]  }
 0x394   :  { %v9124_v3 = vmax.f32 %v3420_v44, %v3151_v46  ;;  %v3150_v62 = vmax.f32 %v2894_v32, 0.0  ;;  %v9127_v9 = vpop.f32.mrb[100].mxu1  ;;  %v3341_v48 = vmax.f32 %v8939_v40, %v3340_v20  ;;  %v2605_v52 = vmul.f32 %v8869_v2, %v2350_v18 }
 0x395   :  { %5230 = vmatpush1.bf16.msra.mxu1 %v7313_v0  ;;  %5394 = vmatpush1.bf16.msra.mxu0 %v7316_v53  ;;  %v3152_v36 = vmax.f32 %v2896_v6, 0.0  ;;  %v9133_v14 = vpop.f32.mrb[132].mxu0  ;;  %v9135_v61 = vpop.f32.mrb[101].mxu1  ;;  %v3509_v33 = vmax.f32 %v8959_v24, %v3508_v21  ;;  %v2604_v40 = vmul.f32 %v8879_v29, %v2159_v23  ;;  %v2606_v18 = vmul.f32 %v8889_v45, %v2352_v27  ;;  %v7325_v23 = vld [vmem:[#allocation8 + $0x360] ss:$16 sps:$4 sm:$0xff]  }
 0x396   :  { %v9138_v42 = vmax.f32 %v3399_v57, %v3150_v62  ;;  %5231 = vmatprep.subr.bf16.mxu1 %v7321_v5  ;;  %5395 = vmatprep.subr.bf16.mxu0 %v7324_v47  ;;  %v9141_v20 = vpop.f32.mrb[133].mxu0  ;;  %v9143_v7 = vpop.f32.mrb[102].mxu1  ;;  %v2901_v24 = vadd.f32 %v8820_v60, %v2603_v49  ;;  %v2611_v35 = vmul.f32 %v8806_v11, %v2161_v54  ;;  %v3342_v25 = vrot.slane %v3341_v48, 1  ;;  %v7333_v0 = vld [vmem:[#allocation8 + $0x384] ss:$16 sps:$4 sm:$0xff]  }
 0x397   :  { %v9145_v19 = vmax.f32 %v3441_v1, %v3152_v36  ;;  %v9148_v58 = vpop.f32.mrb[134].mxu0  ;;  %v9150_v37 = vpop.f32.mrb[103].mxu1  ;;  %v2903_v8 = vadd.f32 %v8874_v12, %v2605_v52  ;;  %v2613_v27 = vmul.f32 %v8869_v2, %v9107_v4  ;;  %v3510_v50 = vrot.slane %v3509_v33, 1  ;;  %v7336_v53 = vld [vmem:[#allocation8 + $0x38c] ss:$16 sps:$4 sm:$0xff]  }
 0x398   :  { %v9154_v26 = vpop.f32.mrb[135].mxu0  ;;  %v2902_v63 = vadd.f32 %v8884_v28, %v2604_v40  ;;  %v2909_v43 = vadd.f32 %v8820_v60, %v2611_v35  ;;  %v2612_v54 = vmul.f32 %v8879_v29, %v9111_v56  ;;  %v3380_v44 = vrot.slane %v9121_v34, 4  ;;  %v7334_v5 = vld [vmem:[#allocation8 + $0x388] ss:$16 sps:$4 sm:$0xff]  }
 0x399   :  { %5232 = vmatpush1.bf16.msra.mxu1 %v7319_v15  ;;  %5396 = vmatpush1.bf16.msra.mxu0 %v7322_v59  ;;  %v2904_v10 = vadd.f32 %v8894_v55, %v2606_v18  ;;  %v2911_v41 = vadd.f32 %v8874_v12, %v2613_v27  ;;  %v2614_v4 = vmul.f32 %v8889_v45, %v9113_v38  ;;  %v3422_v21 = vrot.slane %v9124_v3, 4  ;;  %v7339_v15 = vld [vmem:[#allocation8 + $0x3a4] ss:$16 sps:$4 sm:$0xff]  }
 0x39a   :  { %5233 = vmatprep.subr.bf16.mxu1 %v7327_v51  ;;  %5397 = vmatprep.subr.bf16.mxu0 %v7330_v17  ;;  %v3157_v57 = vmax.f32 %v2901_v24, 0.0  ;;  %v3165_v46 = vmax.f32 %v2909_v43, 0.0  ;;  %v2910_v32 = vadd.f32 %v8884_v28, %v2612_v54  ;;  %v9172_v47 = vmax.f32 %v3341_v48, %v3342_v25  ;;  %v7342_v48 = vld [vmem:[#allocation8 + $0x3ac] ss:$16 sps:$4 sm:$0xff]   ;;  %v7337_v43 = vld [vmem:[#allocation8 + $0x3a0] ss:$16 sps:$4 sm:$0xff]  }
 0x39b   :  { %v3159_v1 = vmax.f32 %v2903_v8, 0.0  ;;  %v3167_v6 = vmax.f32 %v2911_v41, 0.0  ;;  %v2912_v62 = vadd.f32 %v8894_v55, %v2614_v4  ;;  %v9179_v36 = vmax.f32 %v3509_v33, %v3510_v50  ;;  %v7340_v54 = vld [vmem:[#allocation8 + $0x3a8] ss:$16 sps:$4 sm:$0xff]  }
 0x39c   :  { %v9170_v56 = vpop.f32.mrb[104].mxu1  ;;  %v3158_v59 = vmax.f32 %v2902_v63, 0.0  ;;  %v3533_v52 = vmax.f32 %v3157_v57, %v3165_v46  ;;  %v3166_v51 = vmax.f32 %v2910_v32, 0.0  ;;  %v9186_v18 = vmax.f32 %v9121_v34, %v3380_v44  ;;  %v7345_v44 = vld [vmem:[#allocation8 + $0x3c4] ss:$16 sps:$4 sm:$0xff]  }
 0x39d   :  { %5234 = vmatpush1.bf16.msra.mxu1 %v7325_v23  ;;  %5398 = vmatpush1.bf16.msra.mxu0 %v7328_v30  ;;  %v9175_v38 = vpop.f32.mrb[136].mxu0  ;;  %v9177_v49 = vpop.f32.mrb[105].mxu1  ;;  %v3160_v24 = vmax.f32 %v2904_v10, 0.0  ;;  %v3575_v35 = vmax.f32 %v3159_v1, %v3167_v6  ;;  %v3168_v25 = vmax.f32 %v2912_v62, 0.0  ;;  %v9193_v30 = vmax.f32 %v9124_v3, %v3422_v21  ;;  %v7348_v10 = vld [vmem:[#allocation8 + $0x3cc] ss:$16 sps:$4 sm:$0xff]  }
 0x39e   :  { %5235 = vmatprep.subr.bf16.mxu1 %v7333_v0  ;;  %5399 = vmatprep.subr.bf16.mxu0 %v7336_v53  ;;  %v9181_v17 = vpop.f32.mrb[137].mxu0  ;;  %v9183_v40 = vpop.f32.mrb[106].mxu1  ;;  %v3554_v8 = vmax.f32 %v3158_v59, %v3166_v51  ;;  %v2619_v27 = vmul.f32 %v8806_v11, %v9127_v9  ;;  %v2621_v50 = vmul.f32 %v8869_v2, %v9133_v14  ;;  %v7346_v32 = vld [vmem:[#allocation8 + $0x3c8] ss:$16 sps:$4 sm:$0xff]  }
 0x39f   :  { %v9188_v23 = vpop.f32.mrb[138].mxu0  ;;  %v9190_v33 = vpop.f32.mrb[107].mxu1  ;;  %v3596_v34 = vmax.f32 %v3160_v24, %v3168_v25  ;;  %v2620_v0 = vmul.f32 %v8879_v29, %v9135_v61  ;;  %v2622_v3 = vmul.f32 %v8889_v45, %v9141_v20  ;;  %v2627_v14 = vmul.f32 %v8806_v11, %v9143_v7  ;;  %v7354_v25 = vld [vmem:[#allocation8 + $0x3ec] ss:$16 sps:$4 sm:$0xff]  }
 0x3a0   :  { %v9199_v63 = vpop.f32.mrb[139].mxu0  ;;  %v2917_v9 = vadd.f32 %v8820_v60, %v2619_v27  ;;  %v2919_v53 = vadd.f32 %v8874_v12, %v2621_v50  ;;  %v2629_v61 = vmul.f32 %v8869_v2, %v9148_v58  ;;  %v2628_v20 = vmul.f32 %v8879_v29, %v9150_v37  ;;  %v7351_v37 = vld [vmem:[#allocation8 + $0x3e4] ss:$16 sps:$4 sm:$0xff]  }
 0x3a1   :  { %5236 = vmatpush1.bf16.msra.mxu1 %v7331_v39  ;;  %5400 = vmatpush1.bf16.msra.mxu0 %v7334_v5  ;;  %v2918_v41 = vadd.f32 %v8884_v28, %v2620_v0  ;;  %v2920_v4 = vadd.f32 %v8894_v55, %v2622_v3  ;;  %v7343_v39 = vld [vmem:[#allocation8 + $0x3c0] ss:$16 sps:$4 sm:$0xff]   ;;  %v2925_v46 = vadd.f32 %v8820_v60, %v2627_v14 }
 0x3a2   :  { %5237 = vmatprep.subr.bf16.mxu1 %v7339_v15  ;;  %5401 = vmatprep.subr.bf16.mxu0 %v7342_v48  ;;  %v3173_v21 = vmax.f32 %v2917_v9, 0.0  ;;  %v3175_v57 = vmax.f32 %v2919_v53, 0.0  ;;  %v2630_v7 = vmul.f32 %v8889_v45, %v9154_v26  ;;  %v2927_v58 = vadd.f32 %v8874_v12, %v2629_v61 }
 0x3a3   :  { %v3174_v1 = vmax.f32 %v2918_v41, 0.0  ;;  %v3176_v6 = vmax.f32 %v2920_v4, 0.0  ;;  %v2926_v62 = vadd.f32 %v8884_v28, %v2628_v20  ;;  %v3181_v24 = vmax.f32 %v2925_v46, 0.0 }
 0x3a4   :  { %v9218_v5 = vpop.f32.mrb[108].mxu1  ;;  %v3534_v51 = vmax.f32 %v3533_v52, %v3173_v21  ;;  %v3576_v48 = vmax.f32 %v3575_v35, %v3175_v57  ;;  %v2928_v26 = vadd.f32 %v8894_v55, %v2630_v7  ;;  %v3183_v0 = vmax.f32 %v2927_v58, 0.0  ;;  %v7357_v57 = vld [vmem:[#allocation8 + $0x404] ss:$16 sps:$4 sm:$0xff]  }
 0x3a5   :  { %5238 = vmatpush1.bf16.msra.mxu1 %v7337_v43  ;;  %5402 = vmatpush1.bf16.msra.mxu0 %v7340_v54  ;;  %v9222_v15 = vpop.f32.mrb[140].mxu0  ;;  %v9224_v59 = vpop.f32.mrb[109].mxu1  ;;  %v3555_v43 = vmax.f32 %v3554_v8, %v3174_v1  ;;  %v3597_v54 = vmax.f32 %v3596_v34, %v3176_v6  ;;  %v3182_v3 = vmax.f32 %v2926_v62, 0.0  ;;  %v2635_v14 = vmul.f32 %v8806_v11, %v9170_v56  ;;  %v7349_v8 = vld [vmem:[#allocation8 + $0x3e0] ss:$16 sps:$4 sm:$0xff]  }
 0x3a6   :  { %5239 = vmatprep.subr.bf16.mxu1 %v7345_v44  ;;  %5403 = vmatprep.subr.bf16.mxu0 %v7348_v10  ;;  %v9227_v27 = vpop.f32.mrb[141].mxu0  ;;  %v9229_v50 = vpop.f32.mrb[110].mxu1  ;;  %v3535_v52 = vmax.f32 %v3534_v51, %v3181_v24  ;;  %v3184_v35 = vmax.f32 %v2928_v26, 0.0  ;;  %v2637_v44 = vmul.f32 %v8869_v2, %v9175_v38  ;;  %v3577_v41 = vmax.f32 %v3576_v48, %v3183_v0  ;;  %v7352_v34 = vld [vmem:[#allocation8 + $0x3e8] ss:$16 sps:$4 sm:$0xff]  }
 0x3a7   :  { %v9231_v9 = vpop.f32.mrb[142].mxu0  ;;  %v9233_v53 = vpop.f32.mrb[111].mxu1  ;;  %v3556_v4 = vmax.f32 %v3555_v43, %v3182_v3  ;;  %v2636_v61 = vmul.f32 %v8879_v29, %v9177_v49  ;;  %v2933_v21 = vadd.f32 %v8820_v60, %v2635_v14  ;;  %v2638_v46 = vmul.f32 %v8889_v45, %v9181_v17  ;;  %v7360_v49 = vld [vmem:[#allocation8 + $0x40c] ss:$16 sps:$4 sm:$0xff]  }
 0x3a8   :  { %v9239_v10 = vpop.f32.mrb[143].mxu0  ;;  %v3598_v20 = vmax.f32 %v3597_v54, %v3184_v35  ;;  %v2935_v56 = vadd.f32 %v8874_v12, %v2637_v44  ;;  %v2645_v7 = vmul.f32 %v8869_v2, %v9188_v23  ;;  %v2644_v6 = vmul.f32 %v8879_v29, %v9190_v33 }
 0x3a9   :  { %5240 = vmatpush1.bf16.msra.mxu1 %v7343_v39  ;;  %5404 = vmatpush1.bf16.msra.mxu0 %v7346_v32  ;;  %v2934_v38 = vadd.f32 %v8884_v28, %v2636_v61  ;;  %v2643_v39 = vmul.f32 %v8806_v11, %v9183_v40  ;;  %v3189_v32 = vmax.f32 %v2933_v21, 0.0  ;;  %v2646_v58 = vmul.f32 %v8889_v45, %v9199_v63  ;;  %v7358_v61 = vld [vmem:[#allocation8 + $0x408] ss:$16 sps:$4 sm:$0xff]  }
 0x3aa   :  { %5241 = vmatprep.subr.bf16.mxu1 %v7351_v37  ;;  %5405 = vmatprep.subr.bf16.mxu0 %v7354_v25  ;;  %v3191_v1 = vmax.f32 %v2935_v56, 0.0  ;;  %v2936_v37 = vadd.f32 %v8894_v55, %v2638_v46  ;;  %v2943_v23 = vadd.f32 %v8874_v12, %v2645_v7  ;;  %v2942_v26 = vadd.f32 %v8884_v28, %v2644_v6  ;;  %v7355_v25 = vld [vmem:[#allocation8 + $0x400] ss:$16 sps:$4 sm:$0xff]   ;;  %v7366_v7 = vld [vmem:[#allocation8 + $0x42c] ss:$16 sps:$4 sm:$0xff]  }
 0x3ab   :  { %v3190_v17 = vmax.f32 %v2934_v38, 0.0  ;;  %v2941_v40 = vadd.f32 %v8820_v60, %v2643_v39  ;;  %v3536_v24 = vmax.f32 %v3535_v52, %v3189_v32  ;;  %v2944_v63 = vadd.f32 %v8894_v55, %v2646_v58  ;;  %v7363_v39 = vld [vmem:[#allocation8 + $0x424] ss:$16 sps:$4 sm:$0xff]   ;;  %v7361_v6 = vld [vmem:[#allocation8 + $0x420] ss:$16 sps:$4 sm:$0xff]  }
 0x3ac   :  { %v9256_v62 = vpop.f32.mrb[112].mxu1  ;;  %v3578_v33 = vmax.f32 %v3577_v41, %v3191_v1  ;;  %v3192_v3 = vmax.f32 %v2936_v37, 0.0  ;;  %v3199_v14 = vmax.f32 %v2943_v23, 0.0  ;;  %v3198_v52 = vmax.f32 %v2942_v26, 0.0  ;;  %v7364_v58 = vld [vmem:[#allocation8 + $0x428] ss:$16 sps:$4 sm:$0xff]  }
 0x3ad   :  { %5242 = vmatpush1.bf16.msra.mxu1 %v7349_v8  ;;  %5406 = vmatpush1.bf16.msra.mxu0 %v7352_v34  ;;  %v9261_v51 = vpop.f32.mrb[144].mxu0  ;;  %v9263_v48 = vpop.f32.mrb[113].mxu1  ;;  %v3557_v0 = vmax.f32 %v3556_v4, %v3190_v17  ;;  %v3197_v35 = vmax.f32 %v2941_v40, 0.0  ;;  %v3200_v41 = vmax.f32 %v2944_v63, 0.0  ;;  %v3620_v34 = vsel %vm3617_vm1, %v9172_v47, %v9179_v36 }
 0x3ae   :  { %5252 = vmatprep.subr.bf16.mxu1 %v7357_v57  ;;  %v9267_v43 = vpop.f32.mrb[145].mxu0  ;;  %v9269_v54 = vpop.f32.mrb[114].mxu1  ;;  %5416 = vmatprep.subr.bf16.mxu0 %v7360_v49  ;;  %v2651_v21 = vmul.f32 %v8806_v11, %v9218_v5  ;;  %v3599_v4 = vmax.f32 %v3598_v20, %v3192_v3  ;;  %v3579_v38 = vmax.f32 %v3578_v33, %v3199_v14  ;;  %v7372_v33 = vld [vmem:[#allocation8 + $0x44c] ss:$16 sps:$4 sm:$0xff]  }
 0x3af   :  { %v9271_v44 = vpop.f32.mrb[146].mxu0  ;;  %v9273_v8 = vpop.f32.mrb[115].mxu1  ;;  %v3537_v57 = vmax.f32 %v3536_v24, %v3197_v35  ;;  %v3628_v46 = vpack.c.bf16 %v3620_v34, %v3620_v34  ;;  %v3558_v49 = vmax.f32 %v3557_v0, %v3198_v52  ;;  %v2653_v1 = vmul.f32 %v8869_v2, %v9222_v15  ;;  %v7369_v24 = vld [vmem:[#allocation8 + $0x444] ss:$16 sps:$4 sm:$0xff]  }
 0x3b0   :  { %v9280_v56 = vpop.f32.mrb[147].mxu0  ;;  %v2949_v32 = vadd.f32 %v8820_v60, %v2651_v21  ;;  %v2652_v47 = vmul.f32 %v8879_v29, %v9224_v59  ;;  %v3600_v36 = vmax.f32 %v3599_v4, %v3200_v41  ;;  %v2654_v5 = vmul.f32 %v8889_v45, %v9227_v27 }
 0x3b1   :  { %5244 = vmatmul.mubr.bf16.vlgmr.msra.gmra.mrb[128].mxu1 %v3628_v46  ;;  %5408 = vmatmul.mubr.bf16.vlgmr.msra.gmra.mrb[160].mxu0 %v3628_v46  ;;  %v2659_v20 = vmul.f32 %v8806_v11, %v9229_v50  ;;  %v2951_v37 = vadd.f32 %v8874_v12, %v2653_v1  ;;  %v2661_v59 = vmul.f32 %v8869_v2, %v9231_v9 }
 0x3b2   :  { %5253 = vmatpush1.bf16.msra.mxu1 %v7355_v25  ;;  %5417 = vmatpush1.bf16.msra.mxu0 %v7358_v61  ;;  %v3205_v17 = vmax.f32 %v2949_v32, 0.0  ;;  %v2950_v15 = vadd.f32 %v8884_v28, %v2652_v47  ;;  %v2952_v27 = vadd.f32 %v8894_v55, %v2654_v5  ;;  %v2660_v23 = vmul.f32 %v8879_v29, %v9233_v53 }
 0x3b3   :  { %5254 = vmatprep.subr.bf16.mxu1 %v7363_v39  ;;  %5418 = vmatprep.subr.bf16.mxu0 %v7366_v7  ;;  %v2957_v50 = vadd.f32 %v8820_v60, %v2659_v20  ;;  %v3207_v0 = vmax.f32 %v2951_v37, 0.0  ;;  %v2959_v3 = vadd.f32 %v8874_v12, %v2661_v59  ;;  %v2662_v53 = vmul.f32 %v8889_v45, %v9239_v10  ;;  %v7367_v39 = vld [vmem:[#allocation8 + $0x440] ss:$16 sps:$4 sm:$0xff]   ;;  %v7370_v7 = vld [vmem:[#allocation8 + $0x448] ss:$16 sps:$4 sm:$0xff]  }
 0x3b4   :  { %v9295_v40 = vpop.f32.mrb[116].mxu1  ;;  %v3538_v25 = vmax.f32 %v3537_v57, %v3205_v17  ;;  %v3206_v9 = vmax.f32 %v2950_v15, 0.0  ;;  %v3208_v52 = vmax.f32 %v2952_v27, 0.0  ;;  %v2958_v34 = vadd.f32 %v8884_v28, %v2660_v23  ;;  %v7375_v17 = vld [vmem:[#allocation8 + $0x464] ss:$16 sps:$4 sm:$0xff]  }
 0x3b5   :  { %v9301_v26 = vpop.f32.mrb[148].mxu0  ;;  %v9303_v63 = vpop.f32.mrb[117].mxu1  ;;  %v3213_v41 = vmax.f32 %v2957_v50, 0.0  ;;  %v3580_v4 = vmax.f32 %v3579_v38, %v3207_v0  ;;  %v3215_v46 = vmax.f32 %v2959_v3, 0.0  ;;  %v2667_v32 = vmul.f32 %v8806_v11, %v9256_v62  ;;  %v7378_v38 = vld [vmem:[#allocation8 + $0x46c] ss:$16 sps:$4 sm:$0xff]  }
 0x3b6   :  { %v9306_v35 = vpop.f32.mrb[149].mxu0  ;;  %v9308_v14 = vpop.f32.mrb[118].mxu1  ;;  %5255 = vmatpush1.bf16.msra.mxu1 %v7361_v6  ;;  %5419 = vmatpush1.bf16.msra.mxu0 %v7364_v58  ;;  %v3559_v57 = vmax.f32 %v3558_v49, %v3206_v9  ;;  %v3601_v47 = vmax.f32 %v3600_v36, %v3208_v52  ;;  %v3214_v20 = vmax.f32 %v2958_v34, 0.0  ;;  %v2960_v10 = vadd.f32 %v8894_v55, %v2662_v53  ;;  %v7373_v27 = vld [vmem:[#allocation8 + $0x460] ss:$16 sps:$4 sm:$0xff]  }
 0x3b7   :  { %v9313_v61 = vpop.f32.mrb[150].mxu0  ;;  %v9315_v21 = vpop.f32.mrb[119].mxu1  ;;  %v3539_v5 = vmax.f32 %v3538_v25, %v3213_v41  ;;  %5256 = vmatprep.subr.bf16.mxu1 %v7369_v24  ;;  %5420 = vmatprep.subr.bf16.mxu0 %v7372_v33  ;;  %v3581_v6 = vmax.f32 %v3580_v4, %v3215_v46  ;;  %v2965_v49 = vadd.f32 %v8820_v60, %v2667_v32  ;;  %v7376_v50 = vld [vmem:[#allocation8 + $0x468] ss:$16 sps:$4 sm:$0xff]   ;;  %v7381_v0 = vld [vmem:[#allocation8 + $0x484] ss:$16 sps:$4 sm:$0xff]  }
 0x3b8   :  { %v9319_v1 = vpop.f32.mrb[151].mxu0  ;;  %v2669_v58 = vmul.f32 %v8869_v2, %v9261_v51  ;;  %v2668_v62 = vmul.f32 %v8879_v29, %v9263_v48  ;;  %v3560_v37 = vmax.f32 %v3559_v57, %v3214_v20  ;;  %v3216_v15 = vmax.f32 %v2960_v10, 0.0 }
 0x3b9   :  { %v2670_v36 = vmul.f32 %v8889_v45, %v9267_v43  ;;  %v2675_v59 = vmul.f32 %v8806_v11, %v9269_v54  ;;  %v3221_v23 = vmax.f32 %v2965_v49, 0.0  ;;  %v2677_v48 = vmul.f32 %v8869_v2, %v9271_v44  ;;  %v7384_v44 = vld [vmem:[#allocation8 + $0x48c] ss:$16 sps:$4 sm:$0xff]   ;;  %v7382_v49 = vld [vmem:[#allocation8 + $0x488] ss:$16 sps:$4 sm:$0xff]  }
 0x3ba   :  { %5257 = vmatpush1.bf16.msra.mxu1 %v7367_v39  ;;  %5421 = vmatpush1.bf16.msra.mxu0 %v7370_v7  ;;  %v2967_v24 = vadd.f32 %v8874_v12, %v2669_v58  ;;  %v2966_v51 = vadd.f32 %v8884_v28, %v2668_v62  ;;  %v3602_v25 = vmax.f32 %v3601_v47, %v3216_v15 }
 0x3bb   :  { %5258 = vmatprep.subr.bf16.mxu1 %v7375_v17  ;;  %5422 = vmatprep.subr.bf16.mxu0 %v7378_v38  ;;  %v2968_v43 = vadd.f32 %v8894_v55, %v2670_v36  ;;  %v2973_v54 = vadd.f32 %v8820_v60, %v2675_v59  ;;  %v3540_v52 = vmax.f32 %v3539_v5, %v3221_v23  ;;  %v7379_v38 = vld [vmem:[#allocation8 + $0x480] ss:$16 sps:$4 sm:$0xff]   ;;  %v7387_v59 = vld [vmem:[#allocation8 + $0x4a4] ss:$16 sps:$4 sm:$0xff]  }
 0x3bc   :  { %v9335_v33 = vpop.f32.mrb[120].mxu1  ;;  %v3223_v41 = vmax.f32 %v2967_v24, 0.0  ;;  %v3222_v34 = vmax.f32 %v2966_v51, 0.0  ;;  %v2975_v53 = vadd.f32 %v8874_v12, %v2677_v48  ;;  %v2676_v7 = vmul.f32 %v8879_v29, %v9273_v8 }
 0x3bd   :  { %v9339_v9 = vpop.f32.mrb[152].mxu0  ;;  %v9341_v3 = vpop.f32.mrb[121].mxu1  ;;  %v3224_v46 = vmax.f32 %v2968_v43, 0.0  ;;  %v3229_v39 = vmax.f32 %v2973_v54, 0.0  ;;  %v2678_v32 = vmul.f32 %v8889_v45, %v9280_v56  ;;  %v2683_v58 = vmul.f32 %v8806_v11, %v9295_v40  ;;  %v7388_v43 = vld [vmem:[#allocation8 + $0x4a8] ss:$16 sps:$4 sm:$0xff]  }
 0x3be   :  { %v9344_v4 = vpop.f32.mrb[153].mxu0  ;;  %v9346_v57 = vpop.f32.mrb[122].mxu1  ;;  %v3582_v20 = vmax.f32 %v3581_v6, %v3223_v41  ;;  %5259 = vmatpush1.bf16.msra.mxu1 %v7373_v27  ;;  %5423 = vmatpush1.bf16.msra.mxu0 %v7376_v50  ;;  %v3561_v10 = vmax.f32 %v3560_v37, %v3222_v34  ;;  %v3231_v17 = vmax.f32 %v2975_v53, 0.0  ;;  %v2974_v56 = vadd.f32 %v8884_v28, %v2676_v7  ;;  %v7390_v6 = vld [vmem:[#allocation8 + $0x4ac] ss:$16 sps:$4 sm:$0xff]  }
 0x3bf   :  { %v9352_v47 = vpop.f32.mrb[154].mxu0  ;;  %v9354_v5 = vpop.f32.mrb[123].mxu1  ;;  %v3603_v8 = vmax.f32 %v3602_v25, %v3224_v46  ;;  %v3541_v15 = vmax.f32 %v3540_v52, %v3229_v39  ;;  %v2976_v36 = vadd.f32 %v8894_v55, %v2678_v32  ;;  %5260 = vmatprep.subr.bf16.mxu1 %v7381_v0  ;;  %5424 = vmatprep.subr.bf16.mxu0 %v7384_v44  ;;  %v7385_v25 = vld [vmem:[#allocation8 + $0x4a0] ss:$16 sps:$4 sm:$0xff]   ;;  %v7396_v53 = vld [vmem:[#allocation8 + $0x4cc] ss:$16 sps:$4 sm:$0xff]  }
 0x3c0   :  { %v9358_v62 = vpop.f32.mrb[155].mxu0  ;;  %v3583_v27 = vmax.f32 %v3582_v20, %v3231_v17  ;;  %v2981_v37 = vadd.f32 %v8820_v60, %v2683_v58  ;;  %v2685_v50 = vmul.f32 %v8869_v2, %v9301_v26  ;;  %v2684_v40 = vmul.f32 %v8879_v29, %v9303_v63 }
 0x3c1   :  { %v3230_v23 = vmax.f32 %v2974_v56, 0.0  ;;  %v3232_v24 = vmax.f32 %v2976_v36, 0.0  ;;  %v2686_v51 = vmul.f32 %v8889_v45, %v9306_v35  ;;  %v2691_v48 = vmul.f32 %v8806_v11, %v9308_v14  ;;  %v7393_v14 = vld [vmem:[#allocation8 + $0x4c4] ss:$16 sps:$4 sm:$0xff]  }
 0x3c2   :  { %5261 = vmatpush1.bf16.msra.mxu1 %v7379_v38  ;;  %5425 = vmatpush1.bf16.msra.mxu0 %v7382_v49  ;;  %v3237_v54 = vmax.f32 %v2981_v37, 0.0  ;;  %v2983_v0 = vadd.f32 %v8874_v12, %v2685_v50  ;;  %v2982_v26 = vadd.f32 %v8884_v28, %v2684_v40  ;;  %v2693_v63 = vmul.f32 %v8869_v2, %v9313_v61  ;;  %v7394_v37 = vld [vmem:[#allocation8 + $0x4c8] ss:$16 sps:$4 sm:$0xff]  }
 0x3c3   :  { %v3562_v41 = vmax.f32 %v3561_v10, %v3230_v23  ;;  %v3604_v34 = vmax.f32 %v3603_v8, %v3232_v24  ;;  %5262 = vmatprep.subr.bf16.mxu1 %v7387_v59  ;;  %5426 = vmatprep.subr.bf16.mxu0 %v7390_v6  ;;  %v2984_v35 = vadd.f32 %v8894_v55, %v2686_v51  ;;  %v7391_v6 = vld [vmem:[#allocation8 + $0x4c0] ss:$16 sps:$4 sm:$0xff]   ;;  %v7402_v51 = vld [vmem:[#allocation8 + $0x4ec] ss:$16 sps:$4 sm:$0xff]  }
 0x3c4   :  { %v9375_v52 = vpop.f32.mrb[124].mxu1  ;;  %v3542_v39 = vmax.f32 %v3541_v15, %v3237_v54  ;;  %v3239_v7 = vmax.f32 %v2983_v0, 0.0  ;;  %v3238_v32 = vmax.f32 %v2982_v26, 0.0  ;;  %v2989_v20 = vadd.f32 %v8820_v60, %v2691_v48 }
 0x3c5   :  { %v9378_v44 = vpop.f32.mrb[156].mxu0  ;;  %v9380_v46 = vpop.f32.mrb[125].mxu1  ;;  %v3240_v10 = vmax.f32 %v2984_v35, 0.0  ;;  %v2991_v38 = vadd.f32 %v8874_v12, %v2693_v63  ;;  %v2692_v49 = vmul.f32 %v8879_v29, %v9315_v21  ;;  %v2694_v58 = vmul.f32 %v8889_v45, %v9319_v1 }
 0x3c6   :  { %v9383_v61 = vpop.f32.mrb[157].mxu0  ;;  %v9385_v17 = vpop.f32.mrb[126].mxu1  ;;  %v3584_v56 = vmax.f32 %v3583_v27, %v3239_v7  ;;  %5263 = vmatpush1.bf16.msra.mxu1 %v7385_v25  ;;  %5427 = vmatpush1.bf16.msra.mxu0 %v7388_v43  ;;  %v3563_v36 = vmax.f32 %v3562_v41, %v3238_v32  ;;  %v3245_v59 = vmax.f32 %v2989_v20, 0.0  ;;  %v2699_v50 = vmul.f32 %v8806_v11, %v9335_v33  ;;  %v7399_v27 = vld [vmem:[#allocation8 + $0x4e4] ss:$16 sps:$4 sm:$0xff]  }
 0x3c7   :  { %v9392_v8 = vpop.f32.mrb[158].mxu0  ;;  %v9394_v15 = vpop.f32.mrb[127].mxu1  ;;  %v3605_v21 = vmax.f32 %v3604_v34, %v3240_v10  ;;  %v3247_v23 = vmax.f32 %v2991_v38, 0.0  ;;  %v2990_v1 = vadd.f32 %v8884_v28, %v2692_v49  ;;  %v2992_v24 = vadd.f32 %v8894_v55, %v2694_v58  ;;  %5264 = vmatprep.subr.bf16.mxu1 %v7393_v14  ;;  %5428 = vmatprep.subr.bf16.mxu0 %v7396_v53  ;;  %v7397_v41 = vld [vmem:[#allocation8 + $0x4e0] ss:$16 sps:$4 sm:$0xff]  }
 0x3c8   :  { %v9398_v40 = vpop.f32.mrb[159].mxu0  ;;  %v3543_v48 = vmax.f32 %v3542_v39, %v3245_v59  ;;  %v2997_v25 = vadd.f32 %v8820_v60, %v2699_v50  ;;  %v2701_v43 = vmul.f32 %v8869_v2, %v9339_v9  ;;  %v2700_v33 = vmul.f32 %v8879_v29, %v9341_v3  ;;  %v7400_v34 = vld [vmem:[#allocation8 + $0x4e8] ss:$16 sps:$4 sm:$0xff]   ;;  %v7405_v32 = vld [vmem:[#allocation8 + $0x504] ss:$16 sps:$4 sm:$0xff]  }
 0x3c9   :  { %v3585_v54 = vmax.f32 %v3584_v56, %v3247_v23  ;;  %v3246_v0 = vmax.f32 %v2990_v1, 0.0  ;;  %v3248_v26 = vmax.f32 %v2992_v24, 0.0  ;;  %v2702_v63 = vmul.f32 %v8889_v45, %v9344_v4  ;;  %v7408_v58 = vld [vmem:[#allocation8 + $0x50c] ss:$16 sps:$4 sm:$0xff]   ;;  %v7406_v23 = vld [vmem:[#allocation8 + $0x508] ss:$16 sps:$4 sm:$0xff]  }
 0x3ca   :  { %5265 = vmatpush1.bf16.msra.mxu1 %v7391_v6  ;;  %5429 = vmatpush1.bf16.msra.mxu0 %v7394_v37  ;;  %v3253_v35 = vmax.f32 %v2997_v25, 0.0  ;;  %v2999_v14 = vadd.f32 %v8874_v12, %v2701_v43  ;;  %v2998_v53 = vadd.f32 %v8884_v28, %v2700_v33  ;;  %v2707_v9 = vmul.f32 %v8806_v11, %v9346_v57 }
 0x3cb   :  { %v3401_v3 = vrot.slane %v9138_v42, 4  ;;  %v3564_v39 = vmax.f32 %v3563_v36, %v3246_v0  ;;  %v3606_v7 = vmax.f32 %v3605_v21, %v3248_v26  ;;  %5266 = vmatprep.subr.bf16.mxu1 %v7399_v27  ;;  %5430 = vmatprep.subr.bf16.mxu0 %v7402_v51  ;;  %v3000_v4 = vadd.f32 %v8894_v55, %v2702_v63  ;;  %v7403_v21 = vld [vmem:[#allocation8 + $0x500] ss:$16 sps:$4 sm:$0xff]   ;;  %v7411_v51 = vld [vmem:[#allocation8 + $0x524] ss:$16 sps:$4 sm:$0xff]  }
 0x3cc   :  { %v3544_v20 = vmax.f32 %v3543_v48, %v3253_v35  ;;  %v3255_v10 = vmax.f32 %v2999_v14, 0.0  ;;  %v3254_v38 = vmax.f32 %v2998_v53, 0.0  ;;  %v3005_v49 = vadd.f32 %v8820_v60, %v2707_v9  ;;  %v7409_v63 = vld [vmem:[#allocation8 + $0x520] ss:$16 sps:$4 sm:$0xff]  }
 0x3cd   :  { %v3256_v56 = vmax.f32 %v3000_v4, 0.0  ;;  %v2709_v59 = vmul.f32 %v8869_v2, %v9352_v47  ;;  %v2708_v57 = vmul.f32 %v8879_v29, %v9354_v5  ;;  %v2710_v36 = vmul.f32 %v8889_v45, %v9358_v62  ;;  %v7414_v62 = vld [vmem:[#allocation8 + $0x52c] ss:$16 sps:$4 sm:$0xff]  }
 0x3ce   :  { %v3586_v6 = vmax.f32 %v3585_v54, %v3255_v10  ;;  %5267 = vmatpush1.bf16.msra.mxu1 %v7397_v41  ;;  %5431 = vmatpush1.bf16.msra.mxu0 %v7400_v34  ;;  %v3565_v37 = vmax.f32 %v3564_v39, %v3254_v38  ;;  %v3261_v50 = vmax.f32 %v3005_v49, 0.0  ;;  %v2715_v1 = vmul.f32 %v8806_v11, %v9375_v52  ;;  %v7412_v41 = vld [vmem:[#allocation8 + $0x528] ss:$16 sps:$4 sm:$0xff]  }
 0x3cf   :  { %v3607_v24 = vmax.f32 %v3606_v7, %v3256_v56  ;;  %v3007_v27 = vadd.f32 %v8874_v12, %v2709_v59  ;;  %v3006_v47 = vadd.f32 %v8884_v28, %v2708_v57  ;;  %v3008_v5 = vadd.f32 %v8894_v55, %v2710_v36  ;;  %5268 = vmatprep.subr.bf16.mxu1 %v7405_v32  ;;  %v7420_v7 = vld [vmem:[#allocation8 + $0x54c] ss:$16 sps:$4 sm:$0xff]   ;;  %v7415_v36 = vld [vmem:[#allocation8 + $0x540] ss:$16 sps:$4 sm:$0xff]  }
 0x3d0   :  { %v3545_v48 = vmax.f32 %v3544_v20, %v3261_v50  ;;  %5432 = vmatprep.subr.bf16.mxu0 %v7408_v58  ;;  %v3013_v25 = vadd.f32 %v8820_v60, %v2715_v1  ;;  %v2717_v43 = vmul.f32 %v8869_v2, %v9378_v44  ;;  %v2716_v52 = vmul.f32 %v8879_v29, %v9380_v46 }
 0x3d1   :  { %v3263_v33 = vmax.f32 %v3007_v27, 0.0  ;;  %v3262_v54 = vmax.f32 %v3006_v47, 0.0  ;;  %v3264_v0 = vmax.f32 %v3008_v5, 0.0  ;;  %v2718_v26 = vmul.f32 %v8889_v45, %v9383_v61  ;;  %v7417_v61 = vld [vmem:[#allocation8 + $0x544] ss:$16 sps:$4 sm:$0xff]  }
 0x3d2   :  { %5269 = vmatpush1.bf16.msra.mxu1 %v7403_v21  ;;  %5433 = vmatpush1.bf16.msra.mxu0 %v7406_v23  ;;  %v3269_v34 = vmax.f32 %v3013_v25, 0.0  ;;  %v3015_v35 = vadd.f32 %v8874_v12, %v2717_v43  ;;  %v3014_v14 = vadd.f32 %v8884_v28, %v2716_v52  ;;  %v2723_v44 = vmul.f32 %v8806_v11, %v9385_v17 }
 0x3d3   :  { %v3443_v46 = vrot.slane %v9145_v19, 4  ;;  %v3587_v53 = vmax.f32 %v3586_v6, %v3263_v33  ;;  %v3566_v9 = vmax.f32 %v3565_v37, %v3262_v54  ;;  %v3608_v39 = vmax.f32 %v3607_v24, %v3264_v0  ;;  %5270 = vmatprep.subr.bf16.mxu1 %v7411_v51  ;;  %5434 = vmatprep.subr.bf16.mxu0 %v7414_v62  ;;  %v7429_v51 = vld [vmem:[#allocation8 + $0x584] ss:$16 sps:$4 sm:$0xff]  }
 0x3d4   :  { %v3546_v4 = vmax.f32 %v3545_v48, %v3269_v34  ;;  %v3271_v32 = vmax.f32 %v3015_v35, 0.0  ;;  %v3270_v20 = vmax.f32 %v3014_v14, 0.0  ;;  %v3016_v10 = vadd.f32 %v8894_v55, %v2718_v26  ;;  %v7427_v26 = vld [vmem:[#allocation8 + $0x580] ss:$16 sps:$4 sm:$0xff]  }
 0x3d5   :  { %v3021_v38 = vadd.f32 %v8820_v60, %v2723_v44  ;;  %v2725_v49 = vmul.f32 %v8869_v2, %v9392_v8  ;;  %v2724_v11 = vmul.f32 %v8879_v29, %v9394_v15  ;;  %v2726_v17 = vmul.f32 %v8889_v45, %v9398_v40  ;;  %v7418_v60 = vld [vmem:[#allocation8 + $0x548] ss:$16 sps:$4 sm:$0xff]   ;;  %v7423_v45 = vld [vmem:[#allocation8 + $0x564] ss:$16 sps:$4 sm:$0xff]   ;;  %v7426_v15 = vld [vmem:[#allocation8 + $0x56c] ss:$16 sps:$4 sm:$0xff]  }
 0x3d6   :  { %v3402_v58 = vmax.f32 %v9138_v42, %v3401_v3  ;;  %v3588_v56 = vmax.f32 %v3587_v53, %v3271_v32  ;;  %5271 = vmatpush1.bf16.msra.mxu1 %v7409_v63  ;;  %5435 = vmatpush1.bf16.msra.mxu0 %v7412_v41  ;;  %v3567_v59 = vmax.f32 %v3566_v9, %v3270_v20  ;;  %v3272_v57 = vmax.f32 %v3016_v10, 0.0  ;;  %v7430_v63 = vld [vmem:[#allocation8 + $0x588] ss:$16 sps:$4 sm:$0xff]   ;;  %v7435_v44 = vld [vmem:[#allocation8 + $0x5a4] ss:$16 sps:$4 sm:$0xff]  }
 0x3d7   :  { %v3277_v6 = vmax.f32 %v3021_v38, 0.0  ;;  %v3023_v2 = vadd.f32 %v8874_v12, %v2725_v49  ;;  %v3022_v8 = vadd.f32 %v8884_v28, %v2724_v11  ;;  %v3024_v29 = vadd.f32 %v8894_v55, %v2726_v17  ;;  %5272 = vmatprep.subr.bf16.mxu1 %v7417_v61  ;;  %5436 = vmatprep.subr.bf16.mxu0 %v7420_v7  ;;  %v7421_v28 = vld [vmem:[#allocation8 + $0x560] ss:$16 sps:$4 sm:$0xff]   ;;  %v7424_v55 = vld [vmem:[#allocation8 + $0x568] ss:$16 sps:$4 sm:$0xff]  }
 0x3d8   :  { %v3382_v42 = vrot.slane %v9186_v18, 2  ;;  %v3444_v40 = vmax.f32 %v9145_v19, %v3443_v46  ;;  %v3609_v3 = vmax.f32 %v3608_v39, %v3272_v57  ;;  %v3424_v1 = vrot.slane %v9193_v30, 2  ;;  %v7432_v19 = vld [vmem:[#allocation8 + $0x58c] ss:$16 sps:$4 sm:$0xff]   ;;  %v7436_v32 = vld [vmem:[#allocation8 + $0x5a8] ss:$16 sps:$4 sm:$0xff]  }
 0x3d9   :  { %v3547_v37 = vmax.f32 %v3546_v4, %v3277_v6  ;;  %v3279_v50 = vmax.f32 %v3023_v2, 0.0  ;;  %v3278_v21 = vmax.f32 %v3022_v8, 0.0  ;;  %v3280_v23 = vmax.f32 %v3024_v29, 0.0  ;;  %v7433_v4 = vld [vmem:[#allocation8 + $0x5a0] ss:$16 sps:$4 sm:$0xff]  }
 0x3da   :  { %v3403_v12 = vrot.slane %v3402_v58, 2  ;;  %5273 = vmatpush1.bf16.msra.mxu1 %v7415_v36  ;;  %5437 = vmatpush1.bf16.msra.mxu0 %v7418_v60  ;;  %v3383_v62 = vmax.f32 %v9186_v18, %v3382_v42  ;;  %v3445_v48 = vrot.slane %v3444_v40, 2  ;;  %v3425_v54 = vmax.f32 %v9193_v30, %v3424_v1  ;;  %v7438_v18 = vld [vmem:[#allocation8 + $0x5ac] ss:$16 sps:$4 sm:$0xff]   ;;  %v7441_v17 = vld [vmem:[#allocation8 + $0x5c4] ss:$16 sps:$4 sm:$0xff]  }
 0x3db   :  { %v3548_v24 = vrot.slane %v3547_v37, 4  ;;  %v3589_v27 = vmax.f32 %v3588_v56, %v3279_v50  ;;  %v3568_v47 = vmax.f32 %v3567_v59, %v3278_v21  ;;  %v3610_v5 = vmax.f32 %v3609_v3, %v3280_v23  ;;  %5274 = vmatprep.subr.bf16.mxu1 %v7423_v45  ;;  %5438 = vmatprep.subr.bf16.mxu0 %v7426_v15  ;;  %v7439_v8 = vld [vmem:[#allocation8 + $0x5c0] ss:$16 sps:$4 sm:$0xff]   ;;  %v7442_v29 = vld [vmem:[#allocation8 + $0x5c8] ss:$16 sps:$4 sm:$0xff]  }
 0x3dc   :  { %v3404_v0 = vmax.f32 %v3402_v58, %v3403_v12  ;;  %v3384_v46 = vrot.slane %v3383_v62, 1  ;;  %v3446_v53 = vmax.f32 %v3444_v40, %v3445_v48  ;;  %v3426_v30 = vrot.slane %v3425_v54, 1  ;;  %v7444_v58 = vld [vmem:[#allocation8 + $0x5cc] ss:$16 sps:$4 sm:$0xff]   ;;  %v7447_v42 = vld [vmem:[#allocation8 + $0x5e4] ss:$16 sps:$4 sm:$0xff]  }
 0x3dd   :  { %v3549_v25 = vmax.f32 %v3547_v37, %v3548_v24  ;;  %v3590_v43 = vrot.slane %v3589_v27, 4  ;;  %v3569_v52 = vrot.slane %v3568_v47, 4  ;;  %v3611_v33 = vrot.slane %v3610_v5, 4  ;;  %v7450_v40 = vld [vmem:[#allocation8 + $0x5ec] ss:$16 sps:$4 sm:$0xff]  }
 0x3de   :  { %5275 = vmatpush1.bf16.msra.mxu1 %v7421_v28  ;;  %5439 = vmatpush1.bf16.msra.mxu0 %v7424_v55  ;;  %v3405_v20 = vrot.slane %v3404_v0, 1  ;;  %v3385_v56 = vmax.f32 %v3383_v62, %v3384_v46  ;;  %v3447_v59 = vrot.slane %v3446_v53, 1  ;;  %v3427_v2 = vmax.f32 %v3425_v54, %v3426_v30  ;;  %v7445_v12 = vld [vmem:[#allocation8 + $0x5e0] ss:$16 sps:$4 sm:$0xff]   ;;  %v7448_v28 = vld [vmem:[#allocation8 + $0x5e8] ss:$16 sps:$4 sm:$0xff]  }
 0x3df   :  { %v3550_v41 = vrot.slane %v3549_v25, 2  ;;  %v3591_v34 = vmax.f32 %v3589_v27, %v3590_v43  ;;  %v3570_v35 = vmax.f32 %v3568_v47, %v3569_v52  ;;  %v3612_v14 = vmax.f32 %v3610_v5, %v3611_v33  ;;  %5276 = vmatprep.subr.bf16.mxu1 %v7429_v51  ;;  %5440 = vmatprep.subr.bf16.mxu0 %v7432_v19  ;;  %v7453_v27 = vld [vmem:[#allocation8 + $0x604] ss:$16 sps:$4 sm:$0xff]   ;;  %v7456_v47 = vld [vmem:[#allocation8 + $0x60c] ss:$16 sps:$4 sm:$0xff]  }
 0x3e0   :  { %v3406_v45 = vmax.f32 %v3404_v0, %v3405_v20  ;;  %v3448_v50 = vmax.f32 %v3446_v53, %v3447_v59  ;;  %v7451_v5 = vld [vmem:[#allocation8 + $0x600] ss:$16 sps:$4 sm:$0xff]   ;;  %v7454_v51 = vld [vmem:[#allocation8 + $0x608] ss:$16 sps:$4 sm:$0xff]   ;;  %v7459_v62 = vld [vmem:[#allocation8 + $0x624] ss:$16 sps:$4 sm:$0xff]  }
 0x3e1   :  { %v3551_v9 = vmax.f32 %v3549_v25, %v3550_v41  ;;  %v3592_v39 = vrot.slane %v3591_v34, 2  ;;  %v3571_v61 = vrot.slane %v3570_v35, 2  ;;  %v3613_v7 = vrot.slane %v3612_v14, 2  ;;  %v7462_v48 = vld [vmem:[#allocation8 + $0x62c] ss:$16 sps:$4 sm:$0xff]  }
 0x3e2   :  { %5277 = vmatpush1.bf16.msra.mxu1 %v7427_v26  ;;  %5441 = vmatpush1.bf16.msra.mxu0 %v7430_v63  ;;  %v7457_v43 = vld [vmem:[#allocation8 + $0x620] ss:$16 sps:$4 sm:$0xff]   ;;  %v7460_v52 = vld [vmem:[#allocation8 + $0x628] ss:$16 sps:$4 sm:$0xff]   ;;  %v7465_v33 = vld [vmem:[#allocation8 + $0x644] ss:$16 sps:$4 sm:$0xff]  }
 0x3e3   :  { %v3552_v10 = vrot.slane %v3551_v9, 1  ;;  %v3593_v38 = vmax.f32 %v3591_v34, %v3592_v39  ;;  %v3572_v49 = vmax.f32 %v3570_v35, %v3571_v61  ;;  %v3614_v11 = vmax.f32 %v3612_v14, %v3613_v7  ;;  %5278 = vmatprep.subr.bf16.mxu1 %v7435_v44  ;;  %5442 = vmatprep.subr.bf16.mxu0 %v7438_v18  ;;  %v7468_v54 = vld [vmem:[#allocation8 + $0x64c] ss:$16 sps:$4 sm:$0xff]   ;;  %v7463_v0 = vld [vmem:[#allocation8 + $0x640] ss:$16 sps:$4 sm:$0xff]  }
 0x3e4   :  { %v7466_v26 = vld [vmem:[#allocation8 + $0x648] ss:$16 sps:$4 sm:$0xff]   ;;  %v7471_v63 = vld [vmem:[#allocation8 + $0x664] ss:$16 sps:$4 sm:$0xff]   ;;  %v7474_v41 = vld [vmem:[#allocation8 + $0x66c] ss:$16 sps:$4 sm:$0xff]  }
 0x3e5   :  { %v3553_v57 = vmax.f32 %v3551_v9, %v3552_v10  ;;  %v3594_v36 = vrot.slane %v3593_v38, 1  ;;  %v3573_v60 = vrot.slane %v3572_v49, 1  ;;  %v3615_v6 = vrot.slane %v3614_v11, 1  ;;  %v7469_v34 = vld [vmem:[#allocation8 + $0x660] ss:$16 sps:$4 sm:$0xff]  }
 0x3e6   :  { %5279 = vmatpush1.bf16.msra.mxu1 %v7433_v4  ;;  %5443 = vmatpush1.bf16.msra.mxu0 %v7436_v32  ;;  %v7472_v35 = vld [vmem:[#allocation8 + $0x668] ss:$16 sps:$4 sm:$0xff]   ;;  %v7477_v14 = vld [vmem:[#allocation8 + $0x684] ss:$16 sps:$4 sm:$0xff]   ;;  %v7480_v44 = vld [vmem:[#allocation8 + $0x68c] ss:$16 sps:$4 sm:$0xff]  }
 0x3e7   :  { %v3595_v15 = vmax.f32 %v3593_v38, %v3594_v36  ;;  %5280 = vmatprep.subr.bf16.mxu1 %v7441_v17  ;;  %5444 = vmatprep.subr.bf16.mxu0 %v7444_v58  ;;  %v3574_v3 = vmax.f32 %v3572_v49, %v3573_v60  ;;  %v3622_v37 = vsel %vm3617_vm1, %v3385_v56, %v3553_v57  ;;  %v7475_v18 = vld [vmem:[#allocation8 + $0x680] ss:$16 sps:$4 sm:$0xff]   ;;  %v7478_v46 = vld [vmem:[#allocation8 + $0x688] ss:$16 sps:$4 sm:$0xff]   ;;  %v7483_v53 = vld [vmem:[#allocation8 + $0x6a4] ss:$16 sps:$4 sm:$0xff]  }
 0x3e8   :  { %v3616_v21 = vmax.f32 %v3614_v11, %v3615_v6  ;;  %v3630_v19 = vpack.c.bf16 %v3622_v37, %v3622_v37  ;;  %v7486_v9 = vld [vmem:[#allocation8 + $0x6ac] ss:$16 sps:$4 sm:$0xff]   ;;  %v7481_v39 = vld [vmem:[#allocation8 + $0x6a0] ss:$16 sps:$4 sm:$0xff]   ;;  %v7484_v61 = vld [vmem:[#allocation8 + $0x6a8] ss:$16 sps:$4 sm:$0xff]  }
 0x3e9   :  { %v3623_v23 = vsel %vm3617_vm1, %v3406_v45, %v3574_v3  ;;  %v9461_v1 = vsel %vm3617_vm1, %v3427_v2, %v3595_v15  ;;  %v7489_v7 = vld [vmem:[#allocation8 + $0x6c4] ss:$16 sps:$4 sm:$0xff]   ;;  %v7492_v30 = vld [vmem:[#allocation8 + $0x6cc] ss:$16 sps:$4 sm:$0xff]   ;;  %v7487_v4 = vld [vmem:[#allocation8 + $0x6c0] ss:$16 sps:$4 sm:$0xff]  }
 0x3ea   :  { %5281 = vmatpush1.bf16.msra.mxu1 %v7439_v8  ;;  %5445 = vmatpush1.bf16.msra.mxu0 %v7442_v29  ;;  %v3631_v55 = vpack.c.bf16 %v3623_v23, %v3623_v23  ;;  %v3625_v24 = vsel %vm3617_vm1, %v3448_v50, %v3616_v21  ;;  %v7490_v32 = vld [vmem:[#allocation8 + $0x6c8] ss:$16 sps:$4 sm:$0xff]   ;;  %v7495_v20 = vld [vmem:[#allocation8 + $0x6e4] ss:$16 sps:$4 sm:$0xff]   ;;  %v7498_v10 = vld [vmem:[#allocation8 + $0x6ec] ss:$16 sps:$4 sm:$0xff]  }
 0x3eb   :  { %5282 = vmatprep.subr.bf16.mxu1 %v7447_v42  ;;  %5446 = vmatprep.subr.bf16.mxu0 %v7450_v40  ;;  %v3633_v25 = vpack.c.bf16 %v3625_v24, %v3625_v24  ;;  %v7493_v38 = vld [vmem:[#allocation8 + $0x6e0] ss:$16 sps:$4 sm:$0xff]   ;;  %v7496_v49 = vld [vmem:[#allocation8 + $0x6e8] ss:$16 sps:$4 sm:$0xff]   ;;  %v7501_v11 = vld [vmem:[#allocation8 + $0x704] ss:$16 sps:$4 sm:$0xff]  }
 0x3ec   :  { %5284 = vmatprep.mubr.bf16.mxu1 %v3631_v55  ;;  %5448 = vmatprep.mubr.bf16.mxu0 %v3631_v55  ;;  %v7504_v17 = vld [vmem:[#allocation8 + $0x70c] ss:$16 sps:$4 sm:$0xff]   ;;  %v7499_v58 = vld [vmem:[#allocation8 + $0x700] ss:$16 sps:$4 sm:$0xff]   ;;  %v7502_v56 = vld [vmem:[#allocation8 + $0x708] ss:$16 sps:$4 sm:$0xff]  }
 0x3ed   :  { %v7507_v59 = vld [vmem:[#allocation8 + $0x724] ss:$16 sps:$4 sm:$0xff]   ;;  %v7510_v57 = vld [vmem:[#allocation8 + $0x72c] ss:$16 sps:$4 sm:$0xff]   ;;  %v7505_v36 = vld [vmem:[#allocation8 + $0x720] ss:$16 sps:$4 sm:$0xff]  }
 0x3ee   :  { %5283 = vmatpush1.bf16.msra.mxu1 %v7445_v12  ;;  %5447 = vmatpush1.bf16.msra.mxu0 %v7448_v28  ;;  %v7508_v60 = vld [vmem:[#allocation8 + $0x728] ss:$16 sps:$4 sm:$0xff]   ;;  %v7513_v6 = vld [vmem:[#allocation8 + $0x744] ss:$16 sps:$4 sm:$0xff]   ;;  %v7516_v2 = vld [vmem:[#allocation8 + $0x74c] ss:$16 sps:$4 sm:$0xff]  }
 0x3ef   :  { %5293 = vmatprep.subr.bf16.mxu1 %v7453_v27  ;;  %5457 = vmatprep.subr.bf16.mxu0 %v7456_v47  ;;  %v7511_v8 = vld [vmem:[#allocation8 + $0x740] ss:$16 sps:$4 sm:$0xff]   ;;  %v7514_v29 = vld [vmem:[#allocation8 + $0x748] ss:$16 sps:$4 sm:$0xff]   ;;  %v7519_v45 = vld [vmem:[#allocation8 + $0x764] ss:$16 sps:$4 sm:$0xff]  }
 0x3f0   :  { %v7522_v15 = vld [vmem:[#allocation8 + $0x76c] ss:$16 sps:$4 sm:$0xff]   ;;  %v7517_v42 = vld [vmem:[#allocation8 + $0x760] ss:$16 sps:$4 sm:$0xff]   ;;  %v7520_v40 = vld [vmem:[#allocation8 + $0x768] ss:$16 sps:$4 sm:$0xff]  }
 0x3f1   :  { %5285 = vmatmul.mubr.bf16.vlgmr.msra.gmra.mrb[128].mxu1 %v3630_v19  ;;  %5449 = vmatmul.mubr.bf16.vlgmr.msra.gmra.mrb[160].mxu0 %v3630_v19  ;;  %v7525_v3 = vld [vmem:[#allocation8 + $0x784] ss:$16 sps:$4 sm:$0xff]   ;;  %v7528_v37 = vld [vmem:[#allocation8 + $0x78c] ss:$16 sps:$4 sm:$0xff]   ;;  %v7523_v50 = vld [vmem:[#allocation8 + $0x780] ss:$16 sps:$4 sm:$0xff]  }
 0x3f2   :  { %5294 = vmatpush1.bf16.msra.mxu1 %v7451_v5  ;;  %5458 = vmatpush1.bf16.msra.mxu0 %v7454_v51  ;;  %v7526_v21 = vld [vmem:[#allocation8 + $0x788] ss:$16 sps:$4 sm:$0xff]   ;;  %v7531_v23 = vld [vmem:[#allocation8 + $0x7a4] ss:$16 sps:$4 sm:$0xff]   ;;  %v7534_v12 = vld [vmem:[#allocation8 + $0x7ac] ss:$16 sps:$4 sm:$0xff]  }
 0x3f3   :  { %5325 = vmatprep.mubr.bf16.mxu1 %v3633_v25  ;;  %5489 = vmatprep.mubr.bf16.mxu0 %v3633_v25  ;;  %v7529_v28 = vld [vmem:[#allocation8 + $0x7a0] ss:$16 sps:$4 sm:$0xff]   ;;  %v7532_v55 = vld [vmem:[#allocation8 + $0x7a8] ss:$16 sps:$4 sm:$0xff]   ;;  %v7537_v24 = vld [vmem:[#allocation8 + $0x7c4] ss:$16 sps:$4 sm:$0xff]  }
 0x3f4   :  { %5295 = vmatprep.subr.bf16.mxu1 %v7459_v62  ;;  %5459 = vmatprep.subr.bf16.mxu0 %v7462_v48  ;;  %v7540_v27 = vld [vmem:[#allocation8 + $0x7cc] ss:$16 sps:$4 sm:$0xff]   ;;  %v7535_v47 = vld [vmem:[#allocation8 + $0x7c0] ss:$16 sps:$4 sm:$0xff]   ;;  %v7538_v5 = vld [vmem:[#allocation8 + $0x7c8] ss:$16 sps:$4 sm:$0xff]  }
 0x3f5   :  { %v7543_v51 = vld [vmem:[#allocation8 + $0x7e4] ss:$16 sps:$4 sm:$0xff]   ;;  %v7546_v19 = vld [vmem:[#allocation8 + $0x7ec] ss:$16 sps:$4 sm:$0xff]   ;;  %v7541_v62 = vld [vmem:[#allocation8 + $0x7e0] ss:$16 sps:$4 sm:$0xff]  }
 0x3f6   :  { %5296 = vmatpush1.bf16.msra.mxu1 %v7457_v43  ;;  %5460 = vmatpush1.bf16.msra.mxu0 %v7460_v52  ;;  %v7544_v48 = vld [vmem:[#allocation8 + $0x7e8] ss:$16 sps:$4 sm:$0xff]   ;;  %v7549_v25 = vld [vmem:[#allocation10 + $0x4] ss:$8 sps:$4 sm:$0xff]   ;;  %v3632_v52 = vpack.c.bf16 %v9461_v1, %v9461_v1  ;;  %v7564_v1 = vld [vmem:[#allocation10 + $0x54] ss:$8 sps:$4 sm:$0xff]  }
 0x3f7   :  { %5297 = vmatprep.subr.bf16.mxu1 %v7465_v33  ;;  %5461 = vmatprep.subr.bf16.mxu0 %v7468_v54  ;;  %v7547_v43 = vld [vmem:[#allocation10] ss:$8 sps:$4 sm:$0xff]   ;;  %v7552_v33 = vld [vmem:[#allocation10 + $0x14] ss:$8 sps:$4 sm:$0xff]   ;;  %v7550_v54 = vld [vmem:[#allocation10 + $0x10] ss:$8 sps:$4 sm:$0xff]  }
 0x3fa   :  { %5298 = vmatpush1.bf16.msra.mxu1 %v7463_v0  ;;  %5462 = vmatpush1.bf16.msra.mxu0 %v7466_v26  ;;  %v7555_v0 = vld [vmem:[#allocation10 + $0x24] ss:$8 sps:$4 sm:$0xff]   ;;  %v7553_v26 = vld [vmem:[#allocation10 + $0x20] ss:$8 sps:$4 sm:$0xff]  }
 0x3fb   :  { %5299 = vmatprep.subr.bf16.mxu1 %v7471_v63  ;;  %5463 = vmatprep.subr.bf16.mxu0 %v7474_v41  ;;  %v7558_v63 = vld [vmem:[#allocation10 + $0x34] ss:$8 sps:$4 sm:$0xff]   ;;  %v7556_v41 = vld [vmem:[#allocation10 + $0x30] ss:$8 sps:$4 sm:$0xff]  }
 0x3fe   :  { %5300 = vmatpush1.bf16.msra.mxu1 %v7469_v34  ;;  %5464 = vmatpush1.bf16.msra.mxu0 %v7472_v35  ;;  %v7561_v34 = vld [vmem:[#allocation10 + $0x44] ss:$8 sps:$4 sm:$0xff]   ;;  %v7559_v35 = vld [vmem:[#allocation10 + $0x40] ss:$8 sps:$4 sm:$0xff]  }
 0x3ff   :  { %5301 = vmatprep.subr.bf16.mxu1 %v7477_v14  ;;  %5465 = vmatprep.subr.bf16.mxu0 %v7480_v44  ;;  %v7562_v14 = vld [vmem:[#allocation10 + $0x50] ss:$8 sps:$4 sm:$0xff]   ;;  %v7567_v44 = vld [vmem:[#allocation10 + $0x64] ss:$8 sps:$4 sm:$0xff]  }
 0x402   :  { %5302 = vmatpush1.bf16.msra.mxu1 %v7475_v18  ;;  %5466 = vmatpush1.bf16.msra.mxu0 %v7478_v46  ;;  %v7565_v18 = vld [vmem:[#allocation10 + $0x60] ss:$8 sps:$4 sm:$0xff]   ;;  %v7570_v46 = vld [vmem:[#allocation10 + $0x74] ss:$8 sps:$4 sm:$0xff]  }
 0x403   :  { %5303 = vmatprep.subr.bf16.mxu1 %v7483_v53  ;;  %5467 = vmatprep.subr.bf16.mxu0 %v7486_v9  ;;  %v7568_v53 = vld [vmem:[#allocation10 + $0x70] ss:$8 sps:$4 sm:$0xff]   ;;  %v7573_v9 = vld [vmem:[#allocation10 + $0x84] ss:$8 sps:$4 sm:$0xff]  }
 0x406   :  { %5304 = vmatpush1.bf16.msra.mxu1 %v7481_v39  ;;  %5468 = vmatpush1.bf16.msra.mxu0 %v7484_v61  ;;  %v7571_v39 = vld [vmem:[#allocation10 + $0x80] ss:$8 sps:$4 sm:$0xff]   ;;  %v7576_v61 = vld [vmem:[#allocation10 + $0x94] ss:$8 sps:$4 sm:$0xff]  }
 0x407   :  { %5305 = vmatprep.subr.bf16.mxu1 %v7489_v7  ;;  %5469 = vmatprep.subr.bf16.mxu0 %v7492_v30  ;;  %v7574_v7 = vld [vmem:[#allocation10 + $0x90] ss:$8 sps:$4 sm:$0xff]   ;;  %v7579_v30 = vld [vmem:[#allocation10 + $0xa4] ss:$8 sps:$4 sm:$0xff]  }
 0x40a   :  { %5306 = vmatpush1.bf16.msra.mxu1 %v7487_v4  ;;  %5470 = vmatpush1.bf16.msra.mxu0 %v7490_v32  ;;  %v7577_v4 = vld [vmem:[#allocation10 + $0xa0] ss:$8 sps:$4 sm:$0xff]   ;;  %v7582_v32 = vld [vmem:[#allocation10 + $0xb4] ss:$8 sps:$4 sm:$0xff]  }
 0x40b   :  { %5307 = vmatprep.subr.bf16.mxu1 %v7495_v20  ;;  %5471 = vmatprep.subr.bf16.mxu0 %v7498_v10  ;;  %v7580_v20 = vld [vmem:[#allocation10 + $0xb0] ss:$8 sps:$4 sm:$0xff]   ;;  %v7585_v10 = vld [vmem:[#allocation10 + $0xc4] ss:$8 sps:$4 sm:$0xff]  }
 0x40e   :  { %5308 = vmatpush1.bf16.msra.mxu1 %v7493_v38  ;;  %5472 = vmatpush1.bf16.msra.mxu0 %v7496_v49  ;;  %v7583_v38 = vld [vmem:[#allocation10 + $0xc0] ss:$8 sps:$4 sm:$0xff]   ;;  %v7588_v49 = vld [vmem:[#allocation10 + $0xd4] ss:$8 sps:$4 sm:$0xff]  }
 0x40f   :  { %5309 = vmatprep.subr.bf16.mxu1 %v7501_v11  ;;  %5473 = vmatprep.subr.bf16.mxu0 %v7504_v17  ;;  %v7586_v11 = vld [vmem:[#allocation10 + $0xd0] ss:$8 sps:$4 sm:$0xff]   ;;  %v7589_v17 = vld [vmem:[#allocation10 + $0xe0] ss:$8 sps:$4 sm:$0xff]  }
 0x412   :  { %5310 = vmatpush1.bf16.msra.mxu1 %v7499_v58  ;;  %5474 = vmatpush1.bf16.msra.mxu0 %v7502_v56  ;;  %v7591_v58 = vld [vmem:[#allocation10 + $0xe4] ss:$8 sps:$4 sm:$0xff]   ;;  %v7594_v56 = vld [vmem:[#allocation10 + $0xf4] ss:$8 sps:$4 sm:$0xff]  }
 0x413   :  { %5311 = vmatprep.subr.bf16.mxu1 %v7507_v59  ;;  %5475 = vmatprep.subr.bf16.mxu0 %v7510_v57  ;;  %v7592_v59 = vld [vmem:[#allocation10 + $0xf0] ss:$8 sps:$4 sm:$0xff]   ;;  %v7597_v57 = vld [vmem:[#allocation10 + $0x104] ss:$8 sps:$4 sm:$0xff]  }
 0x416   :  { %5312 = vmatpush1.bf16.msra.mxu1 %v7505_v36  ;;  %5476 = vmatpush1.bf16.msra.mxu0 %v7508_v60  ;;  %v7643_v36 = vld [vmem:[%s9572_s16 + $0x40] sm:$0xff]  }
 0x417   :  { %5313 = vmatprep.subr.bf16.mxu1 %v7513_v6  ;;  %5477 = vmatprep.subr.bf16.mxu0 %v7516_v2  ;;  %v7644_v60 = vld [vmem:[%s9572_s16] sm:$0xff]   ;;  %v7645_v6 = vld [vmem:[%s9572_s16 + $0x48] sm:$0xff]  }
 0x418   :  { %v7646_v2 = vld [vmem:[%s9572_s16 + $0x8] sm:$0xff]  }
 0x41a   :  { %5314 = vmatpush1.bf16.msra.mxu1 %v7511_v8  ;;  %5478 = vmatpush1.bf16.msra.mxu0 %v7514_v29  ;;  %v7647_v8 = vld [vmem:[%s9572_s16 + $0x50] sm:$0xff]  }
 0x41b   :  { %5315 = vmatprep.subr.bf16.mxu1 %v7519_v45  ;;  %5479 = vmatprep.subr.bf16.mxu0 %v7522_v15  ;;  %v7648_v29 = vld [vmem:[%s9572_s16 + $0x10] sm:$0xff]   ;;  %v7649_v45 = vld [vmem:[%s9572_s16 + $0x58] sm:$0xff]  }
 0x41c   :  { %v7650_v15 = vld [vmem:[%s9572_s16 + $0x18] sm:$0xff]  }
 0x41e   :  { %5316 = vmatpush1.bf16.msra.mxu1 %v7517_v42  ;;  %5480 = vmatpush1.bf16.msra.mxu0 %v7520_v40  ;;  %v7651_v42 = vld [vmem:[%s9572_s16 + $0x60] sm:$0xff]  }
 0x41f   :  { %5317 = vmatprep.subr.bf16.mxu1 %v7525_v3  ;;  %5481 = vmatprep.subr.bf16.mxu0 %v7528_v37  ;;  %v7652_v40 = vld [vmem:[%s9572_s16 + $0x20] sm:$0xff]   ;;  %v7653_v3 = vld [vmem:[%s9572_s16 + $0x68] sm:$0xff]  }
 0x420   :  { %v5498_v37 = vld [vmem:[%s9567_s11] sm:$0xf] }
 0x422   :  { %5318 = vmatpush1.bf16.msra.mxu1 %v7523_v50  ;;  %5482 = vmatpush1.bf16.msra.mxu0 %v7526_v21  ;;  %v5524_v50 = vld [vmem:[%s9568_s12] sm:$0xf]  ;;  %v5503_v21 = vrot.slane %v5498_v37, %v8094_v13 }
 0x423   :  { %5319 = vmatprep.subr.bf16.mxu1 %v7531_v23  ;;  %5483 = vmatprep.subr.bf16.mxu0 %v7534_v12  ;;  %v5511_v23 = vrot.slane %v5498_v37, %v8107_v22  ;;  %v5507_v12 = vrot.slane %v5498_v37, %v8097_v16 }
 0x426   :  { %5320 = vmatpush1.bf16.msra.mxu1 %v7529_v28  ;;  %5484 = vmatpush1.bf16.msra.mxu0 %v7532_v55  ;;  %v5515_v28 = vrot.slane %v5498_v37, %v8519_v31  ;;  %v5529_v55 = vrot.slane %v5524_v50, %v8094_v13  ;;  %v7640_v37 = vld [vmem:[#allocation10 + $0x1f0] ss:$8 sps:$4 sm:$0xff]  }
 0x427   :  { %5321 = vmatprep.subr.bf16.mxu1 %v7537_v24  ;;  %5485 = vmatprep.subr.bf16.mxu0 %v7540_v27  ;;  %v5537_v24 = vrot.slane %v5524_v50, %v8107_v22 }
 0x42a   :  { %5322 = vmatpush1.bf16.msra.mxu1 %v7535_v47  ;;  %5486 = vmatpush1.bf16.msra.mxu0 %v7538_v5  ;;  %v5533_v5 = vrot.slane %v5524_v50, %v8097_v16 }
 0x42b   :  { %5323 = vmatprep.subr.bf16.mxu1 %v7543_v51  ;;  %5487 = vmatprep.subr.bf16.mxu0 %v7546_v19  ;;  %v5541_v51 = vrot.slane %v5524_v50, %v8519_v31  ;;  %v7595_v31 = vld [vmem:[#allocation10 + $0x100] ss:$8 sps:$4 sm:$0xff]  }
 0x42e   :  { %5324 = vmatpush1.bf16.msra.mxu1 %v7541_v62  ;;  %5488 = vmatpush1.bf16.msra.mxu0 %v7544_v48 }
 0x42f   :  { %5942 = vmatprep.subr.bf16.mxu1 %v7549_v25  ;;  %6773 = vmatprep.subr.bf16.mxu0 %v7643_v36  ;;  %v7627_v36 = vld [vmem:[#allocation10 + $0x1a4] ss:$8 sps:$4 sm:$0xff]  }
 0x431   :  { %5326 = vmatmul.mubr.bf16.vlgmr.msra.gmra.mrb[128].mxu1 %v3632_v52  ;;  %5490 = vmatmul.mubr.bf16.vlgmr.msra.gmra.mrb[160].mxu0 %v3632_v52 }
 0x432   :  { %5943 = vmatpush1.bf16.msra.mxu1 %v7547_v43  ;;  %6774 = vmatpush3.bf16.msra.mxu0 %v7644_v60  ;;  %v7625_v60 = vld [vmem:[#allocation10 + $0x1a0] ss:$8 sps:$4 sm:$0xff]  }
 0x433   :  { %5944 = vmatprep.subr.bf16.mxu1 %v7552_v33  ;;  %6775 = vmatprep.subr.bf16.mxu0 %v7645_v6  ;;  %v7630_v6 = vld [vmem:[#allocation10 + $0x1b4] ss:$8 sps:$4 sm:$0xff]  }
 0x436   :  { %5945 = vmatpush1.bf16.msra.mxu1 %v7550_v54  ;;  %6776 = vmatpush3.bf16.msra.mxu0 %v7646_v2  ;;  %v7628_v2 = vld [vmem:[#allocation10 + $0x1b0] ss:$8 sps:$4 sm:$0xff]  }
 0x437   :  { %5946 = vmatprep.subr.bf16.mxu1 %v7555_v0  ;;  %6777 = vmatprep.subr.bf16.mxu0 %v7647_v8  ;;  %v7633_v8 = vld [vmem:[#allocation10 + $0x1c4] ss:$8 sps:$4 sm:$0xff]  }
 0x43a   :  { %5947 = vmatpush1.bf16.msra.mxu1 %v7553_v26  ;;  %6778 = vmatpush3.bf16.msra.mxu0 %v7648_v29  ;;  %v7631_v29 = vld [vmem:[#allocation10 + $0x1c0] ss:$8 sps:$4 sm:$0xff]  }
 0x43b   :  { %5948 = vmatprep.subr.bf16.mxu1 %v7558_v63  ;;  %6779 = vmatprep.subr.bf16.mxu0 %v7649_v45  ;;  %v7636_v45 = vld [vmem:[#allocation10 + $0x1d4] ss:$8 sps:$4 sm:$0xff]  }
 0x43e   :  { %5949 = vmatpush1.bf16.msra.mxu1 %v7556_v41  ;;  %6780 = vmatpush3.bf16.msra.mxu0 %v7650_v15  ;;  %v7634_v15 = vld [vmem:[#allocation10 + $0x1d0] ss:$8 sps:$4 sm:$0xff]  }
 0x43f   :  { %5950 = vmatprep.subr.bf16.mxu1 %v7561_v34  ;;  %6781 = vmatprep.subr.bf16.mxu0 %v7651_v42  ;;  %v7639_v42 = vld [vmem:[#allocation10 + $0x1e4] ss:$8 sps:$4 sm:$0xff]  }
 0x442   :  { %5951 = vmatpush1.bf16.msra.mxu1 %v7559_v35  ;;  %6782 = vmatpush3.bf16.msra.mxu0 %v7652_v40  ;;  %v7637_v40 = vld [vmem:[#allocation10 + $0x1e0] ss:$8 sps:$4 sm:$0xff]  }
 0x443   :  { %5952 = vmatprep.subr.bf16.mxu1 %v7564_v1  ;;  %6783 = vmatprep.subr.bf16.mxu0 %v7653_v3  ;;  %v7642_v3 = vld [vmem:[#allocation10 + $0x1f4] ss:$8 sps:$4 sm:$0xff]  }
 0x446   :  { %5953 = vmatpush1.bf16.msra.mxu1 %v7562_v14 }
 0x447   :  { %5954 = vmatprep.subr.bf16.mxu1 %v7567_v44 }
 0x44a   :  { %5955 = vmatpush1.bf16.msra.mxu1 %v7565_v18 }
 0x44b   :  { %5956 = vmatprep.subr.bf16.mxu1 %v7570_v46  ;;  %v7600_v46 = vld [vmem:[#allocation10 + $0x114] ss:$8 sps:$4 sm:$0xff]  }
 0x44e   :  { %5957 = vmatpush1.bf16.msra.mxu1 %v7568_v53 }
 0x44f   :  { %5958 = vmatprep.subr.bf16.mxu1 %v7573_v9  ;;  %v7598_v9 = vld [vmem:[#allocation10 + $0x110] ss:$8 sps:$4 sm:$0xff]  }
 0x452   :  { %5959 = vmatpush1.bf16.msra.mxu1 %v7571_v39  ;;  %v7603_v39 = vld [vmem:[#allocation10 + $0x124] ss:$8 sps:$4 sm:$0xff]  }
 0x453   :  { %5960 = vmatprep.subr.bf16.mxu1 %v7576_v61  ;;  %v7601_v61 = vld [vmem:[#allocation10 + $0x120] ss:$8 sps:$4 sm:$0xff]  }
 0x456   :  { %5961 = vmatpush1.bf16.msra.mxu1 %v7574_v7  ;;  %v7606_v7 = vld [vmem:[#allocation10 + $0x134] ss:$8 sps:$4 sm:$0xff]  }
 0x457   :  { %5962 = vmatprep.subr.bf16.mxu1 %v7579_v30  ;;  %v7604_v30 = vld [vmem:[#allocation10 + $0x130] ss:$8 sps:$4 sm:$0xff]  }
 0x45a   :  { %5963 = vmatpush1.bf16.msra.mxu1 %v7577_v4  ;;  %v7609_v4 = vld [vmem:[#allocation10 + $0x144] ss:$8 sps:$4 sm:$0xff]  }
 0x45b   :  { %5964 = vmatprep.subr.bf16.mxu1 %v7582_v32  ;;  %v7607_v32 = vld [vmem:[#allocation10 + $0x140] ss:$8 sps:$4 sm:$0xff]  }
 0x45e   :  { %5965 = vmatpush1.bf16.msra.mxu1 %v7580_v20  ;;  %v7612_v20 = vld [vmem:[#allocation10 + $0x154] ss:$8 sps:$4 sm:$0xff]  }
 0x45f   :  { %5966 = vmatprep.subr.bf16.mxu1 %v7585_v10  ;;  %v7610_v10 = vld [vmem:[#allocation10 + $0x150] ss:$8 sps:$4 sm:$0xff]  }
 0x462   :  { %5967 = vmatpush1.bf16.msra.mxu1 %v7583_v38  ;;  %v7615_v38 = vld [vmem:[#allocation10 + $0x164] ss:$8 sps:$4 sm:$0xff]  }
 0x463   :  { %5968 = vmatprep.subr.bf16.mxu1 %v7588_v49  ;;  %v7613_v49 = vld [vmem:[#allocation10 + $0x160] ss:$8 sps:$4 sm:$0xff]  }
 0x466   :  { %5969 = vmatpush1.bf16.msra.mxu1 %v7586_v11  ;;  %v7618_v11 = vld [vmem:[#allocation10 + $0x174] ss:$8 sps:$4 sm:$0xff]  }
 0x467   :  { %5970 = vmatprep.subr.bf16.mxu1 %v7591_v58  ;;  %v7621_v58 = vld [vmem:[#allocation10 + $0x184] ss:$8 sps:$4 sm:$0xff]  }
 0x46a   :  { %5971 = vmatpush1.bf16.msra.mxu1 %v7589_v17  ;;  %v7616_v17 = vld [vmem:[#allocation10 + $0x170] ss:$8 sps:$4 sm:$0xff]  }
 0x46b   :  { %5972 = vmatprep.subr.bf16.mxu1 %v7594_v56  ;;  %v7619_v56 = vld [vmem:[#allocation10 + $0x180] ss:$8 sps:$4 sm:$0xff]  }
 0x46e   :  { %5973 = vmatpush1.bf16.msra.mxu1 %v7592_v59  ;;  %v7624_v59 = vld [vmem:[#allocation10 + $0x194] ss:$8 sps:$4 sm:$0xff]  }
 0x46f   :  { %5983 = vmatprep.subr.bf16.mxu1 %v7597_v57  ;;  %v7622_v57 = vld [vmem:[#allocation10 + $0x190] ss:$8 sps:$4 sm:$0xff]  }
 0x504   :  { %v5327_v27 = vpop.f32.mrb[128].mxu1  ;;  %v5491_v47 = vpop.f32.mrb[160].mxu0 }
 0x505   :  { %v5520_v19 = vmul.f32 %v5503_v21, %v5327_v27  ;;  %v5522_v62 = vmul.f32 %v5511_v23, %v5491_v47  ;;  %v5329_v48 = vpop.f32.mrb[129].mxu1  ;;  %v5493_v25 = vpop.f32.mrb[161].mxu0  ;;  %v7654_v23 = vld [vmem:[%s9572_s16 + $0x28] sm:$0xff]   ;;  %v6024_v27 = vld [vmem:[%s9570_s14] sm:$0x3] }
 0x506   :  { %v5521_v43 = vmul.f32 %v5507_v12, %v5329_v48  ;;  %v5523_v52 = vmul.f32 %v5515_v28, %v5493_v25  ;;  %v5331_v33 = vpop.f32.mrb[130].mxu1  ;;  %v5495_v54 = vpop.f32.mrb[162].mxu0  ;;  %v7655_v12 = vld [vmem:[%s9572_s16 + $0x70] sm:$0xff]   ;;  %6784 = vmatpush3.bf16.msra.mxu0 %v7654_v23  ;;  %v6038_v47 = vld [vmem:[%s9571_s15] sm:$0x3] }
 0x507   :  { %v5546_v0 = vadd.f32 %v5529_v55, %v5520_v19  ;;  %v9513_v26 = vadd.f32 %v5537_v24, %v5522_v62  ;;  %v5332_v63 = vpop.f32.mrb[131].mxu1  ;;  %v5496_v41 = vpop.f32.mrb[163].mxu0  ;;  %v7656_v28 = vld [vmem:[%s9572_s16 + $0x30] sm:$0xff]   ;;  %6785 = vmatprep.subr.bf16.mxu0 %v7655_v12  ;;  %v7657_v55 = vld [vmem:[%s9572_s16 + $0x78] sm:$0xff]   ;;  %v6043_v19 = vrot.slane %v6038_v47, %v8094_v13  ;;  %v6047_v48 = vrot.slane %v6038_v47, %v8097_v16 }
 0x508   :  { %v5547_v22 = vadd.f32 %v5533_v5, %v5521_v43  ;;  %v5549_v34 = vadd.f32 %v5541_v51, %v5523_v52  ;;  %v7658_v24 = vld [vmem:[%s9572_s16 + $0x38] sm:$0xff]   ;;  %v6029_v5 = vrot.slane %v6024_v27, %v8094_v13  ;;  %v6033_v51 = vrot.slane %v6024_v27, %v8097_v16  ;;  %v6657_v13 = vld [vmem:[%s9573_s17] ss:$0 sm:$0xff]  ;;  %s7815_s16 = smov [#allocation11]  }
 0x509   :  { %v5550_v35 = vmax.f32 %v5546_v0, 0.0  ;;  %v5552_v50 = vmax.f32 %v9513_v26, 0.0  ;;  %s6238_s22 = sshll.u32 %s7815_s16, 4  ;;  %s6239_s22 = int_to_ptr.vmem [resolvable:$true] %s6238_s22 }
 0x50a   :  { %v5551_v1 = vmax.f32 %v5547_v22, 0.0  ;;  %v5553_v14 = vmax.f32 %v5549_v34, 0.0  ;;  %6786 = vmatpush3.bf16.msra.mxu0 %v7656_v28  ;;  %s7771_s10 = scalar_lea.vmem %s6239_s22, 32  ;;  %p7776_p13 = scmp.lt.s32.totalorder %s6239_s22, %s6239_s22 }
 0x50b   :  { %v5554_v18 = vpack.c.bf16 %v5550_v35, %v5550_v35  ;;  %v5556_v21 = vpack.c.bf16 %v5552_v50, %v5552_v50  ;;  %6787 = vmatprep.subr.bf16.mxu0 %v7657_v55  ;;  %p7772_p12 = scmp.ne.s32.totalorder %s6239_s22, %s7771_s10  ;;  %p7777_p0 = scmp.lt.s32.totalorder %s7771_s10, %s7771_s10 }
 0x50c   :  { %v5555_v44 = vpack.c.bf16 %v5551_v1, %v5551_v1  ;;  %v5557_v53 = vpack.c.bf16 %v5553_v14, %v5553_v14 }
 0x50d   :  { %p7778_p1 = por %p7777_p0, %p7776_p13 }
 0x50e   :  { %5974 = vmatprep.mubr.bf16.mxu1 %v5555_v44  ;;  %6788 = vmatpush3.bf16.msra.mxu0 %v7658_v24 }
 0x50f   :  { %5975 = vmatmul.mubr.bf16.vlgmr.msra.gmra.mrb[132].mxu1 %v5554_v18  ;;  %p7779_p2 = pnand %p7778_p1, %p7772_p12 }
 0x510   :  { %5984 = vmatpush1.bf16.msra.mxu1 %v7595_v31  ;;  %6015 = vmatprep.mubr.bf16.mxu1 %v5557_v53 }
 0x511   :  { %5985 = vmatprep.subr.bf16.mxu1 %v7600_v46 }
 0x514   :  { %5986 = vmatpush1.bf16.msra.mxu1 %v7598_v9 }
 0x515   :  { %5987 = vmatprep.subr.bf16.mxu1 %v7603_v39 }
 0x518   :  { %5988 = vmatpush1.bf16.msra.mxu1 %v7601_v61 }
 0x519   :  { %5989 = vmatprep.subr.bf16.mxu1 %v7606_v7 }
 0x51c   :  { %5990 = vmatpush1.bf16.msra.mxu1 %v7604_v30 }
 0x51d   :  { %5991 = vmatprep.subr.bf16.mxu1 %v7609_v4 }
 0x520   :  { %5992 = vmatpush1.bf16.msra.mxu1 %v7607_v32 }
 0x521   :  { %5993 = vmatprep.subr.bf16.mxu1 %v7612_v20 }
 0x524   :  { %5994 = vmatpush1.bf16.msra.mxu1 %v7610_v10 }
 0x525   :  { %5995 = vmatprep.subr.bf16.mxu1 %v7615_v38 }
 0x528   :  { %5996 = vmatpush1.bf16.msra.mxu1 %v7613_v49 }
 0x529   :  { %5997 = vmatprep.subr.bf16.mxu1 %v7618_v11 }
 0x52c   :  { %5998 = vmatpush1.bf16.msra.mxu1 %v7616_v17 }
 0x52d   :  { %5999 = vmatprep.subr.bf16.mxu1 %v7621_v58 }
 0x530   :  { %6000 = vmatpush1.bf16.msra.mxu1 %v7619_v56 }
 0x531   :  { %6001 = vmatprep.subr.bf16.mxu1 %v7624_v59 }
 0x534   :  { %6002 = vmatpush1.bf16.msra.mxu1 %v7622_v57 }
 0x535   :  { %6003 = vmatprep.subr.bf16.mxu1 %v7627_v36 }
 0x538   :  { %6004 = vmatpush1.bf16.msra.mxu1 %v7625_v60 }
 0x539   :  { %6005 = vmatprep.subr.bf16.mxu1 %v7630_v6 }
 0x53c   :  { %6006 = vmatpush1.bf16.msra.mxu1 %v7628_v2 }
 0x53d   :  { %6007 = vmatprep.subr.bf16.mxu1 %v7633_v8 }
 0x540   :  { %6008 = vmatpush1.bf16.msra.mxu1 %v7631_v29 }
 0x541   :  { %6009 = vmatprep.subr.bf16.mxu1 %v7636_v45 }
 0x544   :  { %6010 = vmatpush1.bf16.msra.mxu1 %v7634_v15 }
 0x545   :  { %6011 = vmatprep.subr.bf16.mxu1 %v7639_v42 }
 0x548   :  { %6012 = vmatpush1.bf16.msra.mxu1 %v7637_v40 }
 0x549   :  { %6013 = vmatprep.subr.bf16.mxu1 %v7642_v3 }
 0x54c   :  { %6014 = vmatpush1.bf16.msra.mxu1 %v7640_v37 }
 0x54f   :  { %6016 = vmatmul.mubr.bf16.vlgmr.msra.gmra.mrb[132].mxu1 %v5556_v21 }
 0x622   :  { %v6017_v62 = vpop.f32.mrb[132].mxu1 }
 0x623   :  { %v6036_v25 = vmul.f32 %v6029_v5, %v6017_v62  ;;  %v6019_v43 = vpop.f32.mrb[133].mxu1 }
 0x624   :  { %v6037_v52 = vmul.f32 %v6033_v51, %v6019_v43  ;;  %v6021_v33 = vpop.f32.mrb[134].mxu1 }
 0x625   :  { %v6050_v54 = vadd.f32 %v6043_v19, %v6036_v25  ;;  %v6022_v0 = vpop.f32.mrb[135].mxu1 }
 0x626   :  { %v6051_v26 = vadd.f32 %v6047_v48, %v6037_v52 }
 0x627   :  { %v6052_v63 = vmax.f32 %v6050_v54, 0.0 }
 0x628   :  { %v6053_v41 = vmax.f32 %v6051_v26, 0.0 }
 0x629   :  { %v6054_v34 = vpack.c.bf16 %v6052_v63, %v6052_v63 }
 0x62a   :  { %v6055_v22 = vpack.c.bf16 %v6053_v41, %v6053_v41 }
 0x62c   :  { %6223 = vmatprep.mubr.bf16.mxu0 %v6055_v22 }
 0x62d   :  { %6224 = vmatmul.mubr.bf16.vlgmr.msra.gmra.mrb[164].mxu0 %v6054_v34 }
 0x700   :  { %v6789_v35 = vpop.f32.mrb[164].mxu0 }
 0x701   :  { %v6790_v1 = vpop.f32.mrb[165].mxu0 }
 0x702   :  { %v6791_v16 = vadd.f32 %v6790_v1, %v6789_v35  ;;  %v6792_v14 = vpop.f32.mrb[166].mxu0 }
 0x703   :  { %v6793_v44 = vpop.f32.mrb[167].mxu0 }
 0x704   :  { %v6226_v31 = vadd.f32 %v6791_v16, %v6657_v13 }
 0x706   :  { %6231 = vst [vmem:[#allocation11] sm:$0x3] %v6226_v31 }
 0x707   :  { %7782 = shalt.err (!%p7779_p2)
}
 0x708   :  { %s7783_s17 = scalar_lea.hbm %s9574_s18, 32 }
 0x709   :  { %p7784_p3 = scmp.ne.s32.totalorder %s9574_s18, %s7783_s17  ;;  %p7787_p4 = scmp.lt.u32.totalorder %s7783_s17, %s9574_s18 }
 0x70b   :  { %p7789_p5 = pnand %p7787_p4, %p7784_p3 }
 0x70d   :  { %7792 = shalt.err (!%p7789_p5)
}
 0x70e   :  { %6241 = dma.vmem_to_hbm [thread:$0]  %s6239_s22, 32, %s9574_s18, [#allocation4]  }
 0x70f   :  { %7799 = dma.done.wait [#allocation4], 32  }
 0x710   :  { %7800 = vsyncadd [#allocation4], 4294967264 }
 0x711   :  { %6245 = vsyncpa [#allocation3], 1 }
 0x712   :  { %6246 = vsyncpa [#allocation6], 1 }
 0x713   :  { %6247 = vsyncpa [#allocation9], 1 }
 0x714   :  { %6248 = vsyncpa [#allocation4], 1 }

</bundles_post_ra>
